<compile_context>
chip_gen: v7x
topology: tpu7x:2x2x1
jax: 0.10.0
libtpu: 0.0.40
codegen_flags: <defaults>
</compile_context>

<pallas_src>
import functools
import math

import jax
import jax.numpy as jnp
from jax.experimental import pallas as pl
from jax.experimental.pallas import tpu as pltpu

K1_RAW = 9 * 9 * 3      # 243: conv1 im2col reduction dim
K1_PAD = 256            # lane-aligned reduction dim for conv1
C1 = 64                 # conv1 out channels
C2 = 32                 # conv2 out channels
C3 = 3                  # conv3 out channels
C3_PAD = 128            # lane-dense padded conv3 out channels
KS3 = 5                 # conv3 kernel size
PAD3 = 2                # conv3 spatial padding


# --------------------- kernel 1: fused conv1 + conv2 ----------------------- #
def _fused_conv12_kernel(x_ref, w1_ref, b1_ref, w2_ref, b2_ref, o_ref):
    # conv1 as matmul on im2col patches (K zero-padded to 256), bias, ReLU.
    h1 = jnp.dot(x_ref[...], w1_ref[...], preferred_element_type=jnp.float32)
    h1 = jnp.maximum(h1 + b1_ref[...], 0.0)
    # conv2 (1x1) directly on the f32 tile still in VMEM/vregs, bias, ReLU.
    h2 = jnp.dot(h1, w2_ref[...], preferred_element_type=jnp.float32)
    h2 = jnp.maximum(h2 + b2_ref[...], 0.0)
    o_ref[...] = h2.astype(o_ref.dtype)


def fused_conv12(cols1, w1, b1, w2, b2, *, tm):
    mp, k1 = cols1.shape
    return pl.pallas_call(
        _fused_conv12_kernel,
        out_shape=jax.ShapeDtypeStruct((mp, C2), jnp.float32),
        grid_spec=pltpu.PrefetchScalarGridSpec(
            num_scalar_prefetch=0,
            grid=(mp // tm,),
            in_specs=[
                pl.BlockSpec((tm, k1), lambda i: (i, 0)),
                pl.BlockSpec((k1, C1), lambda i: (0, 0)),   # weights resident
                pl.BlockSpec((1, C1), lambda i: (0, 0)),
                pl.BlockSpec((C1, C2), lambda i: (0, 0)),
                pl.BlockSpec((1, C2), lambda i: (0, 0)),
            ],
            out_specs=pl.BlockSpec((tm, C2), lambda i: (i, 0)),
        ),
        compiler_params=pltpu.CompilerParams(
            dimension_semantics=("parallel",)),
    )(cols1, w1, b1, w2, b2)


# ------------- kernel 2: conv3 with in-kernel im2col (5x5, pad 2) ---------- #
def _conv3_kernel(h2p_ref, w3_ref, b3_ref, o_ref, *, h, w):
    # h2p_ref: (h+4, w+4, C2) zero-padded feature map of one image (VMEM).
    acc = jnp.zeros((h * w, C3_PAD), jnp.float32) + b3_ref[...]
    for i in range(KS3):
        for j in range(KS3):
            patch = h2p_ref[pl.ds(i, h), pl.ds(j, w), :].reshape(h * w, C2)
            acc = acc + jnp.dot(patch, w3_ref[i * KS3 + j],
                                preferred_element_type=jnp.float32)
    o_ref[...] = acc.astype(o_ref.dtype)


def conv3(h2p, w3, b3, *, h, w):
    n = h2p.shape[0]
    kern = functools.partial(_conv3_kernel, h=h, w=w)
    return pl.pallas_call(
        kern,
        out_shape=jax.ShapeDtypeStruct((n, h * w, C3_PAD), jnp.float32),
        grid_spec=pltpu.PrefetchScalarGridSpec(
            num_scalar_prefetch=0,
            grid=(n,),
            in_specs=[
                pl.BlockSpec((None, h + 2 * PAD3, w + 2 * PAD3, C2),
                             lambda b: (b, 0, 0, 0)),
                pl.BlockSpec((KS3 * KS3, C2, C3_PAD), lambda b: (0, 0, 0)),
                pl.BlockSpec((1, C3_PAD), lambda b: (0, 0)),
            ],
            out_specs=pl.BlockSpec((None, h * w, C3_PAD), lambda b: (b, 0, 0)),
        ),
        compiler_params=pltpu.CompilerParams(
            dimension_semantics=("parallel",)),
    )(h2p, w3, b3)


# ------------------------------ JAX glue ---------------------------------- #
def im2col_9x9(x_nhwc):
    """(N,H,W,3) -> (N*H*W, 243): tap-major (kh, kw) then channel."""
    n, h, w, c = x_nhwc.shape
    xp = jnp.pad(x_nhwc, ((0, 0), (4, 4), (4, 4), (0, 0)))
    cols = []
    for i in range(9):
        for j in range(9):
            cols.append(xp[:, i:i + h, j:j + w, :])
    patches = jnp.stack(cols, axis=-2)               # (N, H, W, 81, C)
    return patches.reshape(n * h * w, 81 * c)


def init_conv(key, cout, cin, kh, kw):
    """PyTorch default Conv2d init: U(-1/sqrt(fan_in), 1/sqrt(fan_in))."""
    k1, k2 = jax.random.split(key)
    fan_in = cin * kh * kw
    bound = 1.0 / math.sqrt(fan_in)
    w = jax.random.uniform(k1, (cout, cin, kh, kw), jnp.float32, -bound, bound)
    b = jax.random.uniform(k2, (cout,), jnp.float32, -bound, bound)
    return w, b


def prepare_params(p1, p2, p3):
    """Convert OIHW weights into the kernel layouts (im2col-ordered, padded)."""
    w1, b1 = p1
    w2, b2 = p2
    w3, b3 = p3
    # im2col ordering is (kh, kw, cin) -> reorder OIHW accordingly.
    w1_mat = jnp.transpose(w1, (2, 3, 1, 0)).reshape(K1_RAW, C1)
    w1_mat = jnp.pad(w1_mat, ((0, K1_PAD - K1_RAW), (0, 0)))        # (256, 64)
    w2_mat = jnp.transpose(w2, (2, 3, 1, 0)).reshape(C1, C2)        # (64, 32)
    w3_taps = jnp.transpose(w3, (2, 3, 1, 0)).reshape(KS3 * KS3, C2, C3)
    w3_taps = jnp.pad(w3_taps, ((0, 0), (0, 0), (0, C3_PAD - C3)))  # (25,32,128)
    return dict(
        w1=w1_mat, b1=b1.reshape(1, C1),
        w2=w2_mat, b2=b2.reshape(1, C2),
        w3=w3_taps, b3=jnp.pad(b3, (0, C3_PAD - C3)).reshape(1, C3_PAD),
    )


def sisr_forward(x_nchw, kp, *, tm=512):
    x = jnp.transpose(x_nchw, (0, 2, 3, 1))          # NCHW -> NHWC
    n, h, w, _ = x.shape
    m = n * h * w
    mp = pl.cdiv(m, tm) * tm                         # cdiv grid + padded rows

    # conv1 + conv2 (fused kernel): rows padded to mp, K padded 243 -> 256.
    cols1 = im2col_9x9(x)                                          # (M, 243)
    cols1 = jnp.pad(cols1, ((0, mp - m), (0, K1_PAD - K1_RAW)))    # (Mp, 256)
    h2 = fused_conv12(cols1, kp["w1"], kp["b1"], kp["w2"], kp["b2"], tm=tm)
    h2 = h2[:m].reshape(n, h, w, C2)

    # conv3: zero-pad spatially in the wrapper, im2col + matmul in the kernel.
    h2p = jnp.pad(h2, ((0, 0), (PAD3, PAD3), (PAD3, PAD3), (0, 0)))
    out = conv3(h2p, kp["w3"], kp["b3"], h=h, w=w)                 # (N, H*W, 128)
    out = out[:, :, :C3].reshape(n, h, w, C3)
    return jnp.transpose(out, (0, 3, 1, 2))          # back to NCHW


# --------------------------- reference (XLA conv) -------------------------- #
def ref_forward(x_nchw, p1, p2, p3):
    def conv(x, wb, pad):
        w, b = wb
        y = jax.lax.conv_general_dilated(
            x, w, window_strides=(1, 1),
            padding=[(pad, pad), (pad, pad)],
            dimension_numbers=("NCHW", "OIHW", "NCHW"))
        return y + b.reshape(1, -1, 1, 1)

    x = jax.nn.relu(conv(x_nchw, p1, 4))
    x = jax.nn.relu(conv(x, p2, 0))
    return conv(x, p3, 2)


# --------------------------------- main ------------------------------------ #
if __name__ == "__main__":
    key = jax.random.PRNGKey(0)
    kx, k1, k2, k3 = jax.random.split(key, 4)

    # Small RGB batch consistent with the module (Conv2d(3, ...)).
    x = jax.random.normal(kx, (2, 3, 16, 16), jnp.float32)

    p1 = init_conv(k1, C1, 3, 9, 9)
    p2 = init_conv(k2, C2, C1, 1, 1)
    p3 = init_conv(k3, C3, C2, 5, 5)
    kp = prepare_params(p1, p2, p3)

    fwd = jax.jit(functools.partial(sisr_forward, tm=512))
    out = jax.block_until_ready(fwd(x, kp))

    ref = jax.block_until_ready(ref_forward(x, p1, p2, p3))
    assert out.shape == (2, 3, 16, 16)
    assert jnp.allclose(out, ref, atol=1e-3, rtol=1e-3), "mismatch vs XLA reference"

    print("KERNEL_OK")
</pallas_src>

<mosaic_0001>
module attributes {stable_mosaic.version = 11 : i64} {
  func.func @_fused_conv12_kernel(%arg0: i32, %arg1: memref<512x256xf32, #tpu.memory_space<vmem>>, %arg2: memref<256x64xf32, #tpu.memory_space<vmem>>, %arg3: memref<1x64xf32, #tpu.memory_space<vmem>>, %arg4: memref<64x32xf32, #tpu.memory_space<vmem>>, %arg5: memref<1x32xf32, #tpu.memory_space<vmem>>, %arg6: memref<512x32xf32, #tpu.memory_space<vmem>>) attributes {dimension_semantics = [#tpu.dimension_semantics<parallel>], iteration_bounds = array<i64: 1>, scalar_prefetch = 0 : i64, scratch_operands = 0 : i64, tpu.core_type = #tpu.core_type<tc>, window_params = [{transform_indices = @transform_0, window_bounds = array<i64: 512, 256>}, {pipeline_mode = #tpu.pipeline_mode<synchronous>, transform_indices = @transform_1, window_bounds = array<i64: 256, 64>}, {pipeline_mode = #tpu.pipeline_mode<synchronous>, transform_indices = @transform_2, window_bounds = array<i64: 1, 64>}, {pipeline_mode = #tpu.pipeline_mode<synchronous>, transform_indices = @transform_3, window_bounds = array<i64: 64, 32>}, {pipeline_mode = #tpu.pipeline_mode<synchronous>, transform_indices = @transform_4, window_bounds = array<i64: 1, 32>}, {transform_indices = @transform_5, window_bounds = array<i64: 512, 32>}]} {
    %c0 = arith.constant 0 : index
    %c0_0 = arith.constant 0 : index
    %0 = vector.load %arg1[%c0, %c0_0] : memref<512x256xf32, #tpu.memory_space<vmem>>, vector<512x256xf32>
    %c0_1 = arith.constant 0 : index
    %c0_2 = arith.constant 0 : index
    %1 = vector.load %arg2[%c0_1, %c0_2] : memref<256x64xf32, #tpu.memory_space<vmem>>, vector<256x64xf32>
    %cst = arith.constant dense<0.000000e+00> : vector<512x64xf32>
    %2 = tpu.matmul %0, %1, %cst {dimension_numbers = #tpu.dot_dimension_numbers<[1], [0], [0], [1], [0, 0, 1, 1], [], []>} : vector<512x256xf32>, vector<256x64xf32>, vector<512x64xf32> -> vector<512x64xf32>
    %c0_3 = arith.constant 0 : index
    %c0_4 = arith.constant 0 : index
    %3 = vector.load %arg3[%c0_3, %c0_4] : memref<1x64xf32, #tpu.memory_space<vmem>>, vector<1x64xf32>
    %4 = vector.broadcast %3 : vector<1x64xf32> to vector<512x64xf32>
    %5 = arith.addf %2, %4 : vector<512x64xf32>
    %cst_5 = arith.constant 0.000000e+00 : f32
    %6 = vector.broadcast %cst_5 : f32 to vector<512x64xf32>
    %7 = arith.maximumf %5, %6 : vector<512x64xf32>
    %c0_6 = arith.constant 0 : index
    %c0_7 = arith.constant 0 : index
    %8 = vector.load %arg4[%c0_6, %c0_7] : memref<64x32xf32, #tpu.memory_space<vmem>>, vector<64x32xf32>
    %cst_8 = arith.constant dense<0.000000e+00> : vector<512x32xf32>
    %9 = tpu.matmul %7, %8, %cst_8 {dimension_numbers = #tpu.dot_dimension_numbers<[1], [0], [0], [1], [0, 0, 1, 1], [], []>} : vector<512x64xf32>, vector<64x32xf32>, vector<512x32xf32> -> vector<512x32xf32>
    %c0_9 = arith.constant 0 : index
    %c0_10 = arith.constant 0 : index
    %10 = vector.load %arg5[%c0_9, %c0_10] : memref<1x32xf32, #tpu.memory_space<vmem>>, vector<1x32xf32>
    %11 = vector.broadcast %10 : vector<1x32xf32> to vector<512x32xf32>
    %12 = arith.addf %9, %11 : vector<512x32xf32>
    %cst_11 = arith.constant 0.000000e+00 : f32
    %13 = vector.broadcast %cst_11 : f32 to vector<512x32xf32>
    %14 = arith.maximumf %12, %13 : vector<512x32xf32>
    %c0_12 = arith.constant 0 : index
    %c0_13 = arith.constant 0 : index
    %15 = vector.load %arg6[%c0_12, %c0_13] : memref<512x32xf32, #tpu.memory_space<vmem>>, vector<512x32xf32>
    tpu.vector_store %arg6[%c0_12, %c0_13], %14 {strides = array<i32>} : memref<512x32xf32, #tpu.memory_space<vmem>>, vector<512x32xf32>,
    return
  }
  func.func @transform_0(%arg0: i32) -> (i32, i32) {
    %c0_i32 = arith.constant 0 : i32
    %c0_i32_0 = arith.constant 0 : i32
    return %arg0, %c0_i32 : i32, i32
  }
  func.func @transform_1(%arg0: i32) -> (i32, i32) {
    %c0_i32 = arith.constant 0 : i32
    %c0_i32_0 = arith.constant 0 : i32
    %c0_i32_1 = arith.constant 0 : i32
    return %c0_i32, %c0_i32_0 : i32, i32
  }
  func.func @transform_2(%arg0: i32) -> (i32, i32) {
    %c0_i32 = arith.constant 0 : i32
    %c0_i32_0 = arith.constant 0 : i32
    %c0_i32_1 = arith.constant 0 : i32
    return %c0_i32, %c0_i32_0 : i32, i32
  }
  func.func @transform_3(%arg0: i32) -> (i32, i32) {
    %c0_i32 = arith.constant 0 : i32
    %c0_i32_0 = arith.constant 0 : i32
    %c0_i32_1 = arith.constant 0 : i32
    return %c0_i32, %c0_i32_0 : i32, i32
  }
  func.func @transform_4(%arg0: i32) -> (i32, i32) {
    %c0_i32 = arith.constant 0 : i32
    %c0_i32_0 = arith.constant 0 : i32
    %c0_i32_1 = arith.constant 0 : i32
    return %c0_i32, %c0_i32_0 : i32, i32
  }
  func.func @transform_5(%arg0: i32) -> (i32, i32) {
    %c0_i32 = arith.constant 0 : i32
    %c0_i32_0 = arith.constant 0 : i32
    return %arg0, %c0_i32 : i32, i32
  }
}

module attributes {stable_mosaic.version = 11 : i64} {
  func.func @_conv3_kernel(%arg0: i32, %arg1: memref<1x20x20x32xf32, #tpu.memory_space<vmem>>, %arg2: memref<25x32x128xf32, #tpu.memory_space<vmem>>, %arg3: memref<1x128xf32, #tpu.memory_space<vmem>>, %arg4: memref<1x256x128xf32, #tpu.memory_space<vmem>>) attributes {dimension_semantics = [#tpu.dimension_semantics<parallel>], iteration_bounds = array<i64: 2>, scalar_prefetch = 0 : i64, scratch_operands = 0 : i64, tpu.core_type = #tpu.core_type<tc>, window_params = [{transform_indices = @transform_0, window_bounds = array<i64: 1, 20, 20, 32>}, {pipeline_mode = #tpu.pipeline_mode<synchronous>, transform_indices = @transform_1, window_bounds = array<i64: 25, 32, 128>}, {pipeline_mode = #tpu.pipeline_mode<synchronous>, transform_indices = @transform_2, window_bounds = array<i64: 1, 128>}, {transform_indices = @transform_3, window_bounds = array<i64: 1, 256, 128>}]} {
    %cst = arith.constant 0.000000e+00 : f32
    %0 = vector.broadcast %cst : f32 to vector<256x128xf32>
    %c0 = arith.constant 0 : index
    %c0_0 = arith.constant 0 : index
    %1 = vector.load %arg3[%c0, %c0_0] : memref<1x128xf32, #tpu.memory_space<vmem>>, vector<1x128xf32>
    %2 = vector.broadcast %1 : vector<1x128xf32> to vector<256x128xf32>
    %3 = arith.addf %0, %2 : vector<256x128xf32>
    %c0_1 = arith.constant 0 : index
    %c0_2 = arith.constant 0 : index
    %c0_3 = arith.constant 0 : index
    %c0_4 = arith.constant 0 : index
    %4 = vector.load %arg1[%c0_1, %c0_2, %c0_3, %c0_4] : memref<1x20x20x32xf32, #tpu.memory_space<vmem>>, vector<1x16x16x32xf32>
    %5 = vector.shape_cast %4 : vector<1x16x16x32xf32> to vector<16x16x32xf32>
    %6 = vector.shape_cast %5 : vector<16x16x32xf32> to vector<256x32xf32>
    %c0_5 = arith.constant 0 : index
    %c0_6 = arith.constant 0 : index
    %c0_7 = arith.constant 0 : index
    %7 = vector.load %arg2[%c0_5, %c0_6, %c0_7] : memref<25x32x128xf32, #tpu.memory_space<vmem>>, vector<1x32x128xf32>
    %8 = vector.shape_cast %7 : vector<1x32x128xf32> to vector<32x128xf32>
    %cst_8 = arith.constant dense<0.000000e+00> : vector<256x128xf32>
    %9 = tpu.matmul %6, %8, %cst_8 {dimension_numbers = #tpu.dot_dimension_numbers<[1], [0], [0], [1], [0, 0, 1, 1], [], []>} : vector<256x32xf32>, vector<32x128xf32>, vector<256x128xf32> -> vector<256x128xf32>
    %10 = arith.addf %3, %9 : vector<256x128xf32>
    %c0_9 = arith.constant 0 : index
    %c0_10 = arith.constant 0 : index
    %c1 = arith.constant 1 : index
    %c0_11 = arith.constant 0 : index
    %11 = vector.load %arg1[%c0_9, %c0_10, %c1, %c0_11] : memref<1x20x20x32xf32, #tpu.memory_space<vmem>>, vector<1x16x16x32xf32>
    %12 = vector.shape_cast %11 : vector<1x16x16x32xf32> to vector<16x16x32xf32>
    %13 = vector.shape_cast %12 : vector<16x16x32xf32> to vector<256x32xf32>
    %c1_12 = arith.constant 1 : index
    %c0_13 = arith.constant 0 : index
    %c0_14 = arith.constant 0 : index
    %14 = vector.load %arg2[%c1_12, %c0_13, %c0_14] : memref<25x32x128xf32, #tpu.memory_space<vmem>>, vector<1x32x128xf32>
    %15 = vector.shape_cast %14 : vector<1x32x128xf32> to vector<32x128xf32>
    %cst_15 = arith.constant dense<0.000000e+00> : vector<256x128xf32>
    %16 = tpu.matmul %13, %15, %cst_15 {dimension_numbers = #tpu.dot_dimension_numbers<[1], [0], [0], [1], [0, 0, 1, 1], [], []>} : vector<256x32xf32>, vector<32x128xf32>, vector<256x128xf32> -> vector<256x128xf32>
    %17 = arith.addf %10, %16 : vector<256x128xf32>
    %c0_16 = arith.constant 0 : index
    %c0_17 = arith.constant 0 : index
    %c2 = arith.constant 2 : index
    %c0_18 = arith.constant 0 : index
    %18 = vector.load %arg1[%c0_16, %c0_17, %c2, %c0_18] : memref<1x20x20x32xf32, #tpu.memory_space<vmem>>, vector<1x16x16x32xf32>
    %19 = vector.shape_cast %18 : vector<1x16x16x32xf32> to vector<16x16x32xf32>
    %20 = vector.shape_cast %19 : vector<16x16x32xf32> to vector<256x32xf32>
    %c2_19 = arith.constant 2 : index
    %c0_20 = arith.constant 0 : index
    %c0_21 = arith.constant 0 : index
    %21 = vector.load %arg2[%c2_19, %c0_20, %c0_21] : memref<25x32x128xf32, #tpu.memory_space<vmem>>, vector<1x32x128xf32>
    %22 = vector.shape_cast %21 : vector<1x32x128xf32> to vector<32x128xf32>
    %cst_22 = arith.constant dense<0.000000e+00> : vector<256x128xf32>
    %23 = tpu.matmul %20, %22, %cst_22 {dimension_numbers = #tpu.dot_dimension_numbers<[1], [0], [0], [1], [0, 0, 1, 1], [], []>} : vector<256x32xf32>, vector<32x128xf32>, vector<256x128xf32> -> vector<256x128xf32>
    %24 = arith.addf %17, %23 : vector<256x128xf32>
    %c0_23 = arith.constant 0 : index
    %c0_24 = arith.constant 0 : index
    %c3 = arith.constant 3 : index
    %c0_25 = arith.constant 0 : index
    %25 = vector.load %arg1[%c0_23, %c0_24, %c3, %c0_25] : memref<1x20x20x32xf32, #tpu.memory_space<vmem>>, vector<1x16x16x32xf32>
    %26 = vector.shape_cast %25 : vector<1x16x16x32xf32> to vector<16x16x32xf32>
    %27 = vector.shape_cast %26 : vector<16x16x32xf32> to vector<256x32xf32>
    %c3_26 = arith.constant 3 : index
    %c0_27 = arith.constant 0 : index
    %c0_28 = arith.constant 0 : index
    %28 = vector.load %arg2[%c3_26, %c0_27, %c0_28] : memref<25x32x128xf32, #tpu.memory_space<vmem>>, vector<1x32x128xf32>
    %29 = vector.shape_cast %28 : vector<1x32x128xf32> to vector<32x128xf32>
    %cst_29 = arith.constant dense<0.000000e+00> : vector<256x128xf32>
    %30 = tpu.matmul %27, %29, %cst_29 {dimension_numbers = #tpu.dot_dimension_numbers<[1], [0], [0], [1], [0, 0, 1, 1], [], []>} : vector<256x32xf32>, vector<32x128xf32>, vector<256x128xf32> -> vector<256x128xf32>
    %31 = arith.addf %24, %30 : vector<256x128xf32>
    %c0_30 = arith.constant 0 : index
    %c0_31 = arith.constant 0 : index
    %c4 = arith.constant 4 : index
    %c0_32 = arith.constant 0 : index
    %32 = vector.load %arg1[%c0_30, %c0_31, %c4, %c0_32] : memref<1x20x20x32xf32, #tpu.memory_space<vmem>>, vector<1x16x16x32xf32>
    %33 = vector.shape_cast %32 : vector<1x16x16x32xf32> to vector<16x16x32xf32>
    %34 = vector.shape_cast %33 : vector<16x16x32xf32> to vector<256x32xf32>
    %c4_33 = arith.constant 4 : index
    %c0_34 = arith.constant 0 : index
    %c0_35 = arith.constant 0 : index
    %35 = vector.load %arg2[%c4_33, %c0_34, %c0_35] : memref<25x32x128xf32, #tpu.memory_space<vmem>>, vector<1x32x128xf32>
    %36 = vector.shape_cast %35 : vector<1x32x128xf32> to vector<32x128xf32>
    %cst_36 = arith.constant dense<0.000000e+00> : vector<256x128xf32>
    %37 = tpu.matmul %34, %36, %cst_36 {dimension_numbers = #tpu.dot_dimension_numbers<[1], [0], [0], [1], [0, 0, 1, 1], [], []>} : vector<256x32xf32>, vector<32x128xf32>, vector<256x128xf32> -> vector<256x128xf32>
    %38 = arith.addf %31, %37 : vector<256x128xf32>
    %c0_37 = arith.constant 0 : index
    %c1_38 = arith.constant 1 : index
    %c0_39 = arith.constant 0 : index
    %c0_40 = arith.constant 0 : index
    %39 = vector.load %arg1[%c0_37, %c1_38, %c0_39, %c0_40] : memref<1x20x20x32xf32, #tpu.memory_space<vmem>>, vector<1x16x16x32xf32>
    %40 = vector.shape_cast %39 : vector<1x16x16x32xf32> to vector<16x16x32xf32>
    %41 = vector.shape_cast %40 : vector<16x16x32xf32> to vector<256x32xf32>
    %c5 = arith.constant 5 : index
    %c0_41 = arith.constant 0 : index
    %c0_42 = arith.constant 0 : index
    %42 = vector.load %arg2[%c5, %c0_41, %c0_42] : memref<25x32x128xf32, #tpu.memory_space<vmem>>, vector<1x32x128xf32>
    %43 = vector.shape_cast %42 : vector<1x32x128xf32> to vector<32x128xf32>
    %cst_43 = arith.constant dense<0.000000e+00> : vector<256x128xf32>
    %44 = tpu.matmul %41, %43, %cst_43 {dimension_numbers = #tpu.dot_dimension_numbers<[1], [0], [0], [1], [0, 0, 1, 1], [], []>} : vector<256x32xf32>, vector<32x128xf32>, vector<256x128xf32> -> vector<256x128xf32>
    %45 = arith.addf %38, %44 : vector<256x128xf32>
    %c0_44 = arith.constant 0 : index
    %c1_45 = arith.constant 1 : index
    %c1_46 = arith.constant 1 : index
    %c0_47 = arith.constant 0 : index
    %46 = vector.load %arg1[%c0_44, %c1_45, %c1_46, %c0_47] : memref<1x20x20x32xf32, #tpu.memory_space<vmem>>, vector<1x16x16x32xf32>
    %47 = vector.shape_cast %46 : vector<1x16x16x32xf32> to vector<16x16x32xf32>
    %48 = vector.shape_cast %47 : vector<16x16x32xf32> to vector<256x32xf32>
    %c6 = arith.constant 6 : index
    %c0_48 = arith.constant 0 : index
    %c0_49 = arith.constant 0 : index
    %49 = vector.load %arg2[%c6, %c0_48, %c0_49] : memref<25x32x128xf32, #tpu.memory_space<vmem>>, vector<1x32x128xf32>
    %50 = vector.shape_cast %49 : vector<1x32x128xf32> to vector<32x128xf32>
    %cst_50 = arith.constant dense<0.000000e+00> : vector<256x128xf32>
    %51 = tpu.matmul %48, %50, %cst_50 {dimension_numbers = #tpu.dot_dimension_numbers<[1], [0], [0], [1], [0, 0, 1, 1], [], []>} : vector<256x32xf32>, vector<32x128xf32>, vector<256x128xf32> -> vector<256x128xf32>
    %52 = arith.addf %45, %51 : vector<256x128xf32>
    %c0_51 = arith.constant 0 : index
    %c1_52 = arith.constant 1 : index
    %c2_53 = arith.constant 2 : index
    %c0_54 = arith.constant 0 : index
    %53 = vector.load %arg1[%c0_51, %c1_52, %c2_53, %c0_54] : memref<1x20x20x32xf32, #tpu.memory_space<vmem>>, vector<1x16x16x32xf32>
    %54 = vector.shape_cast %53 : vector<1x16x16x32xf32> to vector<16x16x32xf32>
    %55 = vector.shape_cast %54 : vector<16x16x32xf32> to vector<256x32xf32>
    %c7 = arith.constant 7 : index
    %c0_55 = arith.constant 0 : index
    %c0_56 = arith.constant 0 : index
    %56 = vector.load %arg2[%c7, %c0_55, %c0_56] : memref<25x32x128xf32, #tpu.memory_space<vmem>>, vector<1x32x128xf32>
    %57 = vector.shape_cast %56 : vector<1x32x128xf32> to vector<32x128xf32>
    %cst_57 = arith.constant dense<0.000000e+00> : vector<256x128xf32>
    %58 = tpu.matmul %55, %57, %cst_57 {dimension_numbers = #tpu.dot_dimension_numbers<[1], [0], [0], [1], [0, 0, 1, 1], [], []>} : vector<256x32xf32>, vector<32x128xf32>, vector<256x128xf32> -> vector<256x128xf32>
    %59 = arith.addf %52, %58 : vector<256x128xf32>
    %c0_58 = arith.constant 0 : index
    %c1_59 = arith.constant 1 : index
    %c3_60 = arith.constant 3 : index
    %c0_61 = arith.constant 0 : index
    %60 = vector.load %arg1[%c0_58, %c1_59, %c3_60, %c0_61] : memref<1x20x20x32xf32, #tpu.memory_space<vmem>>, vector<1x16x16x32xf32>
    %61 = vector.shape_cast %60 : vector<1x16x16x32xf32> to vector<16x16x32xf32>
    %62 = vector.shape_cast %61 : vector<16x16x32xf32> to vector<256x32xf32>
    %c8 = arith.constant 8 : index
    %c0_62 = arith.constant 0 : index
    %c0_63 = arith.constant 0 : index
    %63 = vector.load %arg2[%c8, %c0_62, %c0_63] : memref<25x32x128xf32, #tpu.memory_space<vmem>>, vector<1x32x128xf32>
    %64 = vector.shape_cast %63 : vector<1x32x128xf32> to vector<32x128xf32>
    %cst_64 = arith.constant dense<0.000000e+00> : vector<256x128xf32>
    %65 = tpu.matmul %62, %64, %cst_64 {dimension_numbers = #tpu.dot_dimension_numbers<[1], [0], [0], [1], [0, 0, 1, 1], [], []>} : vector<256x32xf32>, vector<32x128xf32>, vector<256x128xf32> -> vector<256x128xf32>
    %66 = arith.addf %59, %65 : vector<256x128xf32>
    %c0_65 = arith.constant 0 : index
    %c1_66 = arith.constant 1 : index
    %c4_67 = arith.constant 4 : index
    %c0_68 = arith.constant 0 : index
    %67 = vector.load %arg1[%c0_65, %c1_66, %c4_67, %c0_68] : memref<1x20x20x32xf32, #tpu.memory_space<vmem>>, vector<1x16x16x32xf32>
    %68 = vector.shape_cast %67 : vector<1x16x16x32xf32> to vector<16x16x32xf32>
    %69 = vector.shape_cast %68 : vector<16x16x32xf32> to vector<256x32xf32>
    %c9 = arith.constant 9 : index
    %c0_69 = arith.constant 0 : index
    %c0_70 = arith.constant 0 : index
    %70 = vector.load %arg2[%c9, %c0_69, %c0_70] : memref<25x32x128xf32, #tpu.memory_space<vmem>>, vector<1x32x128xf32>
    %71 = vector.shape_cast %70 : vector<1x32x128xf32> to vector<32x128xf32>
    %cst_71 = arith.constant dense<0.000000e+00> : vector<256x128xf32>
    %72 = tpu.matmul %69, %71, %cst_71 {dimension_numbers = #tpu.dot_dimension_numbers<[1], [0], [0], [1], [0, 0, 1, 1], [], []>} : vector<256x32xf32>, vector<32x128xf32>, vector<256x128xf32> -> vector<256x128xf32>
    %73 = arith.addf %66, %72 : vector<256x128xf32>
    %c0_72 = arith.constant 0 : index
    %c2_73 = arith.constant 2 : index
    %c0_74 = arith.constant 0 : index
    %c0_75 = arith.constant 0 : index
    %74 = vector.load %arg1[%c0_72, %c2_73, %c0_74, %c0_75] : memref<1x20x20x32xf32, #tpu.memory_space<vmem>>, vector<1x16x16x32xf32>
    %75 = vector.shape_cast %74 : vector<1x16x16x32xf32> to vector<16x16x32xf32>
    %76 = vector.shape_cast %75 : vector<16x16x32xf32> to vector<256x32xf32>
    %c10 = arith.constant 10 : index
    %c0_76 = arith.constant 0 : index
    %c0_77 = arith.constant 0 : index
    %77 = vector.load %arg2[%c10, %c0_76, %c0_77] : memref<25x32x128xf32, #tpu.memory_space<vmem>>, vector<1x32x128xf32>
    %78 = vector.shape_cast %77 : vector<1x32x128xf32> to vector<32x128xf32>
    %cst_78 = arith.constant dense<0.000000e+00> : vector<256x128xf32>
    %79 = tpu.matmul %76, %78, %cst_78 {dimension_numbers = #tpu.dot_dimension_numbers<[1], [0], [0], [1], [0, 0, 1, 1], [], []>} : vector<256x32xf32>, vector<32x128xf32>, vector<256x128xf32> -> vector<256x128xf32>
    %80 = arith.addf %73, %79 : vector<256x128xf32>
    %c0_79 = arith.constant 0 : index
    %c2_80 = arith.constant 2 : index
    %c1_81 = arith.constant 1 : index
    %c0_82 = arith.constant 0 : index
    %81 = vector.load %arg1[%c0_79, %c2_80, %c1_81, %c0_82] : memref<1x20x20x32xf32, #tpu.memory_space<vmem>>, vector<1x16x16x32xf32>
    %82 = vector.shape_cast %81 : vector<1x16x16x32xf32> to vector<16x16x32xf32>
    %83 = vector.shape_cast %82 : vector<16x16x32xf32> to vector<256x32xf32>
    %c11 = arith.constant 11 : index
    %c0_83 = arith.constant 0 : index
    %c0_84 = arith.constant 0 : index
    %84 = vector.load %arg2[%c11, %c0_83, %c0_84] : memref<25x32x128xf32, #tpu.memory_space<vmem>>, vector<1x32x128xf32>
    %85 = vector.shape_cast %84 : vector<1x32x128xf32> to vector<32x128xf32>
    %cst_85 = arith.constant dense<0.000000e+00> : vector<256x128xf32>
    %86 = tpu.matmul %83, %85, %cst_85 {dimension_numbers = #tpu.dot_dimension_numbers<[1], [0], [0], [1], [0, 0, 1, 1], [], []>} : vector<256x32xf32>, vector<32x128xf32>, vector<256x128xf32> -> vector<256x128xf32>
    %87 = arith.addf %80, %86 : vector<256x128xf32>
    %c0_86 = arith.constant 0 : index
    %c2_87 = arith.constant 2 : index
    %c2_88 = arith.constant 2 : index
    %c0_89 = arith.constant 0 : index
    %88 = vector.load %arg1[%c0_86, %c2_87, %c2_88, %c0_89] : memref<1x20x20x32xf32, #tpu.memory_space<vmem>>, vector<1x16x16x32xf32>
    %89 = vector.shape_cast %88 : vector<1x16x16x32xf32> to vector<16x16x32xf32>
    %90 = vector.shape_cast %89 : vector<16x16x32xf32> to vector<256x32xf32>
    %c12 = arith.constant 12 : index
    %c0_90 = arith.constant 0 : index
    %c0_91 = arith.constant 0 : index
    %91 = vector.load %arg2[%c12, %c0_90, %c0_91] : memref<25x32x128xf32, #tpu.memory_space<vmem>>, vector<1x32x128xf32>
    %92 = vector.shape_cast %91 : vector<1x32x128xf32> to vector<32x128xf32>
    %cst_92 = arith.constant dense<0.000000e+00> : vector<256x128xf32>
    %93 = tpu.matmul %90, %92, %cst_92 {dimension_numbers = #tpu.dot_dimension_numbers<[1], [0], [0], [1], [0, 0, 1, 1], [], []>} : vector<256x32xf32>, vector<32x128xf32>, vector<256x128xf32> -> vector<256x128xf32>
    %94 = arith.addf %87, %93 : vector<256x128xf32>
    %c0_93 = arith.constant 0 : index
    %c2_94 = arith.constant 2 : index
    %c3_95 = arith.constant 3 : index
    %c0_96 = arith.constant 0 : index
    %95 = vector.load %arg1[%c0_93, %c2_94, %c3_95, %c0_96] : memref<1x20x20x32xf32, #tpu.memory_space<vmem>>, vector<1x16x16x32xf32>
    %96 = vector.shape_cast %95 : vector<1x16x16x32xf32> to vector<16x16x32xf32>
    %97 = vector.shape_cast %96 : vector<16x16x32xf32> to vector<256x32xf32>
    %c13 = arith.constant 13 : index
    %c0_97 = arith.constant 0 : index
    %c0_98 = arith.constant 0 : index
    %98 = vector.load %arg2[%c13, %c0_97, %c0_98] : memref<25x32x128xf32, #tpu.memory_space<vmem>>, vector<1x32x128xf32>
    %99 = vector.shape_cast %98 : vector<1x32x128xf32> to vector<32x128xf32>
    %cst_99 = arith.constant dense<0.000000e+00> : vector<256x128xf32>
    %100 = tpu.matmul %97, %99, %cst_99 {dimension_numbers = #tpu.dot_dimension_numbers<[1], [0], [0], [1], [0, 0, 1, 1], [], []>} : vector<256x32xf32>, vector<32x128xf32>, vector<256x128xf32> -> vector<256x128xf32>
    %101 = arith.addf %94, %100 : vector<256x128xf32>
    %c0_100 = arith.constant 0 : index
    %c2_101 = arith.constant 2 : index
    %c4_102 = arith.constant 4 : index
    %c0_103 = arith.constant 0 : index
    %102 = vector.load %arg1[%c0_100, %c2_101, %c4_102, %c0_103] : memref<1x20x20x32xf32, #tpu.memory_space<vmem>>, vector<1x16x16x32xf32>
    %103 = vector.shape_cast %102 : vector<1x16x16x32xf32> to vector<16x16x32xf32>
    %104 = vector.shape_cast %103 : vector<16x16x32xf32> to vector<256x32xf32>
    %c14 = arith.constant 14 : index
    %c0_104 = arith.constant 0 : index
    %c0_105 = arith.constant 0 : index
    %105 = vector.load %arg2[%c14, %c0_104, %c0_105] : memref<25x32x128xf32, #tpu.memory_space<vmem>>, vector<1x32x128xf32>
    %106 = vector.shape_cast %105 : vector<1x32x128xf32> to vector<32x128xf32>
    %cst_106 = arith.constant dense<0.000000e+00> : vector<256x128xf32>
    %107 = tpu.matmul %104, %106, %cst_106 {dimension_numbers = #tpu.dot_dimension_numbers<[1], [0], [0], [1], [0, 0, 1, 1], [], []>} : vector<256x32xf32>, vector<32x128xf32>, vector<256x128xf32> -> vector<256x128xf32>
    %108 = arith.addf %101, %107 : vector<256x128xf32>
    %c0_107 = arith.constant 0 : index
    %c3_108 = arith.constant 3 : index
    %c0_109 = arith.constant 0 : index
    %c0_110 = arith.constant 0 : index
    %109 = vector.load %arg1[%c0_107, %c3_108, %c0_109, %c0_110] : memref<1x20x20x32xf32, #tpu.memory_space<vmem>>, vector<1x16x16x32xf32>
    %110 = vector.shape_cast %109 : vector<1x16x16x32xf32> to vector<16x16x32xf32>
    %111 = vector.shape_cast %110 : vector<16x16x32xf32> to vector<256x32xf32>
    %c15 = arith.constant 15 : index
    %c0_111 = arith.constant 0 : index
    %c0_112 = arith.constant 0 : index
    %112 = vector.load %arg2[%c15, %c0_111, %c0_112] : memref<25x32x128xf32, #tpu.memory_space<vmem>>, vector<1x32x128xf32>
    %113 = vector.shape_cast %112 : vector<1x32x128xf32> to vector<32x128xf32>
    %cst_113 = arith.constant dense<0.000000e+00> : vector<256x128xf32>
    %114 = tpu.matmul %111, %113, %cst_113 {dimension_numbers = #tpu.dot_dimension_numbers<[1], [0], [0], [1], [0, 0, 1, 1], [], []>} : vector<256x32xf32>, vector<32x128xf32>, vector<256x128xf32> -> vector<256x128xf32>
    %115 = arith.addf %108, %114 : vector<256x128xf32>
    %c0_114 = arith.constant 0 : index
    %c3_115 = arith.constant 3 : index
    %c1_116 = arith.constant 1 : index
    %c0_117 = arith.constant 0 : index
    %116 = vector.load %arg1[%c0_114, %c3_115, %c1_116, %c0_117] : memref<1x20x20x32xf32, #tpu.memory_space<vmem>>, vector<1x16x16x32xf32>
    %117 = vector.shape_cast %116 : vector<1x16x16x32xf32> to vector<16x16x32xf32>
    %118 = vector.shape_cast %117 : vector<16x16x32xf32> to vector<256x32xf32>
    %c16 = arith.constant 16 : index
    %c0_118 = arith.constant 0 : index
    %c0_119 = arith.constant 0 : index
    %119 = vector.load %arg2[%c16, %c0_118, %c0_119] : memref<25x32x128xf32, #tpu.memory_space<vmem>>, vector<1x32x128xf32>
    %120 = vector.shape_cast %119 : vector<1x32x128xf32> to vector<32x128xf32>
    %cst_120 = arith.constant dense<0.000000e+00> : vector<256x128xf32>
    %121 = tpu.matmul %118, %120, %cst_120 {dimension_numbers = #tpu.dot_dimension_numbers<[1], [0], [0], [1], [0, 0, 1, 1], [], []>} : vector<256x32xf32>, vector<32x128xf32>, vector<256x128xf32> -> vector<256x128xf32>
    %122 = arith.addf %115, %121 : vector<256x128xf32>
    %c0_121 = arith.constant 0 : index
    %c3_122 = arith.constant 3 : index
    %c2_123 = arith.constant 2 : index
    %c0_124 = arith.constant 0 : index
    %123 = vector.load %arg1[%c0_121, %c3_122, %c2_123, %c0_124] : memref<1x20x20x32xf32, #tpu.memory_space<vmem>>, vector<1x16x16x32xf32>
    %124 = vector.shape_cast %123 : vector<1x16x16x32xf32> to vector<16x16x32xf32>
    %125 = vector.shape_cast %124 : vector<16x16x32xf32> to vector<256x32xf32>
    %c17 = arith.constant 17 : index
    %c0_125 = arith.constant 0 : index
    %c0_126 = arith.constant 0 : index
    %126 = vector.load %arg2[%c17, %c0_125, %c0_126] : memref<25x32x128xf32, #tpu.memory_space<vmem>>, vector<1x32x128xf32>
    %127 = vector.shape_cast %126 : vector<1x32x128xf32> to vector<32x128xf32>
    %cst_127 = arith.constant dense<0.000000e+00> : vector<256x128xf32>
    %128 = tpu.matmul %125, %127, %cst_127 {dimension_numbers = #tpu.dot_dimension_numbers<[1], [0], [0], [1], [0, 0, 1, 1], [], []>} : vector<256x32xf32>, vector<32x128xf32>, vector<256x128xf32> -> vector<256x128xf32>
    %129 = arith.addf %122, %128 : vector<256x128xf32>
    %c0_128 = arith.constant 0 : index
    %c3_129 = arith.constant 3 : index
    %c3_130 = arith.constant 3 : index
    %c0_131 = arith.constant 0 : index
    %130 = vector.load %arg1[%c0_128, %c3_129, %c3_130, %c0_131] : memref<1x20x20x32xf32, #tpu.memory_space<vmem>>, vector<1x16x16x32xf32>
    %131 = vector.shape_cast %130 : vector<1x16x16x32xf32> to vector<16x16x32xf32>
    %132 = vector.shape_cast %131 : vector<16x16x32xf32> to vector<256x32xf32>
    %c18 = arith.constant 18 : index
    %c0_132 = arith.constant 0 : index
    %c0_133 = arith.constant 0 : index
    %133 = vector.load %arg2[%c18, %c0_132, %c0_133] : memref<25x32x128xf32, #tpu.memory_space<vmem>>, vector<1x32x128xf32>
    %134 = vector.shape_cast %133 : vector<1x32x128xf32> to vector<32x128xf32>
    %cst_134 = arith.constant dense<0.000000e+00> : vector<256x128xf32>
    %135 = tpu.matmul %132, %134, %cst_134 {dimension_numbers = #tpu.dot_dimension_numbers<[1], [0], [0], [1], [0, 0, 1, 1], [], []>} : vector<256x32xf32>, vector<32x128xf32>, vector<256x128xf32> -> vector<256x128xf32>
    %136 = arith.addf %129, %135 : vector<256x128xf32>
    %c0_135 = arith.constant 0 : index
    %c3_136 = arith.constant 3 : index
    %c4_137 = arith.constant 4 : index
    %c0_138 = arith.constant 0 : index
    %137 = vector.load %arg1[%c0_135, %c3_136, %c4_137, %c0_138] : memref<1x20x20x32xf32, #tpu.memory_space<vmem>>, vector<1x16x16x32xf32>
    %138 = vector.shape_cast %137 : vector<1x16x16x32xf32> to vector<16x16x32xf32>
    %139 = vector.shape_cast %138 : vector<16x16x32xf32> to vector<256x32xf32>
    %c19 = arith.constant 19 : index
    %c0_139 = arith.constant 0 : index
    %c0_140 = arith.constant 0 : index
    %140 = vector.load %arg2[%c19, %c0_139, %c0_140] : memref<25x32x128xf32, #tpu.memory_space<vmem>>, vector<1x32x128xf32>
    %141 = vector.shape_cast %140 : vector<1x32x128xf32> to vector<32x128xf32>
    %cst_141 = arith.constant dense<0.000000e+00> : vector<256x128xf32>
    %142 = tpu.matmul %139, %141, %cst_141 {dimension_numbers = #tpu.dot_dimension_numbers<[1], [0], [0], [1], [0, 0, 1, 1], [], []>} : vector<256x32xf32>, vector<32x128xf32>, vector<256x128xf32> -> vector<256x128xf32>
    %143 = arith.addf %136, %142 : vector<256x128xf32>
    %c0_142 = arith.constant 0 : index
    %c4_143 = arith.constant 4 : index
    %c0_144 = arith.constant 0 : index
    %c0_145 = arith.constant 0 : index
    %144 = vector.load %arg1[%c0_142, %c4_143, %c0_144, %c0_145] : memref<1x20x20x32xf32, #tpu.memory_space<vmem>>, vector<1x16x16x32xf32>
    %145 = vector.shape_cast %144 : vector<1x16x16x32xf32> to vector<16x16x32xf32>
    %146 = vector.shape_cast %145 : vector<16x16x32xf32> to vector<256x32xf32>
    %c20 = arith.constant 20 : index
    %c0_146 = arith.constant 0 : index
    %c0_147 = arith.constant 0 : index
    %147 = vector.load %arg2[%c20, %c0_146, %c0_147] : memref<25x32x128xf32, #tpu.memory_space<vmem>>, vector<1x32x128xf32>
    %148 = vector.shape_cast %147 : vector<1x32x128xf32> to vector<32x128xf32>
    %cst_148 = arith.constant dense<0.000000e+00> : vector<256x128xf32>
    %149 = tpu.matmul %146, %148, %cst_148 {dimension_numbers = #tpu.dot_dimension_numbers<[1], [0], [0], [1], [0, 0, 1, 1], [], []>} : vector<256x32xf32>, vector<32x128xf32>, vector<256x128xf32> -> vector<256x128xf32>
    %150 = arith.addf %143, %149 : vector<256x128xf32>
    %c0_149 = arith.constant 0 : index
    %c4_150 = arith.constant 4 : index
    %c1_151 = arith.constant 1 : index
    %c0_152 = arith.constant 0 : index
    %151 = vector.load %arg1[%c0_149, %c4_150, %c1_151, %c0_152] : memref<1x20x20x32xf32, #tpu.memory_space<vmem>>, vector<1x16x16x32xf32>
    %152 = vector.shape_cast %151 : vector<1x16x16x32xf32> to vector<16x16x32xf32>
    %153 = vector.shape_cast %152 : vector<16x16x32xf32> to vector<256x32xf32>
    %c21 = arith.constant 21 : index
    %c0_153 = arith.constant 0 : index
    %c0_154 = arith.constant 0 : index
    %154 = vector.load %arg2[%c21, %c0_153, %c0_154] : memref<25x32x128xf32, #tpu.memory_space<vmem>>, vector<1x32x128xf32>
    %155 = vector.shape_cast %154 : vector<1x32x128xf32> to vector<32x128xf32>
    %cst_155 = arith.constant dense<0.000000e+00> : vector<256x128xf32>
    %156 = tpu.matmul %153, %155, %cst_155 {dimension_numbers = #tpu.dot_dimension_numbers<[1], [0], [0], [1], [0, 0, 1, 1], [], []>} : vector<256x32xf32>, vector<32x128xf32>, vector<256x128xf32> -> vector<256x128xf32>
    %157 = arith.addf %150, %156 : vector<256x128xf32>
    %c0_156 = arith.constant 0 : index
    %c4_157 = arith.constant 4 : index
    %c2_158 = arith.constant 2 : index
    %c0_159 = arith.constant 0 : index
    %158 = vector.load %arg1[%c0_156, %c4_157, %c2_158, %c0_159] : memref<1x20x20x32xf32, #tpu.memory_space<vmem>>, vector<1x16x16x32xf32>
    %159 = vector.shape_cast %158 : vector<1x16x16x32xf32> to vector<16x16x32xf32>
    %160 = vector.shape_cast %159 : vector<16x16x32xf32> to vector<256x32xf32>
    %c22 = arith.constant 22 : index
    %c0_160 = arith.constant 0 : index
    %c0_161 = arith.constant 0 : index
    %161 = vector.load %arg2[%c22, %c0_160, %c0_161] : memref<25x32x128xf32, #tpu.memory_space<vmem>>, vector<1x32x128xf32>
    %162 = vector.shape_cast %161 : vector<1x32x128xf32> to vector<32x128xf32>
    %cst_162 = arith.constant dense<0.000000e+00> : vector<256x128xf32>
    %163 = tpu.matmul %160, %162, %cst_162 {dimension_numbers = #tpu.dot_dimension_numbers<[1], [0], [0], [1], [0, 0, 1, 1], [], []>} : vector<256x32xf32>, vector<32x128xf32>, vector<256x128xf32> -> vector<256x128xf32>
    %164 = arith.addf %157, %163 : vector<256x128xf32>
    %c0_163 = arith.constant 0 : index
    %c4_164 = arith.constant 4 : index
    %c3_165 = arith.constant 3 : index
    %c0_166 = arith.constant 0 : index
    %165 = vector.load %arg1[%c0_163, %c4_164, %c3_165, %c0_166] : memref<1x20x20x32xf32, #tpu.memory_space<vmem>>, vector<1x16x16x32xf32>
    %166 = vector.shape_cast %165 : vector<1x16x16x32xf32> to vector<16x16x32xf32>
    %167 = vector.shape_cast %166 : vector<16x16x32xf32> to vector<256x32xf32>
    %c23 = arith.constant 23 : index
    %c0_167 = arith.constant 0 : index
    %c0_168 = arith.constant 0 : index
    %168 = vector.load %arg2[%c23, %c0_167, %c0_168] : memref<25x32x128xf32, #tpu.memory_space<vmem>>, vector<1x32x128xf32>
    %169 = vector.shape_cast %168 : vector<1x32x128xf32> to vector<32x128xf32>
    %cst_169 = arith.constant dense<0.000000e+00> : vector<256x128xf32>
    %170 = tpu.matmul %167, %169, %cst_169 {dimension_numbers = #tpu.dot_dimension_numbers<[1], [0], [0], [1], [0, 0, 1, 1], [], []>} : vector<256x32xf32>, vector<32x128xf32>, vector<256x128xf32> -> vector<256x128xf32>
    %171 = arith.addf %164, %170 : vector<256x128xf32>
    %c0_170 = arith.constant 0 : index
    %c4_171 = arith.constant 4 : index
    %c4_172 = arith.constant 4 : index
    %c0_173 = arith.constant 0 : index
    %172 = vector.load %arg1[%c0_170, %c4_171, %c4_172, %c0_173] : memref<1x20x20x32xf32, #tpu.memory_space<vmem>>, vector<1x16x16x32xf32>
    %173 = vector.shape_cast %172 : vector<1x16x16x32xf32> to vector<16x16x32xf32>
    %174 = vector.shape_cast %173 : vector<16x16x32xf32> to vector<256x32xf32>
    %c24 = arith.constant 24 : index
    %c0_174 = arith.constant 0 : index
    %c0_175 = arith.constant 0 : index
    %175 = vector.load %arg2[%c24, %c0_174, %c0_175] : memref<25x32x128xf32, #tpu.memory_space<vmem>>, vector<1x32x128xf32>
    %176 = vector.shape_cast %175 : vector<1x32x128xf32> to vector<32x128xf32>
    %cst_176 = arith.constant dense<0.000000e+00> : vector<256x128xf32>
    %177 = tpu.matmul %174, %176, %cst_176 {dimension_numbers = #tpu.dot_dimension_numbers<[1], [0], [0], [1], [0, 0, 1, 1], [], []>} : vector<256x32xf32>, vector<32x128xf32>, vector<256x128xf32> -> vector<256x128xf32>
    %178 = arith.addf %171, %177 : vector<256x128xf32>
    %c0_177 = arith.constant 0 : index
    %c0_178 = arith.constant 0 : index
    %c0_179 = arith.constant 0 : index
    %179 = vector.load %arg4[%c0_177, %c0_178, %c0_179] : memref<1x256x128xf32, #tpu.memory_space<vmem>>, vector<1x256x128xf32>
    %180 = vector.shape_cast %179 : vector<1x256x128xf32> to vector<256x128xf32>
    %181 = vector.shape_cast %178 : vector<256x128xf32> to vector<1x256x128xf32>
    tpu.vector_store %arg4[%c0_177, %c0_178, %c0_179], %181 {strides = array<i32>} : memref<1x256x128xf32, #tpu.memory_space<vmem>>, vector<1x256x128xf32>,
    return
  }
  func.func @transform_0(%arg0: i32) -> (i32, i32, i32, i32) {
    %c0_i32 = arith.constant 0 : i32
    %c0_i32_0 = arith.constant 0 : i32
    %c0_i32_1 = arith.constant 0 : i32
    %c0_i32_2 = arith.constant 0 : i32
    return %arg0, %c0_i32, %c0_i32_0, %c0_i32_1 : i32, i32, i32, i32
  }
  func.func @transform_1(%arg0: i32) -> (i32, i32, i32) {
    %c0_i32 = arith.constant 0 : i32
    %c0_i32_0 = arith.constant 0 : i32
    %c0_i32_1 = arith.constant 0 : i32
    %c0_i32_2 = arith.constant 0 : i32
    return %c0_i32, %c0_i32_0, %c0_i32_1 : i32, i32, i32
  }
  func.func @transform_2(%arg0: i32) -> (i32, i32) {
    %c0_i32 = arith.constant 0 : i32
    %c0_i32_0 = arith.constant 0 : i32
    %c0_i32_1 = arith.constant 0 : i32
    return %c0_i32, %c0_i32_0 : i32, i32
  }
  func.func @transform_3(%arg0: i32) -> (i32, i32, i32) {
    %c0_i32 = arith.constant 0 : i32
    %c0_i32_0 = arith.constant 0 : i32
    %c0_i32_1 = arith.constant 0 : i32
    return %arg0, %c0_i32, %c0_i32_0 : i32, i32, i32
  }
}

</mosaic_0001>

<bundles_post_ra>
// kernel: sisr_forward.2
= control target key start
LH: loop header
LB: loop body
LE: loop exit
PB: predicated region body
PF: predicated region fallthrough
CT: control target
= control target key end

     0   :  { %v1709_v0 = vmov 0.0|0.0   ;;  %vm651_vm0 = vcmask 523264   ;;  %vm1293_vm1 = vcmask 261120   ;;  %s2782_s1 = inlined_call_operand.vmem [shape: f32[256,64], index: 1, kind: input, shape index: {}]   ;;  %s2783_s0 = inlined_call_operand.vmem [shape: f32[512,256], index: 0, kind: input, shape index: {}]   ;;  %s2784_s3 = inlined_call_operand.vmem [shape: f32[64,32], index: 3, kind: input, shape index: {}]   ;;  %s2785_s2 = inlined_call_operand.vmem [shape: f32[1,64], index: 2, kind: input, shape index: {}]   ;;  %s2786_s4 = inlined_call_operand.vmem [shape: f32[1,32], index: 4, kind: input, shape index: {}]   ;;  %s2787_s5 = inlined_call_operand.vmem [shape: f32[512,32], index: 5, kind: output, shape index: {}]  }
   0x1   :  { %1612 = vmatprep.subr.bf16.mxu0 %v1709_v0  ;;  %v148_v1 = vld [vmem:[%s2782_s1] sm:$0xff]  ;;  %v149_v2 = vld [vmem:[%s2782_s1 + $0x8] sm:$0xff]  ;;  %v150_v3 = vld [vmem:[%s2782_s1 + $0x10] sm:$0xff]  ;;  %1676 = vmatprep.subr.bf16.mxu1 %v1709_v0 }
   0x2   :  { %v1613_v4 = vpack.c.bf16 %v149_v2, %v148_v1  ;;  %v151_v5 = vld [vmem:[%s2782_s1 + $0x18] sm:$0xff]  ;;  %v152_v7 = vld [vmem:[%s2782_s1 + $0x20] sm:$0xff]  ;;  %v153_v8 = vld [vmem:[%s2782_s1 + $0x28] sm:$0xff] }
   0x3   :  { %v1616_v6 = vpack.c.bf16 %v151_v5, %v150_v3  ;;  %v1619_v9 = vpack.c.bf16 %v153_v8, %v152_v7  ;;  %v154_v10 = vld [vmem:[%s2782_s1 + $0x30] sm:$0xff]  ;;  %v155_v11 = vld [vmem:[%s2782_s1 + $0x38] sm:$0xff]  ;;  %v21_v12 = vld [vmem:[%s2783_s0 + $0x8] sm:$0xff] }
   0x4   :  { %1614 = vmatpush1.bf16.msra.mxu0 %v1613_v4  ;;  %1692 = vmatpush1.bf16.msra.mxu1 %v1613_v4  ;;  %v1622_v13 = vpack.c.bf16 %v155_v11, %v154_v10  ;;  %v156_v14 = vld [vmem:[%s2782_s1 + $0x40] sm:$0xff]  ;;  %v157_v15 = vld [vmem:[%s2782_s1 + $0x48] sm:$0xff]  ;;  %v158_v17 = vld [vmem:[%s2782_s1 + $0x50] sm:$0xff] }
   0x5   :  { %1615 = vmatprep.subr.bf16.mxu0 %v1709_v0  ;;  %1677 = vmatprep.subr.bf16.mxu1 %v1709_v0  ;;  %v1625_v16 = vpack.c.bf16 %v157_v15, %v156_v14  ;;  %v159_v18 = vld [vmem:[%s2782_s1 + $0x58] sm:$0xff]  ;;  %v160_v20 = vld [vmem:[%s2782_s1 + $0x60] sm:$0xff]  ;;  %v161_v21 = vld [vmem:[%s2782_s1 + $0x68] sm:$0xff] }
   0x6   :  { %251 = vmatprep.mubr.f32.mxu0 %v21_v12  ;;  %v1628_v19 = vpack.c.bf16 %v159_v18, %v158_v17  ;;  %v1631_v22 = vpack.c.bf16 %v161_v21, %v160_v20  ;;  %v162_v23 = vld [vmem:[%s2782_s1 + $0x70] sm:$0xff]  ;;  %v163_v24 = vld [vmem:[%s2782_s1 + $0x78] sm:$0xff]  ;;  %v164_v26 = vld [vmem:[%s2782_s1 + $0x80] sm:$0xff] }
   0x7   :  { %v1634_v25 = vpack.c.bf16 %v163_v24, %v162_v23  ;;  %v165_v27 = vld [vmem:[%s2782_s1 + $0x88] sm:$0xff]  ;;  %v166_v29 = vld [vmem:[%s2782_s1 + $0x90] sm:$0xff]  ;;  %v167_v30 = vld [vmem:[%s2782_s1 + $0x98] sm:$0xff] }
   0x8   :  { %1617 = vmatpush1.bf16.msra.mxu0 %v1616_v6  ;;  %1693 = vmatpush1.bf16.msra.mxu1 %v1616_v6  ;;  %v1637_v28 = vpack.c.bf16 %v165_v27, %v164_v26  ;;  %v1640_v31 = vpack.c.bf16 %v167_v30, %v166_v29  ;;  %v168_v32 = vld [vmem:[%s2782_s1 + $0xa0] sm:$0xff]  ;;  %v169_v33 = vld [vmem:[%s2782_s1 + $0xa8] sm:$0xff]  ;;  %v170_v35 = vld [vmem:[%s2782_s1 + $0xb0] sm:$0xff] }
   0x9   :  { %1618 = vmatprep.subr.bf16.mxu0 %v1709_v0  ;;  %1678 = vmatprep.subr.bf16.mxu1 %v1709_v0  ;;  %v1643_v34 = vpack.c.bf16 %v169_v33, %v168_v32  ;;  %v171_v36 = vld [vmem:[%s2782_s1 + $0xb8] sm:$0xff]  ;;  %v172_v38 = vld [vmem:[%s2782_s1 + $0xc0] sm:$0xff]  ;;  %v173_v39 = vld [vmem:[%s2782_s1 + $0xc8] sm:$0xff] }
   0xa   :  { %v1646_v37 = vpack.c.bf16 %v171_v36, %v170_v35  ;;  %v1649_v40 = vpack.c.bf16 %v173_v39, %v172_v38  ;;  %v174_v41 = vld [vmem:[%s2782_s1 + $0xd0] sm:$0xff]  ;;  %v175_v42 = vld [vmem:[%s2782_s1 + $0xd8] sm:$0xff]  ;;  %v176_v44 = vld [vmem:[%s2782_s1 + $0xe0] sm:$0xff] }
   0xb   :  { %v1652_v43 = vpack.c.bf16 %v175_v42, %v174_v41  ;;  %v177_v45 = vld [vmem:[%s2782_s1 + $0xe8] sm:$0xff]  ;;  %v178_v47 = vld [vmem:[%s2782_s1 + $0xf0] sm:$0xff]  ;;  %v179_v48 = vld [vmem:[%s2782_s1 + $0xf8] sm:$0xff] }
   0xc   :  { %1620 = vmatpush1.bf16.msra.mxu0 %v1619_v9  ;;  %1694 = vmatpush1.bf16.msra.mxu1 %v1619_v9  ;;  %v1655_v46 = vpack.c.bf16 %v177_v45, %v176_v44  ;;  %v1658_v49 = vpack.c.bf16 %v179_v48, %v178_v47  ;;  %v20_v50 = vld [vmem:[%s2783_s0] sm:$0xff]  ;;  %v23_v51 = vld [vmem:[%s2783_s0 + $0x18] sm:$0xff]  ;;  %v22_v52 = vld [vmem:[%s2783_s0 + $0x10] sm:$0xff] }
   0xd   :  { %1621 = vmatprep.subr.bf16.mxu0 %v1709_v0  ;;  %1679 = vmatprep.subr.bf16.mxu1 %v1709_v0  ;;  %v25_v53 = vld [vmem:[%s2783_s0 + $0x28] sm:$0xff]  ;;  %v24_v54 = vld [vmem:[%s2783_s0 + $0x20] sm:$0xff]  ;;  %v27_v55 = vld [vmem:[%s2783_s0 + $0x38] sm:$0xff] }
   0xe   :  { %v26_v56 = vld [vmem:[%s2783_s0 + $0x30] sm:$0xff]  ;;  %v29_v57 = vld [vmem:[%s2783_s0 + $0x48] sm:$0xff]  ;;  %v28_v58 = vld [vmem:[%s2783_s0 + $0x40] sm:$0xff] }
   0xf   :  { %v31_v59 = vld [vmem:[%s2783_s0 + $0x58] sm:$0xff]  ;;  %v30_v60 = vld [vmem:[%s2783_s0 + $0x50] sm:$0xff]  ;;  %v33_v61 = vld [vmem:[%s2783_s0 + $0x68] sm:$0xff] }
  0x10   :  { %1623 = vmatpush1.bf16.msra.mxu0 %v1622_v13  ;;  %1695 = vmatpush1.bf16.msra.mxu1 %v1622_v13  ;;  %v32_v62 = vld [vmem:[%s2783_s0 + $0x60] sm:$0xff]  ;;  %v35_v63 = vld [vmem:[%s2783_s0 + $0x78] sm:$0xff]  ;;  %v34_v1 = vld [vmem:[%s2783_s0 + $0x70] sm:$0xff] }
  0x11   :  { %1624 = vmatprep.subr.bf16.mxu0 %v1709_v0  ;;  %1680 = vmatprep.subr.bf16.mxu1 %v1709_v0  ;;  %v116_v2 = vld [vmem:[%s2783_s0 + $0x300] sm:$0xff]  ;;  %v37_v3 = vld [vmem:[%s2783_s0 + $0x88] sm:$0xff]  ;;  %v119_v4 = vld [vmem:[%s2783_s0 + $0x318] sm:$0xff] }
  0x12   :  { %v36_v5 = vld [vmem:[%s2783_s0 + $0x80] sm:$0xff]  ;;  %v118_v6 = vld [vmem:[%s2783_s0 + $0x310] sm:$0xff]  ;;  %v39_v7 = vld [vmem:[%s2783_s0 + $0x98] sm:$0xff] }
  0x13   :  { %v121_v8 = vld [vmem:[%s2783_s0 + $0x328] sm:$0xff]  ;;  %v38_v9 = vld [vmem:[%s2783_s0 + $0x90] sm:$0xff]  ;;  %v120_v10 = vld [vmem:[%s2783_s0 + $0x320] sm:$0xff] }
  0x14   :  { %1626 = vmatpush1.bf16.msra.mxu0 %v1625_v16  ;;  %1696 = vmatpush1.bf16.msra.mxu1 %v1625_v16  ;;  %v41_v11 = vld [vmem:[%s2783_s0 + $0xa8] sm:$0xff]  ;;  %v123_v12 = vld [vmem:[%s2783_s0 + $0x338] sm:$0xff]  ;;  %v40_v13 = vld [vmem:[%s2783_s0 + $0xa0] sm:$0xff] }
  0x15   :  { %1627 = vmatprep.subr.bf16.mxu0 %v1709_v0  ;;  %1681 = vmatprep.subr.bf16.mxu1 %v1709_v0  ;;  %v122_v14 = vld [vmem:[%s2783_s0 + $0x330] sm:$0xff]  ;;  %v43_v15 = vld [vmem:[%s2783_s0 + $0xb8] sm:$0xff]  ;;  %v125_v16 = vld [vmem:[%s2783_s0 + $0x348] sm:$0xff] }
  0x16   :  { %v42_v17 = vld [vmem:[%s2783_s0 + $0xb0] sm:$0xff]  ;;  %v124_v18 = vld [vmem:[%s2783_s0 + $0x340] sm:$0xff]  ;;  %v127_v20 = vld [vmem:[%s2783_s0 + $0x358] sm:$0xff] }
  0x17   :  { %v44_v21 = vld [vmem:[%s2783_s0 + $0xc0] sm:$0xff]  ;;  %v47_v23 = vld [vmem:[%s2783_s0 + $0xd8] sm:$0xff]  ;;  %v129_v24 = vld [vmem:[%s2783_s0 + $0x368] sm:$0xff] }
  0x18   :  { %1629 = vmatpush1.bf16.msra.mxu0 %v1628_v19  ;;  %1697 = vmatpush1.bf16.msra.mxu1 %v1628_v19  ;;  %v45_v19 = vld [vmem:[%s2783_s0 + $0xc8] sm:$0xff]  ;;  %v128_v26 = vld [vmem:[%s2783_s0 + $0x360] sm:$0xff]  ;;  %v130_v30 = vld [vmem:[%s2783_s0 + $0x370] sm:$0xff] }
  0x19   :  { %1630 = vmatprep.subr.bf16.mxu0 %v1709_v0  ;;  %1682 = vmatprep.subr.bf16.mxu1 %v1709_v0  ;;  %v49_v27 = vld [vmem:[%s2783_s0 + $0xe8] sm:$0xff]  ;;  %v48_v29 = vld [vmem:[%s2783_s0 + $0xe0] sm:$0xff]  ;;  %v50_v33 = vld [vmem:[%s2783_s0 + $0xf0] sm:$0xff] }
  0x1a   :  { %v133_v32 = vld [vmem:[%s2783_s0 + $0x388] sm:$0xff]  ;;  %v135_v36 = vld [vmem:[%s2783_s0 + $0x398] sm:$0xff]  ;;  %v52_v39 = vld [vmem:[%s2783_s0 + $0x100] sm:$0xff] }
  0x1b   :  { %v53_v35 = vld [vmem:[%s2783_s0 + $0x108] sm:$0xff]  ;;  %v636_v41 = vld [vmem:[%s2784_s3] sm:$0xff]  ;;  %v139_v44 = vld [vmem:[%s2783_s0 + $0x3b8] sm:$0xff] }
  0x1c   :  { %1632 = vmatpush1.bf16.msra.mxu0 %v1631_v22  ;;  %1698 = vmatpush1.bf16.msra.mxu1 %v1631_v22  ;;  %v126_v22 = vld [vmem:[%s2783_s0 + $0x350] sm:$0xff]  ;;  %v137_v38 = vld [vmem:[%s2783_s0 + $0x3a8] sm:$0xff]  ;;  %v136_v42 = vld [vmem:[%s2783_s0 + $0x3a0] sm:$0xff] }
  0x1d   :  { %1633 = vmatprep.subr.bf16.mxu0 %v1709_v0  ;;  %1683 = vmatprep.subr.bf16.mxu1 %v1709_v0  ;;  %v639_v47 = vld [vmem:[%s2784_s3 + $0x18] sm:$0xff]  ;;  %v54_v48 = vld [vmem:[%s2783_s0 + $0x110] sm:$0xff] }
  0x20   :  { %1635 = vmatpush1.bf16.msra.mxu0 %v1634_v25  ;;  %1699 = vmatpush1.bf16.msra.mxu1 %v1634_v25  ;;  %v46_v25 = vld [vmem:[%s2783_s0 + $0xd0] sm:$0xff] }
  0x21   :  { %1636 = vmatprep.subr.bf16.mxu0 %v1709_v0  ;;  %1684 = vmatprep.subr.bf16.mxu1 %v1709_v0 }
  0x24   :  { %1638 = vmatpush1.bf16.msra.mxu0 %v1637_v28  ;;  %1700 = vmatpush1.bf16.msra.mxu1 %v1637_v28  ;;  %v131_v28 = vld [vmem:[%s2783_s0 + $0x378] sm:$0xff] }
  0x25   :  { %1639 = vmatprep.subr.bf16.mxu0 %v1709_v0  ;;  %1685 = vmatprep.subr.bf16.mxu1 %v1709_v0 }
  0x28   :  { %1641 = vmatpush1.bf16.msra.mxu0 %v1640_v31  ;;  %1701 = vmatpush1.bf16.msra.mxu1 %v1640_v31  ;;  %v51_v31 = vld [vmem:[%s2783_s0 + $0xf8] sm:$0xff] }
  0x29   :  { %1642 = vmatprep.subr.bf16.mxu0 %v1709_v0  ;;  %1686 = vmatprep.subr.bf16.mxu1 %v1709_v0 }
  0x2c   :  { %1644 = vmatpush1.bf16.msra.mxu0 %v1643_v34  ;;  %1702 = vmatpush1.bf16.msra.mxu1 %v1643_v34  ;;  %v132_v34 = vld [vmem:[%s2783_s0 + $0x380] sm:$0xff] }
  0x2d   :  { %1645 = vmatprep.subr.bf16.mxu0 %v1709_v0  ;;  %1687 = vmatprep.subr.bf16.mxu1 %v1709_v0 }
  0x30   :  { %1647 = vmatpush1.bf16.msra.mxu0 %v1646_v37  ;;  %1703 = vmatpush1.bf16.msra.mxu1 %v1646_v37  ;;  %v134_v37 = vld [vmem:[%s2783_s0 + $0x390] sm:$0xff] }
  0x31   :  { %1648 = vmatprep.subr.bf16.mxu0 %v1709_v0  ;;  %1688 = vmatprep.subr.bf16.mxu1 %v1709_v0 }
  0x34   :  { %1650 = vmatpush1.bf16.msra.mxu0 %v1649_v40  ;;  %1704 = vmatpush1.bf16.msra.mxu1 %v1649_v40  ;;  %v55_v40 = vld [vmem:[%s2783_s0 + $0x118] sm:$0xff] }
  0x35   :  { %1651 = vmatprep.subr.bf16.mxu0 %v1709_v0  ;;  %1689 = vmatprep.subr.bf16.mxu1 %v1709_v0 }
  0x38   :  { %1653 = vmatpush1.bf16.msra.mxu0 %v1652_v43  ;;  %1705 = vmatpush1.bf16.msra.mxu1 %v1652_v43  ;;  %v637_v43 = vld [vmem:[%s2784_s3 + $0x8] sm:$0xff] }
  0x39   :  { %1654 = vmatprep.subr.bf16.mxu0 %v1709_v0  ;;  %1690 = vmatprep.subr.bf16.mxu1 %v1709_v0  ;;  %v1660_v45 = vpack.c.bf16 %v637_v43, %v636_v41  ;;  %v97_v41 = vld [vmem:[%s2783_s0 + $0x268] sm:$0xff]  ;;  %v99_v43 = vld [vmem:[%s2783_s0 + $0x278] sm:$0xff] }
  0x3c   :  { %1656 = vmatpush1.bf16.msra.mxu0 %v1655_v46  ;;  %1706 = vmatpush1.bf16.msra.mxu1 %v1655_v46  ;;  %v638_v46 = vld [vmem:[%s2784_s3 + $0x10] sm:$0xff] }
  0x3d   :  { %1657 = vmatprep.subr.bf16.mxu0 %v1709_v0  ;;  %1691 = vmatprep.subr.bf16.mxu1 %v1709_v0  ;;  %v117_v0 = vld [vmem:[%s2783_s0 + $0x308] sm:$0xff] }
  0x3e   :  { %491 = vmatprep.mubr.f32.mxu1 %v117_v0  ;;  %v640_v0 = vld [vmem:[%s2784_s3 + $0x20] sm:$0xff] }
  0x40   :  { %1659 = vmatpush1.bf16.msra.mxu0 %v1658_v49  ;;  %1707 = vmatpush1.bf16.msra.mxu1 %v1658_v49  ;;  %v1664_v49 = vpack.c.bf16 %v639_v47, %v638_v46  ;;  %v100_v46 = vld [vmem:[%s2783_s0 + $0x280] sm:$0xff]  ;;  %v103_v47 = vld [vmem:[%s2783_s0 + $0x298] sm:$0xff] }
  0x41   :  { %1661 = vmatprep.subr.bf16.mxu1 %v1660_v45 }
  0x43   :  { %252 = vmatmul.mubr.f32.vlgmr.msra.gmra.mrb[0].mxu0 %v20_v50  ;;  %492 = vmatmul.mubr.f32.vlgmr.msra.gmra.mrb[0].mxu1 %v116_v2  ;;  %v57_v50 = vld [vmem:[%s2783_s0 + $0x128] sm:$0xff] }
  0x44   :  { %256 = vmatprep.mubr.f32.mxu0 %v23_v51  ;;  %496 = vmatprep.mubr.f32.mxu1 %v119_v4  ;;  %v138_v51 = vld [vmem:[%s2783_s0 + $0x3b0] sm:$0xff]  ;;  %v65_v2 = vld [vmem:[%s2783_s0 + $0x168] sm:$0xff] }
  0x45   :  { %1663 = vmatpush3.bf16.msra.mxu1 %v1660_v45  ;;  %v101_v45 = vld [vmem:[%s2783_s0 + $0x288] sm:$0xff] }
  0x46   :  { %1665 = vmatprep.subr.bf16.mxu1 %v1664_v49 }
  0x47   :  { %257 = vmatmul.mubr.f32.gmra.mrb[2].mxu0 %v22_v52  ;;  %497 = vmatmul.mubr.f32.gmra.mrb[2].mxu1 %v118_v6  ;;  %v141_v52 = vld [vmem:[%s2783_s0 + $0x3c8] sm:$0xff]  ;;  %v147_v6 = vld [vmem:[%s2783_s0 + $0x3f8] sm:$0xff] }
  0x48   :  { %261 = vmatprep.mubr.f32.mxu0 %v25_v53  ;;  %501 = vmatprep.mubr.f32.mxu1 %v121_v8  ;;  %v56_v53 = vld [vmem:[%s2783_s0 + $0x120] sm:$0xff]  ;;  %v643_v8 = vld [vmem:[%s2784_s3 + $0x38] sm:$0xff] }
  0x49   :  { %1667 = vmatpush3.bf16.msra.mxu1 %v1664_v49  ;;  %v105_v49 = vld [vmem:[%s2783_s0 + $0x2a8] sm:$0xff] }
  0x4b   :  { %262 = vmatmul.mubr.f32.gmra.mrb[4].mxu0 %v24_v54  ;;  %502 = vmatmul.mubr.f32.gmra.mrb[4].mxu1 %v120_v10  ;;  %v59_v54 = vld [vmem:[%s2783_s0 + $0x138] sm:$0xff]  ;;  %v146_v10 = vld [vmem:[%s2783_s0 + $0x3f0] sm:$0xff] }
  0x4c   :  { %266 = vmatprep.mubr.f32.mxu0 %v27_v55  ;;  %506 = vmatprep.mubr.f32.mxu1 %v123_v12  ;;  %v140_v55 = vld [vmem:[%s2783_s0 + $0x3c0] sm:$0xff]  ;;  %v66_v12 = vld [vmem:[%s2783_s0 + $0x170] sm:$0xff] }
  0x4f   :  { %267 = vmatmul.mubr.f32.gmra.mrb[6].mxu0 %v26_v56  ;;  %507 = vmatmul.mubr.f32.gmra.mrb[6].mxu1 %v122_v14  ;;  %v143_v56 = vld [vmem:[%s2783_s0 + $0x3d8] sm:$0xff]  ;;  %v68_v14 = vld [vmem:[%s2783_s0 + $0x180] sm:$0xff] }
  0x50   :  { %271 = vmatprep.mubr.f32.mxu0 %v29_v57  ;;  %511 = vmatprep.mubr.f32.mxu1 %v125_v16  ;;  %v58_v57 = vld [vmem:[%s2783_s0 + $0x130] sm:$0xff] }
  0x51   :  { %v70_v16 = vld [vmem:[%s2783_s0 + $0x190] sm:$0xff] }
  0x53   :  { %272 = vmatmul.mubr.f32.gmra.mrb[8].mxu0 %v28_v58  ;;  %512 = vmatmul.mubr.f32.gmra.mrb[8].mxu1 %v124_v18  ;;  %v61_v58 = vld [vmem:[%s2783_s0 + $0x148] sm:$0xff]  ;;  %v72_v18 = vld [vmem:[%s2783_s0 + $0x1a0] sm:$0xff] }
  0x54   :  { %276 = vmatprep.mubr.f32.mxu0 %v31_v59  ;;  %516 = vmatprep.mubr.f32.mxu1 %v127_v20  ;;  %v142_v59 = vld [vmem:[%s2783_s0 + $0x3d0] sm:$0xff] }
  0x55   :  { %v74_v20 = vld [vmem:[%s2783_s0 + $0x1b0] sm:$0xff] }
  0x57   :  { %277 = vmatmul.mubr.f32.gmra.mrb[10].mxu0 %v30_v60  ;;  %517 = vmatmul.mubr.f32.gmra.mrb[10].mxu1 %v126_v22  ;;  %v145_v60 = vld [vmem:[%s2783_s0 + $0x3e8] sm:$0xff]  ;;  %v76_v22 = vld [vmem:[%s2783_s0 + $0x1c0] sm:$0xff] }
  0x58   :  { %281 = vmatprep.mubr.f32.mxu0 %v33_v61  ;;  %521 = vmatprep.mubr.f32.mxu1 %v129_v24  ;;  %v60_v61 = vld [vmem:[%s2783_s0 + $0x140] sm:$0xff]  ;;  %v78_v24 = vld [vmem:[%s2783_s0 + $0x1d0] sm:$0xff] }
  0x5b   :  { %282 = vmatmul.mubr.f32.gmra.mrb[12].mxu0 %v32_v62  ;;  %522 = vmatmul.mubr.f32.gmra.mrb[12].mxu1 %v128_v26  ;;  %v63_v62 = vld [vmem:[%s2783_s0 + $0x158] sm:$0xff]  ;;  %v80_v26 = vld [vmem:[%s2783_s0 + $0x1e0] sm:$0xff] }
  0x5c   :  { %286 = vmatprep.mubr.f32.mxu0 %v35_v63  ;;  %526 = vmatprep.mubr.f32.mxu1 %v131_v28  ;;  %v62_v63 = vld [vmem:[%s2783_s0 + $0x150] sm:$0xff] }
  0x5d   :  { %v82_v28 = vld [vmem:[%s2783_s0 + $0x1f0] sm:$0xff] }
  0x5f   :  { %287 = vmatmul.mubr.f32.gmra.mrb[14].mxu0 %v34_v1  ;;  %527 = vmatmul.mubr.f32.gmra.mrb[14].mxu1 %v130_v30  ;;  %v641_v1 = vld [vmem:[%s2784_s3 + $0x28] sm:$0xff]  ;;  %v84_v30 = vld [vmem:[%s2783_s0 + $0x200] sm:$0xff] }
  0x60   :  { %291 = vmatprep.mubr.f32.mxu0 %v37_v3  ;;  %531 = vmatprep.mubr.f32.mxu1 %v133_v32  ;;  %v144_v3 = vld [vmem:[%s2783_s0 + $0x3e0] sm:$0xff]  ;;  %v1668_v4 = vpack.c.bf16 %v641_v1, %v640_v0  ;;  %v86_v32 = vld [vmem:[%s2783_s0 + $0x210] sm:$0xff] }
  0x62   :  { %1669 = vmatprep.subr.bf16.mxu1 %v1668_v4 }
  0x63   :  { %292 = vmatmul.mubr.f32.gmra.mrb[16].mxu0 %v36_v5  ;;  %532 = vmatmul.mubr.f32.gmra.mrb[16].mxu1 %v132_v34  ;;  %v64_v5 = vld [vmem:[%s2783_s0 + $0x160] sm:$0xff] }
  0x64   :  { %296 = vmatprep.mubr.f32.mxu0 %v39_v7  ;;  %536 = vmatprep.mubr.f32.mxu1 %v135_v36  ;;  %v642_v7 = vld [vmem:[%s2784_s3 + $0x30] sm:$0xff]  ;;  %v88_v34 = vld [vmem:[%s2783_s0 + $0x220] sm:$0xff] }
  0x65   :  { %1671 = vmatpush3.bf16.msra.mxu1 %v1668_v4  ;;  %v90_v36 = vld [vmem:[%s2783_s0 + $0x230] sm:$0xff] }
  0x67   :  { %297 = vmatmul.mubr.f32.gmra.mrb[18].mxu0 %v38_v9  ;;  %537 = vmatmul.mubr.f32.gmra.mrb[18].mxu1 %v134_v37  ;;  %v67_v9 = vld [vmem:[%s2783_s0 + $0x178] sm:$0xff]  ;;  %v93_v37 = vld [vmem:[%s2783_s0 + $0x248] sm:$0xff] }
  0x68   :  { %301 = vmatprep.mubr.f32.mxu0 %v41_v11  ;;  %541 = vmatprep.mubr.f32.mxu1 %v137_v38  ;;  %v1672_v11 = vpack.c.bf16 %v643_v8, %v642_v7  ;;  %v92_v38 = vld [vmem:[%s2783_s0 + $0x240] sm:$0xff] }
  0x6a   :  { %1673 = vmatprep.subr.bf16.mxu1 %v1672_v11 }
  0x6b   :  { %302 = vmatmul.mubr.f32.gmra.mrb[20].mxu0 %v40_v13  ;;  %542 = vmatmul.mubr.f32.gmra.mrb[20].mxu1 %v136_v42  ;;  %v69_v13 = vld [vmem:[%s2783_s0 + $0x188] sm:$0xff]  ;;  %v96_v42 = vld [vmem:[%s2783_s0 + $0x260] sm:$0xff] }
  0x6c   :  { %306 = vmatprep.mubr.f32.mxu0 %v43_v15  ;;  %546 = vmatprep.mubr.f32.mxu1 %v139_v44  ;;  %v71_v15 = vld [vmem:[%s2783_s0 + $0x198] sm:$0xff]  ;;  %v98_v44 = vld [vmem:[%s2783_s0 + $0x270] sm:$0xff] }
  0x6d   :  { %1675 = vmatpush3.bf16.msra.mxu1 %v1672_v11 }
  0x6f   :  { %307 = vmatmul.mubr.f32.gmra.mrb[22].mxu0 %v42_v17  ;;  %547 = vmatmul.mubr.f32.gmra.mrb[22].mxu1 %v138_v51  ;;  %v73_v17 = vld [vmem:[%s2783_s0 + $0x1a8] sm:$0xff]  ;;  %v107_v51 = vld [vmem:[%s2783_s0 + $0x2b8] sm:$0xff] }
  0x70   :  { %311 = vmatprep.mubr.f32.mxu0 %v45_v19  ;;  %551 = vmatprep.mubr.f32.mxu1 %v141_v52  ;;  %v75_v19 = vld [vmem:[%s2783_s0 + $0x1b8] sm:$0xff]  ;;  %v106_v52 = vld [vmem:[%s2783_s0 + $0x2b0] sm:$0xff] }
  0x73   :  { %312 = vmatmul.mubr.f32.gmra.mrb[24].mxu0 %v44_v21  ;;  %552 = vmatmul.mubr.f32.gmra.mrb[24].mxu1 %v140_v55  ;;  %v77_v21 = vld [vmem:[%s2783_s0 + $0x1c8] sm:$0xff]  ;;  %v111_v55 = vld [vmem:[%s2783_s0 + $0x2d8] sm:$0xff] }
  0x74   :  { %316 = vmatprep.mubr.f32.mxu0 %v47_v23  ;;  %556 = vmatprep.mubr.f32.mxu1 %v143_v56  ;;  %v79_v23 = vld [vmem:[%s2783_s0 + $0x1d8] sm:$0xff]  ;;  %v110_v56 = vld [vmem:[%s2783_s0 + $0x2d0] sm:$0xff] }
  0x77   :  { %317 = vmatmul.mubr.f32.gmra.mrb[26].mxu0 %v46_v25  ;;  %557 = vmatmul.mubr.f32.gmra.mrb[26].mxu1 %v142_v59  ;;  %v81_v25 = vld [vmem:[%s2783_s0 + $0x1e8] sm:$0xff]  ;;  %v115_v59 = vld [vmem:[%s2783_s0 + $0x2f8] sm:$0xff] }
  0x78   :  { %321 = vmatprep.mubr.f32.mxu0 %v49_v27  ;;  %561 = vmatprep.mubr.f32.mxu1 %v145_v60  ;;  %v83_v27 = vld [vmem:[%s2783_s0 + $0x1f8] sm:$0xff]  ;;  %v114_v60 = vld [vmem:[%s2783_s0 + $0x2f0] sm:$0xff] }
  0x7b   :  { %322 = vmatmul.mubr.f32.gmra.mrb[28].mxu0 %v48_v29  ;;  %562 = vmatmul.mubr.f32.gmra.mrb[28].mxu1 %v144_v3  ;;  %v85_v29 = vld [vmem:[%s2783_s0 + $0x208] sm:$0xff] }
  0x7c   :  { %326 = vmatprep.mubr.f32.mxu0 %v51_v31  ;;  %566 = vmatprep.mubr.f32.mxu1 %v147_v6  ;;  %v87_v31 = vld [vmem:[%s2783_s0 + $0x218] sm:$0xff] }
  0x7f   :  { %327 = vmatmul.mubr.f32.gmra.mrb[30].mxu0 %v50_v33  ;;  %567 = vmatmul.mubr.f32.gmra.mrb[30].mxu1 %v146_v10  ;;  %v89_v33 = vld [vmem:[%s2783_s0 + $0x228] sm:$0xff] }
  0x80   :  { %331 = vmatprep.mubr.f32.mxu0 %v53_v35  ;;  %v91_v35 = vld [vmem:[%s2783_s0 + $0x238] sm:$0xff] }
  0x83   :  { %332 = vmatmul.mubr.f32.gmra.mrb[32].mxu0 %v52_v39  ;;  %v95_v39 = vld [vmem:[%s2783_s0 + $0x258] sm:$0xff] }
  0x84   :  { %336 = vmatprep.mubr.f32.mxu0 %v55_v40  ;;  %v94_v40 = vld [vmem:[%s2783_s0 + $0x250] sm:$0xff] }
  0x87   :  { %337 = vmatmul.mubr.f32.gmra.mrb[34].mxu0 %v54_v48  ;;  %v102_v48 = vld [vmem:[%s2783_s0 + $0x290] sm:$0xff] }
  0x88   :  { %341 = vmatprep.mubr.f32.mxu0 %v57_v50  ;;  %v104_v50 = vld [vmem:[%s2783_s0 + $0x2a0] sm:$0xff] }
  0x8b   :  { %342 = vmatmul.mubr.f32.gmra.mrb[36].mxu0 %v56_v53  ;;  %v109_v53 = vld [vmem:[%s2783_s0 + $0x2c8] sm:$0xff] }
  0x8c   :  { %346 = vmatprep.mubr.f32.mxu0 %v59_v54  ;;  %v108_v54 = vld [vmem:[%s2783_s0 + $0x2c0] sm:$0xff] }
  0x8f   :  { %347 = vmatmul.mubr.f32.gmra.mrb[38].mxu0 %v58_v57  ;;  %v113_v57 = vld [vmem:[%s2783_s0 + $0x2e8] sm:$0xff] }
  0x90   :  { %351 = vmatprep.mubr.f32.mxu0 %v61_v58  ;;  %v112_v58 = vld [vmem:[%s2783_s0 + $0x2e0] sm:$0xff] }
  0x93   :  { %352 = vmatmul.mubr.f32.gmra.mrb[40].mxu0 %v60_v61  ;;  %v2279_v61 = vld [vmem:[%s2785_s2] ss:$0 sm:$0xff] }
  0x94   :  { %356 = vmatprep.mubr.f32.mxu0 %v63_v62 }
  0x97   :  { %357 = vmatmul.mubr.f32.gmra.mrb[42].mxu0 %v62_v63 }
  0x98   :  { %361 = vmatprep.mubr.f32.mxu0 %v65_v2 }
  0x9b   :  { %362 = vmatmul.mubr.f32.gmra.mrb[44].mxu0 %v64_v5 }
  0x9c   :  { %366 = vmatprep.mubr.f32.mxu0 %v67_v9 }
  0x9f   :  { %367 = vmatmul.mubr.f32.gmra.mrb[46].mxu0 %v66_v12 }
  0xa0   :  { %371 = vmatprep.mubr.f32.mxu0 %v69_v13 }
  0xa3   :  { %372 = vmatmul.mubr.f32.gmra.mrb[48].mxu0 %v68_v14 }
  0xa4   :  { %376 = vmatprep.mubr.f32.mxu0 %v71_v15 }
  0xa7   :  { %377 = vmatmul.mubr.f32.gmra.mrb[50].mxu0 %v70_v16 }
  0xa8   :  { %381 = vmatprep.mubr.f32.mxu0 %v73_v17 }
  0xab   :  { %382 = vmatmul.mubr.f32.gmra.mrb[52].mxu0 %v72_v18 }
  0xac   :  { %386 = vmatprep.mubr.f32.mxu0 %v75_v19 }
  0xaf   :  { %387 = vmatmul.mubr.f32.gmra.mrb[54].mxu0 %v74_v20 }
  0xb0   :  { %391 = vmatprep.mubr.f32.mxu0 %v77_v21 }
  0xb3   :  { %392 = vmatmul.mubr.f32.gmra.mrb[56].mxu0 %v76_v22 }
  0xb4   :  { %396 = vmatprep.mubr.f32.mxu0 %v79_v23 }
  0xb7   :  { %397 = vmatmul.mubr.f32.gmra.mrb[58].mxu0 %v78_v24 }
  0xb8   :  { %401 = vmatprep.mubr.f32.mxu0 %v81_v25 }
  0xbb   :  { %402 = vmatmul.mubr.f32.gmra.mrb[60].mxu0 %v80_v26 }
  0xbc   :  { %406 = vmatprep.mubr.f32.mxu0 %v83_v27 }
  0xbf   :  { %407 = vmatmul.mubr.f32.gmra.mrb[62].mxu0 %v82_v28 }
  0xc0   :  { %411 = vmatprep.mubr.f32.mxu0 %v85_v29 }
  0xc3   :  { %412 = vmatmul.mubr.f32.gmra.mrb[64].mxu0 %v84_v30 }
  0xc4   :  { %416 = vmatprep.mubr.f32.mxu0 %v87_v31 }
  0xc7   :  { %417 = vmatmul.mubr.f32.gmra.mrb[66].mxu0 %v86_v32 }
  0xc8   :  { %421 = vmatprep.mubr.f32.mxu0 %v89_v33 }
  0xcb   :  { %422 = vmatmul.mubr.f32.gmra.mrb[68].mxu0 %v88_v34 }
  0xcc   :  { %426 = vmatprep.mubr.f32.mxu0 %v91_v35 }
  0xcf   :  { %427 = vmatmul.mubr.f32.gmra.mrb[70].mxu0 %v90_v36 }
  0xd0   :  { %431 = vmatprep.mubr.f32.mxu0 %v93_v37 }
  0xd3   :  { %432 = vmatmul.mubr.f32.gmra.mrb[72].mxu0 %v92_v38 }
  0xd4   :  { %436 = vmatprep.mubr.f32.mxu0 %v95_v39 }
  0xd7   :  { %437 = vmatmul.mubr.f32.gmra.mrb[74].mxu0 %v94_v40 }
  0xd8   :  { %441 = vmatprep.mubr.f32.mxu0 %v97_v41 }
  0xdb   :  { %442 = vmatmul.mubr.f32.gmra.mrb[76].mxu0 %v96_v42 }
  0xdc   :  { %446 = vmatprep.mubr.f32.mxu0 %v99_v43 }
  0xdf   :  { %447 = vmatmul.mubr.f32.gmra.mrb[78].mxu0 %v98_v44 }
  0xe0   :  { %451 = vmatprep.mubr.f32.mxu0 %v101_v45 }
  0xe3   :  { %452 = vmatmul.mubr.f32.gmra.mrb[80].mxu0 %v100_v46 }
  0xe4   :  { %456 = vmatprep.mubr.f32.mxu0 %v103_v47 }
  0xe7   :  { %457 = vmatmul.mubr.f32.gmra.mrb[82].mxu0 %v102_v48 }
  0xe8   :  { %461 = vmatprep.mubr.f32.mxu0 %v105_v49 }
  0xeb   :  { %462 = vmatmul.mubr.f32.gmra.mrb[84].mxu0 %v104_v50 }
  0xec   :  { %466 = vmatprep.mubr.f32.mxu0 %v107_v51 }
  0xef   :  { %467 = vmatmul.mubr.f32.gmra.mrb[86].mxu0 %v106_v52 }
  0xf0   :  { %471 = vmatprep.mubr.f32.mxu0 %v109_v53 }
  0xf3   :  { %472 = vmatmul.mubr.f32.gmra.mrb[88].mxu0 %v108_v54 }
  0xf4   :  { %476 = vmatprep.mubr.f32.mxu0 %v111_v55 }
  0xf7   :  { %477 = vmatmul.mubr.f32.gmra.mrb[90].mxu0 %v110_v56 }
  0xf8   :  { %481 = vmatprep.mubr.f32.mxu0 %v113_v57 }
  0xfb   :  { %482 = vmatmul.mubr.f32.gmra.mrb[92].mxu0 %v112_v58 }
  0xfc   :  { %486 = vmatprep.mubr.f32.mxu0 %v115_v59 }
  0xff   :  { %487 = vmatmul.mubr.f32.gmra.mrb[94].mxu0 %v114_v60 }
 0x116   :  { %v253_v62 = vpop.f32.mrb[0].mxu0  ;;  %v2296_v30 = vpop.f32.mrb[0].mxu1 }
 0x117   :  { %v254_v63 = vadd.f32 %v2279_v61, %v253_v62  ;;  %v255_v0 = vpop.f32.mrb[1].mxu0  ;;  %v495_v32 = vpop.f32.mrb[1].mxu1 }
 0x119   :  { %v572_v1 = vmax.f32 %v254_v63, 0.0 }
 0x11a   :  { %v258_v2 = vpop.f32.mrb[2].mxu0  ;;  %v2300_v36 = vpop.f32.mrb[2].mxu1 }
 0x11b   :  { %v259_v3 = vadd.f32 %v2279_v61, %v258_v2  ;;  %v260_v4 = vpop.f32.mrb[3].mxu0  ;;  %1516 = vmatprep.mubr.msk.f32.mxu1 %vm651_vm0, %v572_v1  ;;  %v500_v38 = vpop.f32.mrb[3].mxu1 }
 0x11d   :  { %v573_v5 = vmax.f32 %v259_v3, 0.0 }
 0x11e   :  { %v263_v6 = vpop.f32.mrb[4].mxu0  ;;  %v2304_v42 = vpop.f32.mrb[4].mxu1 }
 0x11f   :  { %v264_v7 = vadd.f32 %v2279_v61, %v263_v6  ;;  %v265_v8 = vpop.f32.mrb[5].mxu0  ;;  %1517 = vmatmul.mubr.msk.f32.vlgmr.msra.gmra.mrb[32].mxu1 %vm651_vm0, %v573_v5  ;;  %v505_v44 = vpop.f32.mrb[5].mxu1 }
 0x121   :  { %v574_v9 = vmax.f32 %v264_v7, 0.0 }
 0x122   :  { %v268_v10 = vpop.f32.mrb[6].mxu0  ;;  %v2308_v48 = vpop.f32.mrb[6].mxu1 }
 0x123   :  { %v269_v11 = vadd.f32 %v2279_v61, %v268_v10  ;;  %v270_v12 = vpop.f32.mrb[7].mxu0  ;;  %1519 = vmatprep.mubr.msk.f32.mxu1 %vm651_vm0, %v574_v9  ;;  %v510_v50 = vpop.f32.mrb[7].mxu1 }
 0x125   :  { %v575_v13 = vmax.f32 %v269_v11, 0.0 }
 0x126   :  { %v273_v14 = vpop.f32.mrb[8].mxu0  ;;  %v2312_v54 = vpop.f32.mrb[8].mxu1 }
 0x127   :  { %v274_v15 = vadd.f32 %v2279_v61, %v273_v14  ;;  %v275_v16 = vpop.f32.mrb[9].mxu0  ;;  %1520 = vmatmul.mubr.msk.f32.gmra.mrb[34].mxu1 %vm651_vm0, %v575_v13  ;;  %v515_v56 = vpop.f32.mrb[9].mxu1 }
 0x129   :  { %v576_v17 = vmax.f32 %v274_v15, 0.0 }
 0x12a   :  { %v278_v18 = vpop.f32.mrb[10].mxu0  ;;  %v2316_v60 = vpop.f32.mrb[10].mxu1 }
 0x12b   :  { %v279_v19 = vadd.f32 %v2279_v61, %v278_v18  ;;  %v280_v20 = vpop.f32.mrb[11].mxu0  ;;  %1522 = vmatprep.mubr.msk.f32.mxu1 %vm651_vm0, %v576_v17  ;;  %v520_v63 = vpop.f32.mrb[11].mxu1 }
 0x12d   :  { %v577_v21 = vmax.f32 %v279_v19, 0.0 }
 0x12e   :  { %v283_v22 = vpop.f32.mrb[12].mxu0  ;;  %v2320_v3 = vpop.f32.mrb[12].mxu1 }
 0x12f   :  { %v284_v23 = vadd.f32 %v2279_v61, %v283_v22  ;;  %v285_v24 = vpop.f32.mrb[13].mxu0  ;;  %1523 = vmatmul.mubr.msk.f32.gmra.mrb[36].mxu1 %vm651_vm0, %v577_v21  ;;  %v525_v5 = vpop.f32.mrb[13].mxu1 }
 0x131   :  { %v578_v25 = vmax.f32 %v284_v23, 0.0 }
 0x132   :  { %v288_v26 = vpop.f32.mrb[14].mxu0  ;;  %v2324_v9 = vpop.f32.mrb[14].mxu1 }
 0x133   :  { %v289_v27 = vadd.f32 %v2279_v61, %v288_v26  ;;  %v290_v28 = vpop.f32.mrb[15].mxu0  ;;  %1525 = vmatprep.mubr.msk.f32.mxu1 %vm651_vm0, %v578_v25  ;;  %v530_v11 = vpop.f32.mrb[15].mxu1 }
 0x135   :  { %v579_v29 = vmax.f32 %v289_v27, 0.0 }
 0x136   :  { %v293_v31 = vpop.f32.mrb[16].mxu0  ;;  %v2328_v15 = vpop.f32.mrb[16].mxu1 }
 0x137   :  { %v294_v33 = vadd.f32 %v2279_v61, %v293_v31  ;;  %v295_v34 = vpop.f32.mrb[17].mxu0  ;;  %1526 = vmatmul.mubr.msk.f32.gmra.mrb[38].mxu1 %vm651_vm0, %v579_v29  ;;  %v535_v17 = vpop.f32.mrb[17].mxu1 }
 0x139   :  { %v580_v35 = vmax.f32 %v294_v33, 0.0 }
 0x13a   :  { %v298_v37 = vpop.f32.mrb[18].mxu0  ;;  %v2332_v20 = vpop.f32.mrb[18].mxu1 }
 0x13b   :  { %v299_v39 = vadd.f32 %v2279_v61, %v298_v37  ;;  %v300_v40 = vpop.f32.mrb[19].mxu0  ;;  %1528 = vmatprep.mubr.msk.f32.mxu1 %vm651_vm0, %v580_v35  ;;  %v540_v22 = vpop.f32.mrb[19].mxu1 }
 0x13d   :  { %v581_v41 = vmax.f32 %v299_v39, 0.0 }
 0x13e   :  { %v303_v43 = vpop.f32.mrb[20].mxu0  ;;  %v2336_v26 = vpop.f32.mrb[20].mxu1 }
 0x13f   :  { %v304_v45 = vadd.f32 %v2279_v61, %v303_v43  ;;  %v305_v46 = vpop.f32.mrb[21].mxu0  ;;  %1529 = vmatmul.mubr.msk.f32.gmra.mrb[40].mxu1 %vm651_vm0, %v581_v41  ;;  %v545_v28 = vpop.f32.mrb[21].mxu1 }
 0x141   :  { %v582_v47 = vmax.f32 %v304_v45, 0.0 }
 0x142   :  { %v308_v49 = vpop.f32.mrb[22].mxu0  ;;  %v2340_v33 = vpop.f32.mrb[22].mxu1 }
 0x143   :  { %v309_v51 = vadd.f32 %v2279_v61, %v308_v49  ;;  %v310_v52 = vpop.f32.mrb[23].mxu0  ;;  %1531 = vmatprep.mubr.msk.f32.mxu1 %vm651_vm0, %v582_v47  ;;  %v550_v35 = vpop.f32.mrb[23].mxu1 }
 0x145   :  { %v583_v53 = vmax.f32 %v309_v51, 0.0 }
 0x146   :  { %v313_v55 = vpop.f32.mrb[24].mxu0  ;;  %v2344_v40 = vpop.f32.mrb[24].mxu1 }
 0x147   :  { %v314_v57 = vadd.f32 %v2279_v61, %v313_v55  ;;  %v315_v58 = vpop.f32.mrb[25].mxu0  ;;  %1532 = vmatmul.mubr.msk.f32.gmra.mrb[42].mxu1 %vm651_vm0, %v583_v53  ;;  %v555_v43 = vpop.f32.mrb[25].mxu1 }
 0x149   :  { %v584_v59 = vmax.f32 %v314_v57, 0.0 }
 0x14a   :  { %v318_v62 = vpop.f32.mrb[26].mxu0  ;;  %v2348_v47 = vpop.f32.mrb[26].mxu1 }
 0x14b   :  { %v319_v0 = vadd.f32 %v2279_v61, %v318_v62  ;;  %v320_v1 = vpop.f32.mrb[27].mxu0  ;;  %1534 = vmatprep.mubr.msk.f32.mxu1 %vm651_vm0, %v584_v59  ;;  %v560_v50 = vpop.f32.mrb[27].mxu1 }
 0x14d   :  { %v585_v2 = vmax.f32 %v319_v0, 0.0 }
 0x14e   :  { %v323_v4 = vpop.f32.mrb[28].mxu0  ;;  %v2352_v55 = vpop.f32.mrb[28].mxu1 }
 0x14f   :  { %v324_v6 = vadd.f32 %v2279_v61, %v323_v4  ;;  %v325_v7 = vpop.f32.mrb[29].mxu0  ;;  %1535 = vmatmul.mubr.msk.f32.gmra.mrb[44].mxu1 %vm651_vm0, %v585_v2  ;;  %v565_v57 = vpop.f32.mrb[29].mxu1 }
 0x151   :  { %v586_v8 = vmax.f32 %v324_v6, 0.0 }
 0x152   :  { %v328_v10 = vpop.f32.mrb[30].mxu0  ;;  %v2356_v63 = vpop.f32.mrb[30].mxu1 }
 0x153   :  { %v329_v12 = vadd.f32 %v2279_v61, %v328_v10  ;;  %v330_v13 = vpop.f32.mrb[31].mxu0  ;;  %1537 = vmatprep.mubr.msk.f32.mxu1 %vm651_vm0, %v586_v8  ;;  %v570_v0 = vpop.f32.mrb[31].mxu1 }
 0x155   :  { %v587_v14 = vmax.f32 %v329_v12, 0.0 }
 0x156   :  { %v333_v16 = vpop.f32.mrb[32].mxu0 }
 0x157   :  { %v334_v18 = vadd.f32 %v2279_v61, %v333_v16  ;;  %v335_v19 = vpop.f32.mrb[33].mxu0  ;;  %1538 = vmatmul.mubr.msk.f32.gmra.mrb[46].mxu1 %vm651_vm0, %v587_v14 }
 0x159   :  { %v588_v21 = vmax.f32 %v334_v18, 0.0 }
 0x15a   :  { %v338_v23 = vpop.f32.mrb[34].mxu0 }
 0x15b   :  { %v339_v24 = vadd.f32 %v2279_v61, %v338_v23  ;;  %v340_v25 = vpop.f32.mrb[35].mxu0  ;;  %1540 = vmatprep.mubr.msk.f32.mxu1 %vm651_vm0, %v588_v21 }
 0x15d   :  { %v589_v27 = vmax.f32 %v339_v24, 0.0 }
 0x15e   :  { %v343_v29 = vpop.f32.mrb[36].mxu0 }
 0x15f   :  { %v344_v31 = vadd.f32 %v2279_v61, %v343_v29  ;;  %v345_v32 = vpop.f32.mrb[37].mxu0  ;;  %1541 = vmatmul.mubr.msk.f32.gmra.mrb[48].mxu1 %vm651_vm0, %v589_v27 }
 0x161   :  { %v590_v34 = vmax.f32 %v344_v31, 0.0 }
 0x162   :  { %v348_v37 = vpop.f32.mrb[38].mxu0 }
 0x163   :  { %v349_v38 = vadd.f32 %v2279_v61, %v348_v37  ;;  %v350_v39 = vpop.f32.mrb[39].mxu0  ;;  %1543 = vmatprep.mubr.msk.f32.mxu1 %vm651_vm0, %v590_v34 }
 0x165   :  { %v591_v41 = vmax.f32 %v349_v38, 0.0 }
 0x166   :  { %v353_v44 = vpop.f32.mrb[40].mxu0 }
 0x167   :  { %v354_v45 = vadd.f32 %v2279_v61, %v353_v44  ;;  %v355_v46 = vpop.f32.mrb[41].mxu0  ;;  %1544 = vmatmul.mubr.msk.f32.gmra.mrb[50].mxu1 %vm651_vm0, %v591_v41 }
 0x169   :  { %v592_v49 = vmax.f32 %v354_v45, 0.0 }
 0x16a   :  { %v358_v51 = vpop.f32.mrb[42].mxu0 }
 0x16b   :  { %v359_v52 = vadd.f32 %v2279_v61, %v358_v51  ;;  %v360_v53 = vpop.f32.mrb[43].mxu0  ;;  %1546 = vmatprep.mubr.msk.f32.mxu1 %vm651_vm0, %v592_v49 }
 0x16d   :  { %v593_v56 = vmax.f32 %v359_v52, 0.0 }
 0x16e   :  { %v363_v58 = vpop.f32.mrb[44].mxu0 }
 0x16f   :  { %v364_v59 = vadd.f32 %v2279_v61, %v363_v58  ;;  %v365_v62 = vpop.f32.mrb[45].mxu0  ;;  %1547 = vmatmul.mubr.msk.f32.gmra.mrb[52].mxu1 %vm651_vm0, %v593_v56 }
 0x171   :  { %v594_v1 = vmax.f32 %v364_v59, 0.0 }
 0x172   :  { %v368_v2 = vpop.f32.mrb[46].mxu0 }
 0x173   :  { %v369_v4 = vadd.f32 %v2279_v61, %v368_v2  ;;  %v370_v5 = vpop.f32.mrb[47].mxu0  ;;  %1549 = vmatprep.mubr.msk.f32.mxu1 %vm651_vm0, %v594_v1 }
 0x175   :  { %v595_v6 = vmax.f32 %v369_v4, 0.0 }
 0x176   :  { %v373_v7 = vpop.f32.mrb[48].mxu0 }
 0x177   :  { %v374_v8 = vadd.f32 %v2279_v61, %v373_v7  ;;  %v375_v10 = vpop.f32.mrb[49].mxu0  ;;  %1550 = vmatmul.mubr.msk.f32.gmra.mrb[54].mxu1 %vm651_vm0, %v595_v6 }
 0x179   :  { %v596_v11 = vmax.f32 %v374_v8, 0.0 }
 0x17a   :  { %v378_v12 = vpop.f32.mrb[50].mxu0 }
 0x17b   :  { %v379_v13 = vadd.f32 %v2279_v61, %v378_v12  ;;  %v380_v14 = vpop.f32.mrb[51].mxu0  ;;  %1552 = vmatprep.mubr.msk.f32.mxu1 %vm651_vm0, %v596_v11 }
 0x17d   :  { %v597_v16 = vmax.f32 %v379_v13, 0.0 }
 0x17e   :  { %v383_v17 = vpop.f32.mrb[52].mxu0 }
 0x17f   :  { %v384_v18 = vadd.f32 %v2279_v61, %v383_v17  ;;  %v385_v19 = vpop.f32.mrb[53].mxu0  ;;  %1553 = vmatmul.mubr.msk.f32.gmra.mrb[56].mxu1 %vm651_vm0, %v597_v16 }
 0x181   :  { %v598_v21 = vmax.f32 %v384_v18, 0.0 }
 0x182   :  { %v388_v22 = vpop.f32.mrb[54].mxu0 }
 0x183   :  { %v389_v23 = vadd.f32 %v2279_v61, %v388_v22  ;;  %v390_v24 = vpop.f32.mrb[55].mxu0  ;;  %1555 = vmatprep.mubr.msk.f32.mxu1 %vm651_vm0, %v598_v21 }
 0x185   :  { %v599_v25 = vmax.f32 %v389_v23, 0.0 }
 0x186   :  { %v393_v27 = vpop.f32.mrb[56].mxu0 }
 0x187   :  { %v394_v28 = vadd.f32 %v2279_v61, %v393_v27  ;;  %v395_v29 = vpop.f32.mrb[57].mxu0  ;;  %1556 = vmatmul.mubr.msk.f32.gmra.mrb[58].mxu1 %vm651_vm0, %v599_v25 }
 0x189   :  { %v600_v31 = vmax.f32 %v394_v28, 0.0 }
 0x18a   :  { %v398_v32 = vpop.f32.mrb[58].mxu0 }
 0x18b   :  { %v399_v34 = vadd.f32 %v2279_v61, %v398_v32  ;;  %v400_v35 = vpop.f32.mrb[59].mxu0  ;;  %1558 = vmatprep.mubr.msk.f32.mxu1 %vm651_vm0, %v600_v31 }
 0x18d   :  { %v601_v37 = vmax.f32 %v399_v34, 0.0 }
 0x18e   :  { %v403_v38 = vpop.f32.mrb[60].mxu0 }
 0x18f   :  { %v404_v39 = vadd.f32 %v2279_v61, %v403_v38  ;;  %v405_v41 = vpop.f32.mrb[61].mxu0  ;;  %1559 = vmatmul.mubr.msk.f32.gmra.mrb[60].mxu1 %vm651_vm0, %v601_v37 }
 0x191   :  { %v602_v43 = vmax.f32 %v404_v39, 0.0 }
 0x192   :  { %v408_v44 = vpop.f32.mrb[62].mxu0 }
 0x193   :  { %v409_v45 = vadd.f32 %v2279_v61, %v408_v44  ;;  %v410_v46 = vpop.f32.mrb[63].mxu0  ;;  %1561 = vmatprep.mubr.msk.f32.mxu1 %vm651_vm0, %v602_v43 }
 0x195   :  { %v603_v49 = vmax.f32 %v409_v45, 0.0 }
 0x196   :  { %v413_v50 = vpop.f32.mrb[64].mxu0 }
 0x197   :  { %v414_v51 = vadd.f32 %v2279_v61, %v413_v50  ;;  %v415_v52 = vpop.f32.mrb[65].mxu0  ;;  %1562 = vmatmul.mubr.msk.f32.gmra.mrb[62].mxu1 %vm651_vm0, %v603_v49 }
 0x199   :  { %v604_v53 = vmax.f32 %v414_v51, 0.0 }
 0x19a   :  { %v418_v56 = vpop.f32.mrb[66].mxu0 }
 0x19b   :  { %v419_v57 = vadd.f32 %v2279_v61, %v418_v56  ;;  %v420_v58 = vpop.f32.mrb[67].mxu0  ;;  %1564 = vmatprep.mubr.msk.f32.mxu1 %vm651_vm0, %v604_v53 }
 0x19d   :  { %v605_v59 = vmax.f32 %v419_v57, 0.0 }
 0x19e   :  { %v423_v62 = vpop.f32.mrb[68].mxu0 }
 0x19f   :  { %v424_v0 = vadd.f32 %v2279_v61, %v423_v62  ;;  %v425_v1 = vpop.f32.mrb[69].mxu0  ;;  %1565 = vmatmul.mubr.msk.f32.gmra.mrb[64].mxu1 %vm651_vm0, %v605_v59 }
 0x1a1   :  { %v606_v2 = vmax.f32 %v424_v0, 0.0 }
 0x1a2   :  { %v428_v4 = vpop.f32.mrb[70].mxu0 }
 0x1a3   :  { %v429_v5 = vadd.f32 %v2279_v61, %v428_v4  ;;  %v430_v6 = vpop.f32.mrb[71].mxu0  ;;  %1567 = vmatprep.mubr.msk.f32.mxu1 %vm651_vm0, %v606_v2 }
 0x1a5   :  { %v607_v7 = vmax.f32 %v429_v5, 0.0  ;;  %v494_v5 = vadd.f32 %v2279_v61, %v2296_v30  ;;  %v509_v30 = vadd.f32 %v2279_v61, %v2308_v48 }
 0x1a6   :  { %v433_v8 = vpop.f32.mrb[72].mxu0 }
 0x1a7   :  { %v434_v10 = vadd.f32 %v2279_v61, %v433_v8  ;;  %v435_v11 = vpop.f32.mrb[73].mxu0  ;;  %1568 = vmatmul.mubr.msk.f32.gmra.mrb[66].mxu1 %vm651_vm0, %v607_v7 }
 0x1a9   :  { %v608_v12 = vmax.f32 %v434_v10, 0.0  ;;  %v499_v10 = vadd.f32 %v2279_v61, %v2300_v36  ;;  %v623_v36 = vmax.f32 %v509_v30, 0.0 }
 0x1aa   :  { %v438_v13 = vpop.f32.mrb[74].mxu0 }
 0x1ab   :  { %v439_v14 = vadd.f32 %v2279_v61, %v438_v13  ;;  %v440_v16 = vpop.f32.mrb[75].mxu0  ;;  %1570 = vmatprep.mubr.msk.f32.mxu1 %vm651_vm0, %v608_v12  ;;  %v620_v12 = vmax.f32 %v494_v5, 0.0  ;;  %v504_v13 = vadd.f32 %v2279_v61, %v2304_v42  ;;  %v519_v42 = vadd.f32 %v2279_v61, %v2316_v60 }
 0x1ad   :  { %v609_v17 = vmax.f32 %v439_v14, 0.0  ;;  %v621_v14 = vmax.f32 %v499_v10, 0.0  ;;  %v622_v16 = vmax.f32 %v504_v13, 0.0  ;;  %v625_v48 = vmax.f32 %v519_v42, 0.0 }
 0x1ae   :  { %v443_v18 = vpop.f32.mrb[76].mxu0 }
 0x1af   :  { %v444_v19 = vadd.f32 %v2279_v61, %v443_v18  ;;  %v445_v21 = vpop.f32.mrb[77].mxu0  ;;  %1571 = vmatmul.mubr.msk.f32.gmra.mrb[68].mxu1 %vm651_vm0, %v609_v17  ;;  %v514_v17 = vadd.f32 %v2279_v61, %v2312_v54  ;;  %v529_v54 = vadd.f32 %v2279_v61, %v2324_v9 }
 0x1b1   :  { %v610_v22 = vmax.f32 %v444_v19, 0.0  ;;  %v624_v18 = vmax.f32 %v514_v17, 0.0  ;;  %v524_v19 = vadd.f32 %v2279_v61, %v2320_v3  ;;  %v627_v60 = vmax.f32 %v529_v54, 0.0 }
 0x1b2   :  { %v448_v23 = vpop.f32.mrb[78].mxu0  ;;  %v539_v3 = vadd.f32 %v2279_v61, %v2332_v20  ;;  %v564_v20 = vadd.f32 %v2279_v61, %v2352_v55 }
 0x1b3   :  { %v449_v24 = vadd.f32 %v2279_v61, %v448_v23  ;;  %v450_v25 = vpop.f32.mrb[79].mxu0  ;;  %1573 = vmatprep.mubr.msk.f32.mxu1 %vm651_vm0, %v610_v22  ;;  %v626_v21 = vmax.f32 %v524_v19, 0.0  ;;  %v534_v22 = vadd.f32 %v2279_v61, %v2328_v15  ;;  %v549_v15 = vadd.f32 %v2279_v61, %v2340_v33 }
 0x1b4   :  { %v629_v9 = vmax.f32 %v539_v3, 0.0  ;;  %v569_v33 = vadd.f32 %v2279_v61, %v2356_v63 }
 0x1b5   :  { %v611_v27 = vmax.f32 %v449_v24, 0.0  ;;  %v628_v23 = vmax.f32 %v534_v22, 0.0  ;;  %v544_v24 = vadd.f32 %v2279_v61, %v2336_v26  ;;  %v631_v26 = vmax.f32 %v549_v15, 0.0 }
 0x1b6   :  { %v453_v28 = vpop.f32.mrb[80].mxu0 }
 0x1b7   :  { %v454_v29 = vadd.f32 %v2279_v61, %v453_v28  ;;  %v455_v31 = vpop.f32.mrb[81].mxu0  ;;  %1574 = vmatmul.mubr.msk.f32.gmra.mrb[70].mxu1 %vm651_vm0, %v611_v27  ;;  %v630_v25 = vmax.f32 %v544_v24, 0.0  ;;  %v554_v27 = vadd.f32 %v2279_v61, %v2344_v40  ;;  %v559_v28 = vadd.f32 %v2279_v61, %v2348_v47  ;;  %v2457_v40 = vld [vmem:[%s2786_s4] ss:$0 sm:$0xff] }
 0x1b8   :  { %v634_v31 = vmax.f32 %v564_v20, 0.0 }
 0x1b9   :  { %v612_v32 = vmax.f32 %v454_v29, 0.0  ;;  %v632_v29 = vmax.f32 %v554_v27, 0.0 }
 0x1ba   :  { %v458_v34 = vpop.f32.mrb[82].mxu0 }
 0x1bb   :  { %v459_v35 = vadd.f32 %v2279_v61, %v458_v34  ;;  %v460_v37 = vpop.f32.mrb[83].mxu0  ;;  %1576 = vmatprep.mubr.msk.f32.mxu1 %vm651_vm0, %v612_v32  ;;  %v633_v32 = vmax.f32 %v559_v28, 0.0  ;;  %v635_v34 = vmax.f32 %v569_v33, 0.0 }
 0x1bd   :  { %v613_v38 = vmax.f32 %v459_v35, 0.0 }
 0x1be   :  { %v463_v39 = vpop.f32.mrb[84].mxu0 }
 0x1bf   :  { %v464_v41 = vadd.f32 %v2279_v61, %v463_v39  ;;  %v465_v43 = vpop.f32.mrb[85].mxu0  ;;  %1577 = vmatmul.mubr.msk.f32.gmra.mrb[72].mxu1 %vm651_vm0, %v613_v38 }
 0x1c1   :  { %v614_v44 = vmax.f32 %v464_v41, 0.0 }
 0x1c2   :  { %v468_v45 = vpop.f32.mrb[86].mxu0 }
 0x1c3   :  { %v469_v46 = vadd.f32 %v2279_v61, %v468_v45  ;;  %v470_v49 = vpop.f32.mrb[87].mxu0  ;;  %1579 = vmatprep.mubr.msk.f32.mxu1 %vm651_vm0, %v614_v44 }
 0x1c5   :  { %v615_v50 = vmax.f32 %v469_v46, 0.0 }
 0x1c6   :  { %v473_v51 = vpop.f32.mrb[88].mxu0 }
 0x1c7   :  { %v474_v52 = vadd.f32 %v2279_v61, %v473_v51  ;;  %v475_v53 = vpop.f32.mrb[89].mxu0  ;;  %1580 = vmatmul.mubr.msk.f32.gmra.mrb[74].mxu1 %vm651_vm0, %v615_v50 }
 0x1c9   :  { %v616_v56 = vmax.f32 %v474_v52, 0.0 }
 0x1ca   :  { %v478_v57 = vpop.f32.mrb[90].mxu0 }
 0x1cb   :  { %v479_v58 = vadd.f32 %v2279_v61, %v478_v57  ;;  %v480_v59 = vpop.f32.mrb[91].mxu0  ;;  %1582 = vmatprep.mubr.msk.f32.mxu1 %vm651_vm0, %v616_v56 }
 0x1cd   :  { %v617_v62 = vmax.f32 %v479_v58, 0.0 }
 0x1ce   :  { %v483_v0 = vpop.f32.mrb[92].mxu0 }
 0x1cf   :  { %v484_v1 = vadd.f32 %v2279_v61, %v483_v0  ;;  %v485_v2 = vpop.f32.mrb[93].mxu0  ;;  %1583 = vmatmul.mubr.msk.f32.gmra.mrb[76].mxu1 %vm651_vm0, %v617_v62 }
 0x1d1   :  { %v618_v4 = vmax.f32 %v484_v1, 0.0 }
 0x1d2   :  { %v488_v6 = vpop.f32.mrb[94].mxu0 }
 0x1d3   :  { %v489_v7 = vadd.f32 %v2279_v61, %v488_v6  ;;  %v490_v8 = vpop.f32.mrb[95].mxu0  ;;  %1585 = vmatprep.mubr.msk.f32.mxu1 %vm651_vm0, %v618_v4 }
 0x1d5   :  { %v619_v11 = vmax.f32 %v489_v7, 0.0 }
 0x1d7   :  { %1586 = vmatmul.mubr.msk.f32.gmra.mrb[78].mxu1 %vm651_vm0, %v619_v11 }
 0x1d8   :  { %1588 = vmatprep.mubr.msk.f32.mxu1 %vm651_vm0, %v620_v12 }
 0x1db   :  { %1589 = vmatmul.mubr.msk.f32.gmra.mrb[80].mxu1 %vm651_vm0, %v621_v14 }
 0x1dc   :  { %1591 = vmatprep.mubr.msk.f32.mxu1 %vm651_vm0, %v622_v16 }
 0x1df   :  { %1592 = vmatmul.mubr.msk.f32.gmra.mrb[82].mxu1 %vm651_vm0, %v623_v36 }
 0x1e0   :  { %1594 = vmatprep.mubr.msk.f32.mxu1 %vm651_vm0, %v624_v18 }
 0x1e3   :  { %1595 = vmatmul.mubr.msk.f32.gmra.mrb[84].mxu1 %vm651_vm0, %v625_v48 }
 0x1e4   :  { %1597 = vmatprep.mubr.msk.f32.mxu1 %vm651_vm0, %v626_v21 }
 0x1e7   :  { %1598 = vmatmul.mubr.msk.f32.gmra.mrb[86].mxu1 %vm651_vm0, %v627_v60 }
 0x1e8   :  { %1600 = vmatprep.mubr.msk.f32.mxu1 %vm651_vm0, %v628_v23 }
 0x1eb   :  { %1601 = vmatmul.mubr.msk.f32.gmra.mrb[88].mxu1 %vm651_vm0, %v629_v9 }
 0x1ec   :  { %1603 = vmatprep.mubr.msk.f32.mxu1 %vm651_vm0, %v630_v25 }
 0x1ef   :  { %1604 = vmatmul.mubr.msk.f32.gmra.mrb[90].mxu1 %vm651_vm0, %v631_v26 }
 0x1f0   :  { %1606 = vmatprep.mubr.msk.f32.mxu1 %vm651_vm0, %v632_v29 }
 0x1f2   :  { %v1518_v55 = vpop.f32.mrb[32].mxu1 }
 0x1f3   :  { %v916_v35 = vadd.f32 %v1518_v55, %v2457_v40  ;;  %v910_v47 = vpop.f32.mrb[33].mxu1  ;;  %1607 = vmatmul.mubr.msk.f32.gmra.mrb[92].mxu1 %vm651_vm0, %v633_v32 }
 0x1f4   :  { %v911_v37 = vadd.f32 %v2457_v40, %v910_v47  ;;  %1609 = vmatprep.mubr.msk.f32.mxu1 %vm651_vm0, %v634_v31 }
 0x1f5   :  { %v1230_v61 = vmax.f32 %v916_v35, 0.0 }
 0x1f6   :  { %v1229_v63 = vmax.f32 %v911_v37, 0.0 }
 0x1f7   :  { %1295 = vst.msk [vmem:[%s2787_s5 + $0x8] sm:$0xff] %vm1293_vm1, %v1230_v61  ;;  %1610 = vmatmul.mubr.msk.f32.gmra.mrb[94].mxu1 %vm651_vm0, %v635_v34 }
 0x1f8   :  { %1294 = vst.msk [vmem:[%s2787_s5] sm:$0xff] %vm1293_vm1, %v1229_v63 }
 0x1fa   :  { %v1521_v38 = vpop.f32.mrb[34].mxu1 }
 0x1fb   :  { %v926_v39 = vadd.f32 %v1521_v38, %v2457_v40  ;;  %v920_v41 = vpop.f32.mrb[35].mxu1 }
 0x1fc   :  { %v921_v43 = vadd.f32 %v2457_v40, %v920_v41 }
 0x1fd   :  { %v1232_v44 = vmax.f32 %v926_v39, 0.0 }
 0x1fe   :  { %v1231_v45 = vmax.f32 %v921_v43, 0.0 }
 0x1ff   :  { %1297 = vst.msk [vmem:[%s2787_s5 + $0x18] sm:$0xff] %vm1293_vm1, %v1232_v44 }
 0x200   :  { %1296 = vst.msk [vmem:[%s2787_s5 + $0x10] sm:$0xff] %vm1293_vm1, %v1231_v45 }
 0x202   :  { %v1524_v46 = vpop.f32.mrb[36].mxu1 }
 0x203   :  { %v936_v49 = vadd.f32 %v1524_v46, %v2457_v40  ;;  %v930_v50 = vpop.f32.mrb[37].mxu1 }
 0x204   :  { %v931_v51 = vadd.f32 %v2457_v40, %v930_v50 }
 0x205   :  { %v1234_v52 = vmax.f32 %v936_v49, 0.0 }
 0x206   :  { %v1233_v53 = vmax.f32 %v931_v51, 0.0 }
 0x207   :  { %1299 = vst.msk [vmem:[%s2787_s5 + $0x28] sm:$0xff] %vm1293_vm1, %v1234_v52 }
 0x208   :  { %1298 = vst.msk [vmem:[%s2787_s5 + $0x20] sm:$0xff] %vm1293_vm1, %v1233_v53 }
 0x20a   :  { %v1527_v56 = vpop.f32.mrb[38].mxu1 }
 0x20b   :  { %v946_v57 = vadd.f32 %v1527_v56, %v2457_v40  ;;  %v940_v58 = vpop.f32.mrb[39].mxu1 }
 0x20c   :  { %v941_v59 = vadd.f32 %v2457_v40, %v940_v58 }
 0x20d   :  { %v1236_v62 = vmax.f32 %v946_v57, 0.0 }
 0x20e   :  { %v1235_v0 = vmax.f32 %v941_v59, 0.0 }
 0x20f   :  { %1301 = vst.msk [vmem:[%s2787_s5 + $0x38] sm:$0xff] %vm1293_vm1, %v1236_v62 }
 0x210   :  { %1300 = vst.msk [vmem:[%s2787_s5 + $0x30] sm:$0xff] %vm1293_vm1, %v1235_v0 }
 0x212   :  { %v1530_v1 = vpop.f32.mrb[40].mxu1 }
 0x213   :  { %v956_v2 = vadd.f32 %v1530_v1, %v2457_v40  ;;  %v950_v4 = vpop.f32.mrb[41].mxu1 }
 0x214   :  { %v951_v5 = vadd.f32 %v2457_v40, %v950_v4 }
 0x215   :  { %v1238_v6 = vmax.f32 %v956_v2, 0.0 }
 0x216   :  { %v1237_v7 = vmax.f32 %v951_v5, 0.0 }
 0x217   :  { %1303 = vst.msk [vmem:[%s2787_s5 + $0x48] sm:$0xff] %vm1293_vm1, %v1238_v6 }
 0x218   :  { %1302 = vst.msk [vmem:[%s2787_s5 + $0x40] sm:$0xff] %vm1293_vm1, %v1237_v7 }
 0x21a   :  { %v1533_v8 = vpop.f32.mrb[42].mxu1 }
 0x21b   :  { %v966_v10 = vadd.f32 %v1533_v8, %v2457_v40  ;;  %v960_v11 = vpop.f32.mrb[43].mxu1 }
 0x21c   :  { %v961_v12 = vadd.f32 %v2457_v40, %v960_v11 }
 0x21d   :  { %v1240_v13 = vmax.f32 %v966_v10, 0.0 }
 0x21e   :  { %v1239_v14 = vmax.f32 %v961_v12, 0.0 }
 0x21f   :  { %1305 = vst.msk [vmem:[%s2787_s5 + $0x58] sm:$0xff] %vm1293_vm1, %v1240_v13 }
 0x220   :  { %1304 = vst.msk [vmem:[%s2787_s5 + $0x50] sm:$0xff] %vm1293_vm1, %v1239_v14 }
 0x222   :  { %v1536_v30 = vpop.f32.mrb[44].mxu1 }
 0x223   :  { %v976_v16 = vadd.f32 %v1536_v30, %v2457_v40  ;;  %v970_v17 = vpop.f32.mrb[45].mxu1 }
 0x224   :  { %v971_v36 = vadd.f32 %v2457_v40, %v970_v17 }
 0x225   :  { %v1242_v42 = vmax.f32 %v976_v16, 0.0 }
 0x226   :  { %v1241_v18 = vmax.f32 %v971_v36, 0.0 }
 0x227   :  { %1307 = vst.msk [vmem:[%s2787_s5 + $0x68] sm:$0xff] %vm1293_vm1, %v1242_v42 }
 0x228   :  { %1306 = vst.msk [vmem:[%s2787_s5 + $0x60] sm:$0xff] %vm1293_vm1, %v1241_v18 }
 0x22a   :  { %v1539_v19 = vpop.f32.mrb[46].mxu1 }
 0x22b   :  { %v986_v48 = vadd.f32 %v1539_v19, %v2457_v40  ;;  %v980_v54 = vpop.f32.mrb[47].mxu1 }
 0x22c   :  { %v981_v21 = vadd.f32 %v2457_v40, %v980_v54 }
 0x22d   :  { %v1244_v22 = vmax.f32 %v986_v48, 0.0 }
 0x22e   :  { %v1243_v60 = vmax.f32 %v981_v21, 0.0 }
 0x22f   :  { %1309 = vst.msk [vmem:[%s2787_s5 + $0x78] sm:$0xff] %vm1293_vm1, %v1244_v22 }
 0x230   :  { %1308 = vst.msk [vmem:[%s2787_s5 + $0x70] sm:$0xff] %vm1293_vm1, %v1243_v60 }
 0x232   :  { %v1542_v3 = vpop.f32.mrb[48].mxu1 }
 0x233   :  { %v996_v23 = vadd.f32 %v1542_v3, %v2457_v40  ;;  %v990_v24 = vpop.f32.mrb[49].mxu1 }
 0x234   :  { %v991_v9 = vadd.f32 %v2457_v40, %v990_v24 }
 0x235   :  { %v1246_v15 = vmax.f32 %v996_v23, 0.0 }
 0x236   :  { %v1245_v25 = vmax.f32 %v991_v9, 0.0 }
 0x237   :  { %1311 = vst.msk [vmem:[%s2787_s5 + $0x88] sm:$0xff] %vm1293_vm1, %v1246_v15 }
 0x238   :  { %1310 = vst.msk [vmem:[%s2787_s5 + $0x80] sm:$0xff] %vm1293_vm1, %v1245_v25 }
 0x23a   :  { %v1545_v27 = vpop.f32.mrb[50].mxu1 }
 0x23b   :  { %v1006_v20 = vadd.f32 %v1545_v27, %v2457_v40  ;;  %v1000_v26 = vpop.f32.mrb[51].mxu1 }
 0x23c   :  { %v1001_v28 = vadd.f32 %v2457_v40, %v1000_v26 }
 0x23d   :  { %v1248_v29 = vmax.f32 %v1006_v20, 0.0 }
 0x23e   :  { %v1247_v33 = vmax.f32 %v1001_v28, 0.0 }
 0x23f   :  { %1313 = vst.msk [vmem:[%s2787_s5 + $0x98] sm:$0xff] %vm1293_vm1, %v1248_v29 }
 0x240   :  { %1312 = vst.msk [vmem:[%s2787_s5 + $0x90] sm:$0xff] %vm1293_vm1, %v1247_v33 }
 0x242   :  { %v1548_v31 = vpop.f32.mrb[52].mxu1 }
 0x243   :  { %v1016_v32 = vadd.f32 %v1548_v31, %v2457_v40  ;;  %v1010_v55 = vpop.f32.mrb[53].mxu1 }
 0x244   :  { %v1011_v34 = vadd.f32 %v2457_v40, %v1010_v55 }
 0x245   :  { %v1250_v35 = vmax.f32 %v1016_v32, 0.0 }
 0x246   :  { %v1249_v47 = vmax.f32 %v1011_v34, 0.0 }
 0x247   :  { %1315 = vst.msk [vmem:[%s2787_s5 + $0xa8] sm:$0xff] %vm1293_vm1, %v1250_v35 }
 0x248   :  { %1314 = vst.msk [vmem:[%s2787_s5 + $0xa0] sm:$0xff] %vm1293_vm1, %v1249_v47 }
 0x24a   :  { %v1551_v37 = vpop.f32.mrb[54].mxu1 }
 0x24b   :  { %v1026_v61 = vadd.f32 %v1551_v37, %v2457_v40  ;;  %v1020_v63 = vpop.f32.mrb[55].mxu1 }
 0x24c   :  { %v1021_v38 = vadd.f32 %v2457_v40, %v1020_v63 }
 0x24d   :  { %v1252_v39 = vmax.f32 %v1026_v61, 0.0 }
 0x24e   :  { %v1251_v41 = vmax.f32 %v1021_v38, 0.0 }
 0x24f   :  { %1317 = vst.msk [vmem:[%s2787_s5 + $0xb8] sm:$0xff] %vm1293_vm1, %v1252_v39 }
 0x250   :  { %1316 = vst.msk [vmem:[%s2787_s5 + $0xb0] sm:$0xff] %vm1293_vm1, %v1251_v41 }
 0x252   :  { %v1554_v43 = vpop.f32.mrb[56].mxu1 }
 0x253   :  { %v1036_v44 = vadd.f32 %v1554_v43, %v2457_v40  ;;  %v1030_v45 = vpop.f32.mrb[57].mxu1 }
 0x254   :  { %v1031_v46 = vadd.f32 %v2457_v40, %v1030_v45 }
 0x255   :  { %v1254_v49 = vmax.f32 %v1036_v44, 0.0 }
 0x256   :  { %v1253_v50 = vmax.f32 %v1031_v46, 0.0 }
 0x257   :  { %1319 = vst.msk [vmem:[%s2787_s5 + $0xc8] sm:$0xff] %vm1293_vm1, %v1254_v49 }
 0x258   :  { %1318 = vst.msk [vmem:[%s2787_s5 + $0xc0] sm:$0xff] %vm1293_vm1, %v1253_v50 }
 0x25a   :  { %v1557_v51 = vpop.f32.mrb[58].mxu1 }
 0x25b   :  { %v1046_v52 = vadd.f32 %v1557_v51, %v2457_v40  ;;  %v1040_v53 = vpop.f32.mrb[59].mxu1 }
 0x25c   :  { %v1041_v56 = vadd.f32 %v2457_v40, %v1040_v53 }
 0x25d   :  { %v1256_v57 = vmax.f32 %v1046_v52, 0.0 }
 0x25e   :  { %v1255_v58 = vmax.f32 %v1041_v56, 0.0 }
 0x25f   :  { %1321 = vst.msk [vmem:[%s2787_s5 + $0xd8] sm:$0xff] %vm1293_vm1, %v1256_v57 }
 0x260   :  { %1320 = vst.msk [vmem:[%s2787_s5 + $0xd0] sm:$0xff] %vm1293_vm1, %v1255_v58 }
 0x262   :  { %v1560_v59 = vpop.f32.mrb[60].mxu1 }
 0x263   :  { %v1056_v62 = vadd.f32 %v1560_v59, %v2457_v40  ;;  %v1050_v0 = vpop.f32.mrb[61].mxu1 }
 0x264   :  { %v1051_v1 = vadd.f32 %v2457_v40, %v1050_v0 }
 0x265   :  { %v1258_v2 = vmax.f32 %v1056_v62, 0.0 }
 0x266   :  { %v1257_v4 = vmax.f32 %v1051_v1, 0.0 }
 0x267   :  { %1323 = vst.msk [vmem:[%s2787_s5 + $0xe8] sm:$0xff] %vm1293_vm1, %v1258_v2 }
 0x268   :  { %1322 = vst.msk [vmem:[%s2787_s5 + $0xe0] sm:$0xff] %vm1293_vm1, %v1257_v4 }
 0x26a   :  { %v1563_v5 = vpop.f32.mrb[62].mxu1 }
 0x26b   :  { %v1066_v6 = vadd.f32 %v1563_v5, %v2457_v40  ;;  %v1060_v7 = vpop.f32.mrb[63].mxu1 }
 0x26c   :  { %v1061_v8 = vadd.f32 %v2457_v40, %v1060_v7 }
 0x26d   :  { %v1260_v10 = vmax.f32 %v1066_v6, 0.0 }
 0x26e   :  { %v1259_v11 = vmax.f32 %v1061_v8, 0.0 }
 0x26f   :  { %1325 = vst.msk [vmem:[%s2787_s5 + $0xf8] sm:$0xff] %vm1293_vm1, %v1260_v10 }
 0x270   :  { %1324 = vst.msk [vmem:[%s2787_s5 + $0xf0] sm:$0xff] %vm1293_vm1, %v1259_v11 }
 0x272   :  { %v1566_v12 = vpop.f32.mrb[64].mxu1 }
 0x273   :  { %v1076_v13 = vadd.f32 %v1566_v12, %v2457_v40  ;;  %v1070_v14 = vpop.f32.mrb[65].mxu1 }
 0x274   :  { %v1071_v30 = vadd.f32 %v2457_v40, %v1070_v14 }
 0x275   :  { %v1262_v16 = vmax.f32 %v1076_v13, 0.0 }
 0x276   :  { %v1261_v17 = vmax.f32 %v1071_v30, 0.0 }
 0x277   :  { %1327 = vst.msk [vmem:[%s2787_s5 + $0x108] sm:$0xff] %vm1293_vm1, %v1262_v16 }
 0x278   :  { %1326 = vst.msk [vmem:[%s2787_s5 + $0x100] sm:$0xff] %vm1293_vm1, %v1261_v17 }
 0x27a   :  { %v1569_v36 = vpop.f32.mrb[66].mxu1 }
 0x27b   :  { %v1086_v42 = vadd.f32 %v1569_v36, %v2457_v40  ;;  %v1080_v18 = vpop.f32.mrb[67].mxu1 }
 0x27c   :  { %v1081_v19 = vadd.f32 %v2457_v40, %v1080_v18 }
 0x27d   :  { %v1264_v48 = vmax.f32 %v1086_v42, 0.0 }
 0x27e   :  { %v1263_v54 = vmax.f32 %v1081_v19, 0.0 }
 0x27f   :  { %1329 = vst.msk [vmem:[%s2787_s5 + $0x118] sm:$0xff] %vm1293_vm1, %v1264_v48 }
 0x280   :  { %1328 = vst.msk [vmem:[%s2787_s5 + $0x110] sm:$0xff] %vm1293_vm1, %v1263_v54 }
 0x282   :  { %v1572_v21 = vpop.f32.mrb[68].mxu1 }
 0x283   :  { %v1096_v22 = vadd.f32 %v1572_v21, %v2457_v40  ;;  %v1090_v60 = vpop.f32.mrb[69].mxu1 }
 0x284   :  { %v1091_v3 = vadd.f32 %v2457_v40, %v1090_v60 }
 0x285   :  { %v1266_v23 = vmax.f32 %v1096_v22, 0.0 }
 0x286   :  { %v1265_v24 = vmax.f32 %v1091_v3, 0.0 }
 0x287   :  { %1331 = vst.msk [vmem:[%s2787_s5 + $0x128] sm:$0xff] %vm1293_vm1, %v1266_v23 }
 0x288   :  { %1330 = vst.msk [vmem:[%s2787_s5 + $0x120] sm:$0xff] %vm1293_vm1, %v1265_v24 }
 0x28a   :  { %v1575_v9 = vpop.f32.mrb[70].mxu1 }
 0x28b   :  { %v1106_v15 = vadd.f32 %v1575_v9, %v2457_v40  ;;  %v1100_v25 = vpop.f32.mrb[71].mxu1 }
 0x28c   :  { %v1101_v27 = vadd.f32 %v2457_v40, %v1100_v25 }
 0x28d   :  { %v1268_v20 = vmax.f32 %v1106_v15, 0.0 }
 0x28e   :  { %v1267_v26 = vmax.f32 %v1101_v27, 0.0 }
 0x28f   :  { %1333 = vst.msk [vmem:[%s2787_s5 + $0x138] sm:$0xff] %vm1293_vm1, %v1268_v20 }
 0x290   :  { %1332 = vst.msk [vmem:[%s2787_s5 + $0x130] sm:$0xff] %vm1293_vm1, %v1267_v26 }
 0x292   :  { %v1578_v28 = vpop.f32.mrb[72].mxu1 }
 0x293   :  { %v1116_v29 = vadd.f32 %v1578_v28, %v2457_v40  ;;  %v1110_v33 = vpop.f32.mrb[73].mxu1 }
 0x294   :  { %v1111_v31 = vadd.f32 %v2457_v40, %v1110_v33 }
 0x295   :  { %v1270_v32 = vmax.f32 %v1116_v29, 0.0 }
 0x296   :  { %v1269_v55 = vmax.f32 %v1111_v31, 0.0 }
 0x297   :  { %1335 = vst.msk [vmem:[%s2787_s5 + $0x148] sm:$0xff] %vm1293_vm1, %v1270_v32 }
 0x298   :  { %1334 = vst.msk [vmem:[%s2787_s5 + $0x140] sm:$0xff] %vm1293_vm1, %v1269_v55 }
 0x29a   :  { %v1581_v34 = vpop.f32.mrb[74].mxu1 }
 0x29b   :  { %v1126_v35 = vadd.f32 %v1581_v34, %v2457_v40  ;;  %v1120_v47 = vpop.f32.mrb[75].mxu1 }
 0x29c   :  { %v1121_v37 = vadd.f32 %v2457_v40, %v1120_v47 }
 0x29d   :  { %v1272_v61 = vmax.f32 %v1126_v35, 0.0 }
 0x29e   :  { %v1271_v63 = vmax.f32 %v1121_v37, 0.0 }
 0x29f   :  { %1337 = vst.msk [vmem:[%s2787_s5 + $0x158] sm:$0xff] %vm1293_vm1, %v1272_v61 }
 0x2a0   :  { %1336 = vst.msk [vmem:[%s2787_s5 + $0x150] sm:$0xff] %vm1293_vm1, %v1271_v63 }
 0x2a2   :  { %v1584_v38 = vpop.f32.mrb[76].mxu1 }
 0x2a3   :  { %v1136_v39 = vadd.f32 %v1584_v38, %v2457_v40  ;;  %v1130_v41 = vpop.f32.mrb[77].mxu1 }
 0x2a4   :  { %v1131_v43 = vadd.f32 %v2457_v40, %v1130_v41 }
 0x2a5   :  { %v1274_v44 = vmax.f32 %v1136_v39, 0.0 }
 0x2a6   :  { %v1273_v45 = vmax.f32 %v1131_v43, 0.0 }
 0x2a7   :  { %1339 = vst.msk [vmem:[%s2787_s5 + $0x168] sm:$0xff] %vm1293_vm1, %v1274_v44 }
 0x2a8   :  { %1338 = vst.msk [vmem:[%s2787_s5 + $0x160] sm:$0xff] %vm1293_vm1, %v1273_v45 }
 0x2aa   :  { %v1587_v46 = vpop.f32.mrb[78].mxu1 }
 0x2ab   :  { %v1146_v49 = vadd.f32 %v1587_v46, %v2457_v40  ;;  %v1140_v50 = vpop.f32.mrb[79].mxu1 }
 0x2ac   :  { %v1141_v51 = vadd.f32 %v2457_v40, %v1140_v50 }
 0x2ad   :  { %v1276_v52 = vmax.f32 %v1146_v49, 0.0 }
 0x2ae   :  { %v1275_v53 = vmax.f32 %v1141_v51, 0.0  ;;  %v1590_v56 = vpop.f32.mrb[80].mxu1 }
 0x2af   :  { %1341 = vst.msk [vmem:[%s2787_s5 + $0x178] sm:$0xff] %vm1293_vm1, %v1276_v52  ;;  %v1156_v57 = vadd.f32 %v1590_v56, %v2457_v40  ;;  %v1150_v58 = vpop.f32.mrb[81].mxu1 }
 0x2b0   :  { %1340 = vst.msk [vmem:[%s2787_s5 + $0x170] sm:$0xff] %vm1293_vm1, %v1275_v53  ;;  %v1151_v59 = vadd.f32 %v2457_v40, %v1150_v58 }
 0x2b1   :  { %v1278_v62 = vmax.f32 %v1156_v57, 0.0 }
 0x2b2   :  { %v1277_v0 = vmax.f32 %v1151_v59, 0.0  ;;  %v1593_v1 = vpop.f32.mrb[82].mxu1 }
 0x2b3   :  { %1343 = vst.msk [vmem:[%s2787_s5 + $0x188] sm:$0xff] %vm1293_vm1, %v1278_v62  ;;  %v1166_v2 = vadd.f32 %v1593_v1, %v2457_v40  ;;  %v1160_v4 = vpop.f32.mrb[83].mxu1 }
 0x2b4   :  { %1342 = vst.msk [vmem:[%s2787_s5 + $0x180] sm:$0xff] %vm1293_vm1, %v1277_v0  ;;  %v1161_v5 = vadd.f32 %v2457_v40, %v1160_v4 }
 0x2b5   :  { %v1280_v6 = vmax.f32 %v1166_v2, 0.0 }
 0x2b6   :  { %v1279_v7 = vmax.f32 %v1161_v5, 0.0  ;;  %v1596_v8 = vpop.f32.mrb[84].mxu1 }
 0x2b7   :  { %1345 = vst.msk [vmem:[%s2787_s5 + $0x198] sm:$0xff] %vm1293_vm1, %v1280_v6  ;;  %v1176_v10 = vadd.f32 %v1596_v8, %v2457_v40  ;;  %v1170_v11 = vpop.f32.mrb[85].mxu1 }
 0x2b8   :  { %1344 = vst.msk [vmem:[%s2787_s5 + $0x190] sm:$0xff] %vm1293_vm1, %v1279_v7  ;;  %v1171_v12 = vadd.f32 %v2457_v40, %v1170_v11 }
 0x2b9   :  { %v1282_v13 = vmax.f32 %v1176_v10, 0.0 }
 0x2ba   :  { %v1281_v14 = vmax.f32 %v1171_v12, 0.0  ;;  %v1599_v30 = vpop.f32.mrb[86].mxu1 }
 0x2bb   :  { %1347 = vst.msk [vmem:[%s2787_s5 + $0x1a8] sm:$0xff] %vm1293_vm1, %v1282_v13  ;;  %v1186_v16 = vadd.f32 %v1599_v30, %v2457_v40  ;;  %v1180_v17 = vpop.f32.mrb[87].mxu1 }
 0x2bc   :  { %1346 = vst.msk [vmem:[%s2787_s5 + $0x1a0] sm:$0xff] %vm1293_vm1, %v1281_v14  ;;  %v1181_v36 = vadd.f32 %v2457_v40, %v1180_v17 }
 0x2bd   :  { %v1284_v42 = vmax.f32 %v1186_v16, 0.0 }
 0x2be   :  { %v1283_v18 = vmax.f32 %v1181_v36, 0.0  ;;  %v1602_v19 = vpop.f32.mrb[88].mxu1 }
 0x2bf   :  { %1349 = vst.msk [vmem:[%s2787_s5 + $0x1b8] sm:$0xff] %vm1293_vm1, %v1284_v42  ;;  %v1196_v48 = vadd.f32 %v1602_v19, %v2457_v40  ;;  %v1190_v54 = vpop.f32.mrb[89].mxu1 }
 0x2c0   :  { %1348 = vst.msk [vmem:[%s2787_s5 + $0x1b0] sm:$0xff] %vm1293_vm1, %v1283_v18  ;;  %v1191_v21 = vadd.f32 %v2457_v40, %v1190_v54 }
 0x2c1   :  { %v1286_v22 = vmax.f32 %v1196_v48, 0.0 }
 0x2c2   :  { %v1285_v60 = vmax.f32 %v1191_v21, 0.0  ;;  %v1605_v3 = vpop.f32.mrb[90].mxu1 }
 0x2c3   :  { %1351 = vst.msk [vmem:[%s2787_s5 + $0x1c8] sm:$0xff] %vm1293_vm1, %v1286_v22  ;;  %v1206_v23 = vadd.f32 %v1605_v3, %v2457_v40  ;;  %v1200_v24 = vpop.f32.mrb[91].mxu1 }
 0x2c4   :  { %1350 = vst.msk [vmem:[%s2787_s5 + $0x1c0] sm:$0xff] %vm1293_vm1, %v1285_v60  ;;  %v1201_v9 = vadd.f32 %v2457_v40, %v1200_v24 }
 0x2c5   :  { %v1288_v15 = vmax.f32 %v1206_v23, 0.0 }
 0x2c6   :  { %v1287_v25 = vmax.f32 %v1201_v9, 0.0  ;;  %v1608_v27 = vpop.f32.mrb[92].mxu1 }
 0x2c7   :  { %1353 = vst.msk [vmem:[%s2787_s5 + $0x1d8] sm:$0xff] %vm1293_vm1, %v1288_v15  ;;  %v1216_v20 = vadd.f32 %v1608_v27, %v2457_v40  ;;  %v1210_v26 = vpop.f32.mrb[93].mxu1 }
 0x2c8   :  { %1352 = vst.msk [vmem:[%s2787_s5 + $0x1d0] sm:$0xff] %vm1293_vm1, %v1287_v25  ;;  %v1211_v28 = vadd.f32 %v2457_v40, %v1210_v26 }
 0x2c9   :  { %v1290_v29 = vmax.f32 %v1216_v20, 0.0 }
 0x2ca   :  { %v1289_v33 = vmax.f32 %v1211_v28, 0.0  ;;  %v1611_v31 = vpop.f32.mrb[94].mxu1 }
 0x2cb   :  { %1355 = vst.msk [vmem:[%s2787_s5 + $0x1e8] sm:$0xff] %vm1293_vm1, %v1290_v29  ;;  %v1226_v32 = vadd.f32 %v1611_v31, %v2457_v40  ;;  %v1220_v55 = vpop.f32.mrb[95].mxu1 }
 0x2cc   :  { %1354 = vst.msk [vmem:[%s2787_s5 + $0x1e0] sm:$0xff] %vm1293_vm1, %v1289_v33  ;;  %v1221_v34 = vadd.f32 %v2457_v40, %v1220_v55 }
 0x2cd   :  { %v1292_v35 = vmax.f32 %v1226_v32, 0.0 }
 0x2ce   :  { %v1291_v47 = vmax.f32 %v1221_v34, 0.0 }
 0x2cf   :  { %1357 = vst.msk [vmem:[%s2787_s5 + $0x1f8] sm:$0xff] %vm1293_vm1, %v1292_v35 }
 0x2d0   :  { %1356 = vst.msk [vmem:[%s2787_s5 + $0x1f0] sm:$0xff] %vm1293_vm1, %v1291_v47 }

// kernel: sisr_forward.3
= control target key start
LH: loop header
LB: loop body
LE: loop exit
PB: predicated region body
PF: predicated region fallthrough
CT: control target
= control target key end

     0   :  { %s14909_s12 = smov 0   ;;  %s17851_s0 = inlined_call_operand.vmem [shape: f32[2,20,20,32], index: 0, kind: input, shape index: {}]   ;;  %s17852_s1 = inlined_call_operand.vmem [shape: f32[25,32,128], index: 1, kind: input, shape index: {}]   ;;  %s17853_s2 = inlined_call_operand.vmem [shape: f32[1,128], index: 2, kind: input, shape index: {}]   ;;  %s17854_s3 = inlined_call_operand.vmem [shape: f32[2,256,128], index: 3, kind: output, shape index: {}]  }
   0x1 LB: > { %s10020_s13 = sadd.s32 4294967295, %s14887_s12   ;;  %p10024_p0 = scmp.ge.s32.totalorder %s14887_s12, 1  ;;  %s14887_s12 = sphi %s14909_s12, %s13_s12  }
   0x2   : > { %p137_p1 = scmp.lt.s32.totalorder %s14887_s12, 3 }
   0x4   : > { %p138_p2 = pnand %p10024_p0, %p137_p1 }
   0x6   : > { %141 = sbr.rel (%p138_p2) target bundleno = 1038 (0x40e), region = 32 }
   0xd   : > { %v211_v0 = vld [vmem:[%s17852_s1] sm:$0xff]  ;;  %v212_v1 = vld [vmem:[%s17852_s1 + $0x8] sm:$0xff]  ;;  %p161_p3 = scmp.lt.s32.totalorder %s10020_s13, 1  ;;  %v213_v5 = vld [vmem:[%s17852_s1 + $0x10] sm:$0xff]  ;;  %vm215_vm0 = vcmask 261120  }
   0xe   : > { %v10713_v2 = vld [vmem:[%s17852_s1 + $0x180] sm:$0xff]  ;;  %v13868_v3 = vpack.c.bf16 %v212_v1, %v211_v0  ;;  %v10714_v4 = vld [vmem:[%s17852_s1 + $0x188] sm:$0xff]  ;;  %v214_v6 = vld [vmem:[%s17852_s1 + $0x18] sm:$0xff] }
   0xf   : > { %v14935_v7 = vpack.c.bf16 %v10714_v4, %v10713_v2  ;;  %v13872_v8 = vpack.c.bf16 %v214_v6, %v213_v5  ;;  %v10715_v9 = vld [vmem:[%s17852_s1 + $0x190] sm:$0xff]  ;;  %v10716_v10 = vld [vmem:[%s17852_s1 + $0x198] sm:$0xff]  ;;  %s18218_s13 = smov (!%p161_p3, %s10020_s13), 1  ;;  %v10061_v11 = vld [vmem:[%s17852_s1 + $0x20] sm:$0xff] }
  0x10   : > { %13869 = vmatprep.subr.bf16.mxu1 %v13868_v3  ;;  %v14948_v12 = vpack.c.bf16 %v10716_v10, %v10715_v9  ;;  %v10062_v13 = vld [vmem:[%s17852_s1 + $0x28] sm:$0xff]  ;;  %v10781_v14 = vld [vmem:[%s17852_s1 + $0x1a0] sm:$0xff]  ;;  %s14872_s11 = smul.u32 480, %s18218_s13  ;;  %v10063_v18 = vld [vmem:[%s17852_s1 + $0x30] sm:$0xff]  ;;  %s11567_s26 = sshll.u32 %s18218_s13, 8 }
  0x11   : > { %17977 = vst [vmem:[#allocation2_spill] sm:$0xff] %v14935_v7  ;;  %v10782_v15 = vld [vmem:[%s17852_s1 + $0x1a8] sm:$0xff]  ;;  %13965 = vmatprep.subr.bf16.mxu0 %v14935_v7  ;;  %13871 = vmatpush3.bf16.msra.mxu1 %v13868_v3  ;;  %v13876_v16 = vpack.c.bf16 %v10062_v13, %v10061_v11  ;;  %v10064_v21 = vld [vmem:[%s17852_s1 + $0x38] sm:$0xff]  ;;  %v10783_v23 = vld [vmem:[%s17852_s1 + $0x1b0] sm:$0xff]  ;;  %s17784_s29 = scalar_lea.vmem %s17854_s3, %s11567_s26 }
  0x12   : > { %17978 = vst [vmem:[#allocation3_spill] sm:$0xff] %v14948_v12  ;;  %13967 = vmatpush3.bf16.msra.mxu0 %v14935_v7  ;;  %13873 = vmatprep.subr.bf16.mxu1 %v13872_v8  ;;  %s14966_s16 = scalar_lea.vmem %s17851_s0, %s14872_s11  ;;  %v13972_v17 = vpack.c.bf16 %v10782_v15, %v10781_v14  ;;  %v10784_v24 = vld [vmem:[%s17852_s1 + $0x1b8] sm:$0xff]  ;;  %v13880_v28 = vpack.c.bf16 %v10064_v21, %v10063_v18  ;;  %v10097_v30 = vld [vmem:[%s17852_s1 + $0x40] sm:$0xff]  ;;  %v10098_v31 = vld [vmem:[%s17852_s1 + $0x48] sm:$0xff] }
  0x13   : > { %13969 = vmatprep.subr.bf16.mxu0 %v14948_v12  ;;  %v179_v19 = vld [vmem:[%s14966_s16] sm:$0xff]  ;;  %v14973_v20 = vld [vmem:[%s14966_s16 + $0x32] sm:$0xff]  ;;  %v180_v22 = vld [vmem:[%s14966_s16 + $0x8] sm:$0xff]  ;;  %v13976_v29 = vpack.c.bf16 %v10784_v24, %v10783_v23  ;;  %v15022_v38 = vpack.c.bf16 %v10098_v31, %v10097_v30 }
  0x14   : > { %12476 = vmatprep.mubr.msk.f32.mxu1 %vm215_vm0, %v179_v19  ;;  %13148 = vmatprep.mubr.msk.f32.mxu0 %vm215_vm0, %v14973_v20  ;;  %v14990_v25 = vld [vmem:[%s14966_s16 + $0x3a] sm:$0xff]  ;;  %v14994_v27 = vld [vmem:[%s14966_s16 + $0x4a] sm:$0xff]  ;;  %v15016_v35 = vld [vmem:[%s14966_s16 + $0x52] sm:$0xff] }
  0x15   : > { %13875 = vmatpush3.bf16.msra.mxu1 %v13872_v8  ;;  %v181_v26 = vld [vmem:[%s14966_s16 + $0x18] sm:$0xff]  ;;  %v182_v32 = vld [vmem:[%s14966_s16 + $0x20] sm:$0xff]  ;;  %v10850_v34 = vld [vmem:[%s17852_s1 + $0x1c8] sm:$0xff] }
  0x16   : > { %13971 = vmatpush3.bf16.msra.mxu0 %v14948_v12  ;;  %13877 = vmatprep.subr.bf16.mxu1 %v13876_v16  ;;  %v10849_v33 = vld [vmem:[%s17852_s1 + $0x1c0] sm:$0xff]  ;;  %v183_v36 = vld [vmem:[%s14966_s16 + $0x30] sm:$0xff]  ;;  %v184_v40 = vld [vmem:[%s14966_s16 + $0x38] sm:$0xff] }
  0x17   : > { %13973 = vmatprep.subr.bf16.mxu0 %v13972_v17  ;;  %v15020_v37 = vld [vmem:[%s14966_s16 + $0x62] sm:$0xff]  ;;  %v15025_v39 = vpack.c.bf16 %v10850_v34, %v10849_v33  ;;  %v15034_v41 = vld [vmem:[%s14966_s16 + $0x6a] sm:$0xff]  ;;  %v15040_v43 = vld [vmem:[%s14966_s16 + $0x7a] sm:$0xff] }
  0x18   : > { %12477 = vmatmul.mubr.msk.f32.vlgmr.msra.gmra.mrb[0].mxu1 %vm215_vm0, %v180_v22  ;;  %v15037_v42 = vld [vmem:[%s14966_s16 + $0x48] sm:$0xff]  ;;  %v15050_v44 = vld [vmem:[%s14966_s16 + $0x50] sm:$0xff]  ;;  %v15058_v46 = vld [vmem:[%s14966_s16 + $0x60] sm:$0xff] }
  0x19   : > { %13149 = vmatmul.mubr.msk.f32.vlgmr.msra.gmra.mrb[0].mxu0 %vm215_vm0, %v14990_v25  ;;  %13879 = vmatpush3.bf16.msra.mxu1 %v13876_v16  ;;  %v15055_v45 = vld [vmem:[%s14966_s16 + $0x82] sm:$0xff]  ;;  %v15061_v47 = vld [vmem:[%s14966_s16 + $0x92] sm:$0xff]  ;;  %v15075_v49 = vld [vmem:[%s14966_s16 + $0x9a] sm:$0xff] }
  0x1a   : > { %12479 = vmatprep.mubr.msk.f32.mxu1 %vm215_vm0, %v181_v26  ;;  %13151 = vmatprep.mubr.msk.f32.mxu0 %vm215_vm0, %v14994_v27  ;;  %v15070_v48 = vld [vmem:[%s14966_s16 + $0x68] sm:$0xff]  ;;  %v15078_v50 = vld [vmem:[%s14966_s16 + $0x78] sm:$0xff]  ;;  %v15090_v52 = vld [vmem:[%s14966_s16 + $0x80] sm:$0xff] }
  0x1b   : > { %13975 = vmatpush3.bf16.msra.mxu0 %v13972_v17  ;;  %13881 = vmatprep.subr.bf16.mxu1 %v13880_v28  ;;  %v15081_v51 = vld [vmem:[%s14966_s16 + $0xaa] sm:$0xff]  ;;  %v15095_v53 = vld [vmem:[%s14966_s16 + $0xb2] sm:$0xff]  ;;  %v15101_v55 = vld [vmem:[%s14966_s16 + $0xc2] sm:$0xff] }
  0x1c   : > { %12480 = vmatmul.mubr.msk.f32.gmra.mrb[2].mxu1 %vm215_vm0, %v182_v32  ;;  %13977 = vmatprep.subr.bf16.mxu0 %v13976_v29  ;;  %v15098_v54 = vld [vmem:[%s14966_s16 + $0x90] sm:$0xff]  ;;  %v15110_v56 = vld [vmem:[%s14966_s16 + $0x98] sm:$0xff]  ;;  %v15118_v58 = vld [vmem:[%s14966_s16 + $0xa8] sm:$0xff] }
  0x1d   : > { %13152 = vmatmul.mubr.msk.f32.gmra.mrb[2].mxu0 %vm215_vm0, %v15016_v35  ;;  %12482 = vmatprep.mubr.msk.f32.mxu1 %vm215_vm0, %v183_v36  ;;  %v15115_v57 = vld [vmem:[%s14966_s16 + $0xca] sm:$0xff]  ;;  %v15121_v59 = vld [vmem:[%s14966_s16 + $0xda] sm:$0xff]  ;;  %v15135_v61 = vld [vmem:[%s14966_s16 + $0xe2] sm:$0xff] }
  0x1e   : > { %13154 = vmatprep.mubr.msk.f32.mxu0 %vm215_vm0, %v15020_v37  ;;  %13883 = vmatpush3.bf16.msra.mxu1 %v13880_v28  ;;  %v15130_v60 = vld [vmem:[%s14966_s16 + $0xb0] sm:$0xff]  ;;  %v15138_v62 = vld [vmem:[%s14966_s16 + $0xc0] sm:$0xff]  ;;  %v10852_v1 = vld [vmem:[%s17852_s1 + $0x1d8] sm:$0xff] }
  0x1f   : > { %13979 = vmatpush3.bf16.msra.mxu0 %v13976_v29  ;;  %13885 = vmatprep.subr.bf16.mxu1 %v15022_v38  ;;  %v15141_v63 = vld [vmem:[%s14966_s16 + $0x33] sm:$0xff]  ;;  %v15156_v2 = vld [vmem:[%s14966_s16 + $0xc8] sm:$0xff]  ;;  %v15161_v3 = vld [vmem:[%s14966_s16 + $0x3b] sm:$0xff] }
  0x20   : > { %12483 = vmatmul.mubr.msk.f32.gmra.mrb[4].mxu1 %vm215_vm0, %v184_v40  ;;  %13981 = vmatprep.subr.bf16.mxu0 %v15025_v39  ;;  %v10851_v0 = vld [vmem:[%s17852_s1 + $0x1d0] sm:$0xff]  ;;  %v15164_v4 = vld [vmem:[%s14966_s16 + $0xd8] sm:$0xff]  ;;  %v10917_v8 = vld [vmem:[%s17852_s1 + $0x1e0] sm:$0xff] }
  0x21   : > { %13155 = vmatmul.mubr.msk.f32.gmra.mrb[4].mxu0 %vm215_vm0, %v15034_v41  ;;  %12485 = vmatprep.mubr.msk.f32.mxu1 %vm215_vm0, %v15037_v42  ;;  %v15167_v5 = vld [vmem:[%s14966_s16 + $0x4b] sm:$0xff]  ;;  %v13984_v6 = vpack.c.bf16 %v10852_v1, %v10851_v0  ;;  %v15182_v10 = vld [vmem:[%s14966_s16 + $0xe0] sm:$0xff]  ;;  %v15188_v11 = vld [vmem:[%s14966_s16 + $0x53] sm:$0xff] }
  0x22   : > { %13157 = vmatprep.mubr.msk.f32.mxu0 %vm215_vm0, %v15040_v43  ;;  %v10918_v9 = vld [vmem:[%s17852_s1 + $0x1e8] sm:$0xff]  ;;  %v15191_v13 = vld [vmem:[%s14966_s16 + $0xf0] sm:$0xff]  ;;  %v15205_v16 = vld [vmem:[%s14966_s16 + $0xf8] sm:$0xff] }
  0x23   : > { %v15194_v14 = vld [vmem:[%s14966_s16 + $0x63] sm:$0xff]  ;;  %v15196_v15 = vpack.c.bf16 %v10918_v9, %v10917_v8  ;;  %v15210_v17 = vld [vmem:[%s14966_s16 + $0x6b] sm:$0xff]  ;;  %v15216_v19 = vld [vmem:[%s14966_s16 + $0x7b] sm:$0xff] }
  0x24   : > { %12486 = vmatmul.mubr.msk.f32.gmra.mrb[6].mxu1 %vm215_vm0, %v15050_v44  ;;  %v15213_v18 = vld [vmem:[%s14966_s16 + $0x108] sm:$0xff]  ;;  %v15226_v21 = vld [vmem:[%s14966_s16 + $0x110] sm:$0xff]  ;;  %v15234_v23 = vld [vmem:[%s14966_s16 + $0x120] sm:$0xff] }
  0x25   : > { %13158 = vmatmul.mubr.msk.f32.gmra.mrb[6].mxu0 %vm215_vm0, %v15055_v45  ;;  %12488 = vmatprep.mubr.msk.f32.mxu1 %vm215_vm0, %v15058_v46  ;;  %v15231_v22 = vld [vmem:[%s14966_s16 + $0x83] sm:$0xff]  ;;  %v15237_v24 = vld [vmem:[%s14966_s16 + $0x93] sm:$0xff]  ;;  %v15251_v28 = vld [vmem:[%s14966_s16 + $0x9b] sm:$0xff] }
  0x26   : > { %13160 = vmatprep.mubr.msk.f32.mxu0 %vm215_vm0, %v15061_v47  ;;  %v15246_v26 = vld [vmem:[%s14966_s16 + $0x128] sm:$0xff]  ;;  %17979 = vst [vmem:[#allocation4_spill] sm:$0xff] %v15251_v28  ;;  %v15254_v29 = vld [vmem:[%s14966_s16 + $0x138] sm:$0xff]  ;;  %v15266_v31 = vld [vmem:[%s14966_s16 + $0x140] sm:$0xff] }
  0x27   : > { %v15257_v30 = vld [vmem:[%s14966_s16 + $0xab] sm:$0xff]  ;;  %v15271_v32 = vld [vmem:[%s14966_s16 + $0xb3] sm:$0xff]  ;;  %v15277_v34 = vld [vmem:[%s14966_s16 + $0xc3] sm:$0xff] }
  0x28   : > { %12489 = vmatmul.mubr.msk.f32.gmra.mrb[8].mxu1 %vm215_vm0, %v15070_v48  ;;  %17980 = vst [vmem:[#allocation5_spill] sm:$0xff] %v15257_v30  ;;  %17981 = vst [vmem:[#allocation6_spill] sm:$0xff] %v15271_v32  ;;  %v15274_v33 = vld [vmem:[%s14966_s16 + $0x150] sm:$0xff]  ;;  %v15286_v36 = vld [vmem:[%s14966_s16 + $0x158] sm:$0xff] }
  0x29   : > { %13161 = vmatmul.mubr.msk.f32.gmra.mrb[8].mxu0 %vm215_vm0, %v15075_v49  ;;  %12491 = vmatprep.mubr.msk.f32.mxu1 %vm215_vm0, %v15078_v50  ;;  %17982 = vst [vmem:[#allocation7_spill] sm:$0xff] %v15277_v34  ;;  %v15294_v40 = vld [vmem:[%s14966_s16 + $0x168] sm:$0xff]  ;;  %v15297_v0 = vld [vmem:[%s14966_s16 + $0xdb] sm:$0xff]  ;;  %v15306_v1 = vld [vmem:[%s14966_s16 + $0x170] sm:$0xff] }
  0x2a   : > { %13163 = vmatprep.mubr.msk.f32.mxu0 %vm215_vm0, %v15081_v51  ;;  %17984 = vst [vmem:[#allocation9_spill] sm:$0xff] %v15297_v0  ;;  %v569_v8 = vld [vmem:[%s14966_s16 + $0x1] sm:$0xff]  ;;  %v15315_v9 = vld [vmem:[%s14966_s16 + $0xf3] sm:$0xff] }
  0x2b   : > { %17986 = vst [vmem:[#allocation11_spill] sm:$0xff] %v15315_v9  ;;  %v10099_v12 = vld [vmem:[%s17852_s1 + $0x50] sm:$0xff]  ;;  %v10100_v7 = vld [vmem:[%s17852_s1 + $0x58] sm:$0xff] }
  0x2c   : > { %12492 = vmatmul.mubr.msk.f32.gmra.mrb[10].mxu1 %vm215_vm0, %v15090_v52 }
  0x2d   : > { %13164 = vmatmul.mubr.msk.f32.gmra.mrb[10].mxu0 %vm215_vm0, %v15095_v53  ;;  %12494 = vmatprep.mubr.msk.f32.mxu1 %vm215_vm0, %v15098_v54 }
  0x2e   : > { %13166 = vmatprep.mubr.msk.f32.mxu0 %vm215_vm0, %v15101_v55 }
  0x30   : > { %12495 = vmatmul.mubr.msk.f32.gmra.mrb[12].mxu1 %vm215_vm0, %v15110_v56 }
  0x31   : > { %13167 = vmatmul.mubr.msk.f32.gmra.mrb[12].mxu0 %vm215_vm0, %v15115_v57  ;;  %12497 = vmatprep.mubr.msk.f32.mxu1 %vm215_vm0, %v15118_v58 }
  0x32   : > { %13169 = vmatprep.mubr.msk.f32.mxu0 %vm215_vm0, %v15121_v59 }
  0x34   : > { %12498 = vmatmul.mubr.msk.f32.gmra.mrb[14].mxu1 %vm215_vm0, %v15130_v60 }
  0x35   : > { %13170 = vmatmul.mubr.msk.f32.gmra.mrb[14].mxu0 %vm215_vm0, %v15135_v61  ;;  %12500 = vmatprep.mubr.msk.f32.mxu1 %vm215_vm0, %v15138_v62 }
  0x36   : > { %13204 = vmatprep.mubr.msk.f32.mxu0 %vm215_vm0, %v15141_v63 }
  0x38   : > { %12501 = vmatmul.mubr.msk.f32.gmra.mrb[16].mxu1 %vm215_vm0, %v15156_v2 }
  0x39   : > { %13205 = vmatmul.mubr.msk.f32.vlgmr.msra.gmra.mrb[0].mxu0 %vm215_vm0, %v15161_v3  ;;  %12503 = vmatprep.mubr.msk.f32.mxu1 %vm215_vm0, %v15164_v4 }
  0x3a   : > { %13207 = vmatprep.mubr.msk.f32.mxu0 %vm215_vm0, %v15167_v5  ;;  %13983 = vmatpush3.bf16.msra.mxu0 %v15025_v39  ;;  %v15291_v39 = vld [vmem:[%s14966_s16 + $0xcb] sm:$0xff] }
  0x3b   : > { %13985 = vmatprep.subr.bf16.mxu0 %v13984_v6  ;;  %17983 = vst [vmem:[#allocation8_spill] sm:$0xff] %v15291_v39 }
  0x3c   : > { %12504 = vmatmul.mubr.msk.f32.gmra.mrb[18].mxu1 %vm215_vm0, %v15182_v10 }
  0x3d   : > { %13208 = vmatmul.mubr.msk.f32.gmra.mrb[2].mxu0 %vm215_vm0, %v15188_v11  ;;  %12506 = vmatprep.mubr.msk.f32.mxu1 %vm215_vm0, %v15191_v13 }
  0x3e   : > { %13210 = vmatprep.mubr.msk.f32.mxu0 %vm215_vm0, %v15194_v14  ;;  %13987 = vmatpush3.bf16.msra.mxu0 %v13984_v6  ;;  %v15311_v6 = vld [vmem:[%s14966_s16 + $0xe3] sm:$0xff] }
  0x3f   : > { %13989 = vmatprep.subr.bf16.mxu0 %v15196_v15  ;;  %17985 = vst [vmem:[#allocation10_spill] sm:$0xff] %v15311_v6 }
  0x40   : > { %12507 = vmatmul.mubr.msk.f32.gmra.mrb[20].mxu1 %vm215_vm0, %v15205_v16 }
  0x41   : > { %13211 = vmatmul.mubr.msk.f32.gmra.mrb[4].mxu0 %vm215_vm0, %v15210_v17  ;;  %12509 = vmatprep.mubr.msk.f32.mxu1 %vm215_vm0, %v15213_v18 }
  0x42   : > { %13213 = vmatprep.mubr.msk.f32.mxu0 %vm215_vm0, %v15216_v19 }
  0x44   : > { %12510 = vmatmul.mubr.msk.f32.gmra.mrb[22].mxu1 %vm215_vm0, %v15226_v21 }
  0x45   : > { %13214 = vmatmul.mubr.msk.f32.gmra.mrb[6].mxu0 %vm215_vm0, %v15231_v22  ;;  %12512 = vmatprep.mubr.msk.f32.mxu1 %vm215_vm0, %v15234_v23 }
  0x46   : > { %13216 = vmatprep.mubr.msk.f32.mxu0 %vm215_vm0, %v15237_v24 }
  0x48   : > { %12513 = vmatmul.mubr.msk.f32.gmra.mrb[24].mxu1 %vm215_vm0, %v15246_v26 }
  0x49   : > { %13217 = vmatmul.mubr.msk.f32.gmra.mrb[8].mxu0 %vm215_vm0, %v15251_v28  ;;  %12515 = vmatprep.mubr.msk.f32.mxu1 %vm215_vm0, %v15254_v29 }
  0x4a   : > { %13219 = vmatprep.mubr.msk.f32.mxu0 %vm215_vm0, %v15257_v30  ;;  %v13888_v30 = vpack.c.bf16 %v10100_v7, %v10099_v12  ;;  %v15353_v7 = vld [vmem:[%s14966_s16 + $0x113] sm:$0xff] }
  0x4b   : > { %17989 = vst [vmem:[#allocation14_spill] sm:$0xff] %v15353_v7  ;;  %v573_v12 = vld [vmem:[%s14966_s16 + $0x31] sm:$0xff] }
  0x4c   : > { %12516 = vmatmul.mubr.msk.f32.gmra.mrb[26].mxu1 %vm215_vm0, %v15266_v31 }
  0x4d   : > { %13220 = vmatmul.mubr.msk.f32.gmra.mrb[10].mxu0 %vm215_vm0, %v15271_v32  ;;  %12518 = vmatprep.mubr.msk.f32.mxu1 %vm215_vm0, %v15274_v33  ;;  %v15336_v32 = vld [vmem:[%s14966_s16 + $0x10b] sm:$0xff] }
  0x4e   : > { %13222 = vmatprep.mubr.msk.f32.mxu0 %vm215_vm0, %v15277_v34  ;;  %v571_v34 = vld [vmem:[%s14966_s16 + $0x19] sm:$0xff]  ;;  %17988 = vst [vmem:[#allocation13_spill] sm:$0xff] %v15336_v32 }
  0x50   : > { %12519 = vmatmul.mubr.msk.f32.gmra.mrb[28].mxu1 %vm215_vm0, %v15286_v36 }
  0x51   : > { %13223 = vmatmul.mubr.msk.f32.gmra.mrb[12].mxu0 %vm215_vm0, %v15291_v39  ;;  %12521 = vmatprep.mubr.msk.f32.mxu1 %vm215_vm0, %v15294_v40  ;;  %v15332_v39 = vld [vmem:[%s14966_s16 + $0xfb] sm:$0xff] }
  0x52   : > { %13225 = vmatprep.mubr.msk.f32.mxu0 %vm215_vm0, %v15297_v0  ;;  %v570_v0 = vld [vmem:[%s14966_s16 + $0x9] sm:$0xff]  ;;  %17987 = vst [vmem:[#allocation12_spill] sm:$0xff] %v15332_v39 }
  0x54   : > { %12522 = vmatmul.mubr.msk.f32.gmra.mrb[30].mxu1 %vm215_vm0, %v15306_v1 }
  0x55   : > { %13226 = vmatmul.mubr.msk.f32.gmra.mrb[14].mxu0 %vm215_vm0, %v15311_v6  ;;  %12532 = vmatprep.mubr.msk.f32.mxu1 %vm215_vm0, %v569_v8  ;;  %v10133_v6 = vld [vmem:[%s17852_s1 + $0x60] sm:$0xff]  ;;  %v10134_v8 = vld [vmem:[%s17852_s1 + $0x68] sm:$0xff] }
  0x56   : > { %13228 = vmatprep.mubr.msk.f32.mxu0 %vm215_vm0, %v15315_v9  ;;  %v572_v9 = vld [vmem:[%s14966_s16 + $0x21] sm:$0xff]  ;;  %v15359_v28 = vpack.c.bf16 %v10134_v8, %v10133_v6 }
  0x57   : > { %v15375_v6 = vld [vmem:[%s14966_s16 + $0x13b] sm:$0xff] }
  0x58   : > { %12533 = vmatmul.mubr.msk.f32.vlgmr.msra.gmra.mrb[0].mxu1 %vm215_vm0, %v570_v0  ;;  %v15357_v0 = vld [vmem:[%s14966_s16 + $0x123] sm:$0xff]  ;;  %17992 = vst [vmem:[#allocation17_spill] sm:$0xff] %v15375_v6 }
  0x59   : > { %13229 = vmatmul.mubr.msk.f32.gmra.mrb[16].mxu0 %vm215_vm0, %v15332_v39  ;;  %13887 = vmatpush3.bf16.msra.mxu1 %v15022_v38  ;;  %17990 = vst [vmem:[#allocation15_spill] sm:$0xff] %v15357_v0  ;;  %v574_v38 = vld [vmem:[%s14966_s16 + $0x39] sm:$0xff]  ;;  %v15392_v8 = vld [vmem:[%s14966_s16 + $0x61] sm:$0xff] }
  0x5a   : > { %12535 = vmatprep.mubr.msk.f32.mxu1 %vm215_vm0, %v571_v34  ;;  %13231 = vmatprep.mubr.msk.f32.mxu0 %vm215_vm0, %v15336_v32  ;;  %v15369_v34 = vld [vmem:[%s14966_s16 + $0x12b] sm:$0xff]  ;;  %17995 = vst [vmem:[#allocation20_spill] sm:$0xff] %v15392_v8  ;;  %v10777_v39 = vld [vmem:[%s14966_s16 + $0x183] sm:$0xff] }
  0x5b   : > { %13889 = vmatprep.subr.bf16.mxu1 %v13888_v30  ;;  %17991 = vst [vmem:[#allocation16_spill] sm:$0xff] %v15369_v34  ;;  %v15372_v32 = vld [vmem:[%s14966_s16 + $0x49] sm:$0xff] }
  0x5c   : > { %12536 = vmatmul.mubr.msk.f32.gmra.mrb[2].mxu1 %vm215_vm0, %v572_v9  ;;  %v15384_v9 = vld [vmem:[%s14966_s16 + $0x51] sm:$0xff] }
  0x5d   : > { %13232 = vmatmul.mubr.msk.f32.gmra.mrb[18].mxu0 %vm215_vm0, %v15353_v7  ;;  %12538 = vmatprep.mubr.msk.f32.mxu1 %vm215_vm0, %v573_v12  ;;  %17993 = vst [vmem:[#allocation18_spill] sm:$0xff] %v15384_v9  ;;  %v15395_v12 = vld [vmem:[%s14966_s16 + $0x153] sm:$0xff] }
  0x5e   : > { %13234 = vmatprep.mubr.msk.f32.mxu0 %vm215_vm0, %v15357_v0  ;;  %13891 = vmatpush3.bf16.msra.mxu1 %v13888_v30  ;;  %v15389_v30 = vld [vmem:[%s14966_s16 + $0x143] sm:$0xff]  ;;  %17996 = vst [vmem:[#allocation21_spill] sm:$0xff] %v15395_v12  ;;  %v15415_v0 = vld [vmem:[%s14966_s16 + $0x16b] sm:$0xff] }
  0x5f   : > { %13893 = vmatprep.subr.bf16.mxu1 %v15359_v28  ;;  %17994 = vst [vmem:[#allocation19_spill] sm:$0xff] %v15389_v30  ;;  %18000 = vst [vmem:[#allocation25_spill] sm:$0xff] %v15415_v0  ;;  %v15432_v7 = vld [vmem:[%s14966_s16 + $0x91] sm:$0xff] }
  0x60   : > { %12539 = vmatmul.mubr.msk.f32.gmra.mrb[4].mxu1 %vm215_vm0, %v574_v38  ;;  %v15404_v38 = vld [vmem:[%s14966_s16 + $0x69] sm:$0xff]  ;;  %18003 = vst [vmem:[#allocation28_spill] sm:$0xff] %v15432_v7 }
  0x61   : > { %13235 = vmatmul.mubr.msk.f32.gmra.mrb[20].mxu0 %vm215_vm0, %v15369_v34  ;;  %12541 = vmatprep.mubr.msk.f32.mxu1 %vm215_vm0, %v15372_v32  ;;  %17997 = vst [vmem:[#allocation22_spill] sm:$0xff] %v15404_v38  ;;  %v15412_v34 = vld [vmem:[%s14966_s16 + $0x79] sm:$0xff] }
  0x62   : > { %13237 = vmatprep.mubr.msk.f32.mxu0 %vm215_vm0, %v15375_v6  ;;  %v15409_v6 = vld [vmem:[%s14966_s16 + $0x15b] sm:$0xff]  ;;  %17999 = vst [vmem:[#allocation24_spill] sm:$0xff] %v15412_v34 }
  0x63   : > { %17998 = vst [vmem:[#allocation23_spill] sm:$0xff] %v15409_v6 }
  0x64   : > { %12542 = vmatmul.mubr.msk.f32.gmra.mrb[6].mxu1 %vm215_vm0, %v15384_v9 }
  0x65   : > { %13238 = vmatmul.mubr.msk.f32.gmra.mrb[22].mxu0 %vm215_vm0, %v15389_v30  ;;  %12544 = vmatprep.mubr.msk.f32.mxu1 %vm215_vm0, %v15392_v8  ;;  %v15424_v30 = vld [vmem:[%s14966_s16 + $0x81] sm:$0xff]  ;;  %v15489_v8 = vld [vmem:[%s14966_s16 + $0x4c] sm:$0xff] }
  0x66   : > { %13240 = vmatprep.mubr.msk.f32.mxu0 %vm215_vm0, %v15395_v12  ;;  %18001 = vst [vmem:[#allocation26_spill] sm:$0xff] %v15424_v30  ;;  %v15429_v12 = vld [vmem:[%s14966_s16 + $0x173] sm:$0xff]  ;;  %18012 = vst [vmem:[#allocation37_spill] sm:$0xff] %v15489_v8 }
  0x67   : > { %18002 = vst [vmem:[#allocation27_spill] sm:$0xff] %v15429_v12 }
  0x68   : > { %12545 = vmatmul.mubr.msk.f32.gmra.mrb[8].mxu1 %vm215_vm0, %v15404_v38  ;;  %v10779_v38 = vld [vmem:[%s14966_s16 + $0x19b] sm:$0xff] }
  0x69   : > { %13241 = vmatmul.mubr.msk.f32.gmra.mrb[24].mxu0 %vm215_vm0, %v15409_v6  ;;  %12547 = vmatprep.mubr.msk.f32.mxu1 %vm215_vm0, %v15412_v34  ;;  %v15442_v6 = vld [vmem:[%s14966_s16 + $0x99] sm:$0xff]  ;;  %v15447_v34 = vld [vmem:[%s14966_s16 + $0xa9] sm:$0xff] }
  0x6a   : > { %13243 = vmatprep.mubr.msk.f32.mxu0 %vm215_vm0, %v15415_v0  ;;  %18004 = vst [vmem:[#allocation29_spill] sm:$0xff] %v15442_v6  ;;  %v10778_v0 = vld [vmem:[%s14966_s16 + $0x18b] sm:$0xff]  ;;  %18005 = vst [vmem:[#allocation30_spill] sm:$0xff] %v15447_v34 }
  0x6c   : > { %12548 = vmatmul.mubr.msk.f32.gmra.mrb[10].mxu1 %vm215_vm0, %v15424_v30  ;;  %v15464_v30 = vld [vmem:[%s14966_s16 + $0x34] sm:$0xff] }
  0x6d   : > { %13244 = vmatmul.mubr.msk.f32.gmra.mrb[26].mxu0 %vm215_vm0, %v15429_v12  ;;  %12550 = vmatprep.mubr.msk.f32.mxu1 %vm215_vm0, %v15432_v7  ;;  %v15456_v12 = vld [vmem:[%s14966_s16 + $0xb1] sm:$0xff]  ;;  %v15461_v7 = vld [vmem:[%s14966_s16 + $0xc1] sm:$0xff]  ;;  %18008 = vst [vmem:[#allocation33_spill] sm:$0xff] %v15464_v30 }
  0x6e   : > { %13246 = vmatprep.mubr.msk.f32.mxu0 %vm215_vm0, %v10777_v39  ;;  %18006 = vst [vmem:[#allocation31_spill] sm:$0xff] %v15456_v12  ;;  %v10780_v39 = vld [vmem:[%s14966_s16 + $0x1a3] sm:$0xff]  ;;  %18007 = vst [vmem:[#allocation32_spill] sm:$0xff] %v15461_v7 }
  0x70   : > { %12551 = vmatmul.mubr.msk.f32.gmra.mrb[12].mxu1 %vm215_vm0, %v15442_v6  ;;  %v15486_v6 = vld [vmem:[%s14966_s16 + $0xd9] sm:$0xff] }
  0x71   : > { %13247 = vmatmul.mubr.msk.f32.gmra.mrb[28].mxu0 %vm215_vm0, %v10778_v0  ;;  %12553 = vmatprep.mubr.msk.f32.mxu1 %vm215_vm0, %v15447_v34  ;;  %v10919_v0 = vld [vmem:[%s17852_s1 + $0x1f0] sm:$0xff]  ;;  %v10920_v34 = vld [vmem:[%s17852_s1 + $0x1f8] sm:$0xff]  ;;  %18011 = vst [vmem:[#allocation36_spill] sm:$0xff] %v15486_v6 }
  0x72   : > { %13249 = vmatprep.mubr.msk.f32.mxu0 %vm215_vm0, %v10779_v38  ;;  %v15478_v38 = vld [vmem:[%s14966_s16 + $0xc9] sm:$0xff]  ;;  %v13992_v9 = vpack.c.bf16 %v10920_v34, %v10919_v0  ;;  %v15504_v34 = vld [vmem:[%s14966_s16 + $0xe1] sm:$0xff]  ;;  %v15510_v0 = vld [vmem:[%s14966_s16 + $0x54] sm:$0xff] }
  0x73   : > { %18009 = vst [vmem:[#allocation34_spill] sm:$0xff] %v15478_v38  ;;  %18013 = vst [vmem:[#allocation38_spill] sm:$0xff] %v15504_v34 }
  0x74   : > { %12554 = vmatmul.mubr.msk.f32.gmra.mrb[14].mxu1 %vm215_vm0, %v15456_v12  ;;  %v15483_v12 = vld [vmem:[%s14966_s16 + $0x3c] sm:$0xff]  ;;  %18014 = vst [vmem:[#allocation39_spill] sm:$0xff] %v15510_v0 }
  0x75   : > { %13250 = vmatmul.mubr.msk.f32.gmra.mrb[30].mxu0 %vm215_vm0, %v10780_v39  ;;  %12556 = vmatprep.mubr.msk.f32.mxu1 %vm215_vm0, %v15461_v7  ;;  %18010 = vst [vmem:[#allocation35_spill] sm:$0xff] %v15483_v12  ;;  %v10985_v39 = vld [vmem:[%s17852_s1 + $0x200] sm:$0xff]  ;;  %v10986_v7 = vld [vmem:[%s17852_s1 + $0x208] sm:$0xff] }
  0x76   : > { %13260 = vmatprep.mubr.msk.f32.mxu0 %vm215_vm0, %v15464_v30  ;;  %v15513_v30 = vld [vmem:[%s14966_s16 + $0xf1] sm:$0xff] }
  0x77   : > { %18015 = vst [vmem:[#allocation40_spill] sm:$0xff] %v15513_v30 }
  0x78   : > { %12557 = vmatmul.mubr.msk.f32.gmra.mrb[16].mxu1 %vm215_vm0, %v15478_v38  ;;  %v15516_v38 = vld [vmem:[%s14966_s16 + $0x64] sm:$0xff] }
  0x79   : > { %13261 = vmatmul.mubr.msk.f32.vlgmr.msra.gmra.mrb[0].mxu0 %vm215_vm0, %v15483_v12  ;;  %12559 = vmatprep.mubr.msk.f32.mxu1 %vm215_vm0, %v15486_v6  ;;  %18016 = vst [vmem:[#allocation41_spill] sm:$0xff] %v15516_v38  ;;  %v15518_v12 = vpack.c.bf16 %v10986_v7, %v10985_v39  ;;  %v15535_v7 = vld [vmem:[%s14966_s16 + $0x109] sm:$0xff]  ;;  %v15538_v39 = vld [vmem:[%s14966_s16 + $0x7c] sm:$0xff] }
  0x7a   : > { %13263 = vmatprep.mubr.msk.f32.mxu0 %vm215_vm0, %v15489_v8  ;;  %13991 = vmatpush3.bf16.msra.mxu0 %v15196_v15  ;;  %v15527_v15 = vld [vmem:[%s14966_s16 + $0xf9] sm:$0xff]  ;;  %v15532_v8 = vld [vmem:[%s14966_s16 + $0x6c] sm:$0xff]  ;;  %18019 = vst [vmem:[#allocation44_spill] sm:$0xff] %v15535_v7  ;;  %18020 = vst [vmem:[#allocation45_spill] sm:$0xff] %v15538_v39 }
  0x7b   : > { %13993 = vmatprep.subr.bf16.mxu0 %v13992_v9  ;;  %18017 = vst [vmem:[#allocation42_spill] sm:$0xff] %v15527_v15  ;;  %18018 = vst [vmem:[#allocation43_spill] sm:$0xff] %v15532_v8 }
  0x7c   : > { %12560 = vmatmul.mubr.msk.f32.gmra.mrb[18].mxu1 %vm215_vm0, %v15504_v34  ;;  %v15658_v34 = vld [vmem:[%s14966_s16 + $0x10c] sm:$0xff] }
  0x7d   : > { %13264 = vmatmul.mubr.msk.f32.gmra.mrb[2].mxu0 %vm215_vm0, %v15510_v0  ;;  %12562 = vmatprep.mubr.msk.f32.mxu1 %vm215_vm0, %v15513_v30  ;;  %v15556_v0 = vld [vmem:[%s14966_s16 + $0x121] sm:$0xff]  ;;  %v15559_v30 = vld [vmem:[%s14966_s16 + $0x94] sm:$0xff] }
  0x7e   : > { %13266 = vmatprep.mubr.msk.f32.mxu0 %vm215_vm0, %v15516_v38  ;;  %13995 = vmatpush3.bf16.msra.mxu0 %v13992_v9  ;;  %v15548_v38 = vld [vmem:[%s14966_s16 + $0x111] sm:$0xff]  ;;  %v15553_v9 = vld [vmem:[%s14966_s16 + $0x84] sm:$0xff]  ;;  %18023 = vst [vmem:[#allocation48_spill] sm:$0xff] %v15556_v0  ;;  %18024 = vst [vmem:[#allocation49_spill] sm:$0xff] %v15559_v30 }
  0x7f   : > { %13997 = vmatprep.subr.bf16.mxu0 %v15518_v12  ;;  %18021 = vst [vmem:[#allocation46_spill] sm:$0xff] %v15548_v38  ;;  %18022 = vst [vmem:[#allocation47_spill] sm:$0xff] %v15553_v9 }
  0x80   : > { %12563 = vmatmul.mubr.msk.f32.gmra.mrb[20].mxu1 %vm215_vm0, %v15527_v15  ;;  %v15579_v15 = vld [vmem:[%s14966_s16 + $0xac] sm:$0xff] }
  0x81   : > { %13267 = vmatmul.mubr.msk.f32.gmra.mrb[4].mxu0 %vm215_vm0, %v15532_v8  ;;  %12565 = vmatprep.mubr.msk.f32.mxu1 %vm215_vm0, %v15535_v7  ;;  %v15568_v8 = vld [vmem:[%s14966_s16 + $0x129] sm:$0xff]  ;;  %v15576_v7 = vld [vmem:[%s14966_s16 + $0x139] sm:$0xff]  ;;  %18028 = vst [vmem:[#allocation53_spill] sm:$0xff] %v15579_v15 }
  0x82   : > { %13269 = vmatprep.mubr.msk.f32.mxu0 %vm215_vm0, %v15538_v39  ;;  %18025 = vst [vmem:[#allocation50_spill] sm:$0xff] %v15568_v8  ;;  %v15573_v39 = vld [vmem:[%s14966_s16 + $0x9c] sm:$0xff]  ;;  %18027 = vst [vmem:[#allocation52_spill] sm:$0xff] %v15576_v7 }
  0x83   : > { %18026 = vst [vmem:[#allocation51_spill] sm:$0xff] %v15573_v39 }
  0x84   : > { %12566 = vmatmul.mubr.msk.f32.gmra.mrb[22].mxu1 %vm215_vm0, %v15548_v38  ;;  %v15599_v38 = vld [vmem:[%s14966_s16 + $0xc4] sm:$0xff] }
  0x85   : > { %13270 = vmatmul.mubr.msk.f32.gmra.mrb[6].mxu0 %vm215_vm0, %v15553_v9  ;;  %12568 = vmatprep.mubr.msk.f32.mxu1 %vm215_vm0, %v15556_v0  ;;  %v15588_v9 = vld [vmem:[%s14966_s16 + $0x141] sm:$0xff]  ;;  %v15596_v0 = vld [vmem:[%s14966_s16 + $0x151] sm:$0xff]  ;;  %18032 = vst [vmem:[#allocation57_spill] sm:$0xff] %v15599_v38 }
  0x86   : > { %13272 = vmatprep.mubr.msk.f32.mxu0 %vm215_vm0, %v15559_v30  ;;  %18029 = vst [vmem:[#allocation54_spill] sm:$0xff] %v15588_v9  ;;  %v15593_v30 = vld [vmem:[%s14966_s16 + $0xb4] sm:$0xff]  ;;  %18031 = vst [vmem:[#allocation56_spill] sm:$0xff] %v15596_v0 }
  0x87   : > { %18030 = vst [vmem:[#allocation55_spill] sm:$0xff] %v15593_v30 }
  0x88   : > { %12569 = vmatmul.mubr.msk.f32.gmra.mrb[24].mxu1 %vm215_vm0, %v15568_v8  ;;  %v15619_v8 = vld [vmem:[%s14966_s16 + $0xdc] sm:$0xff] }
  0x89   : > { %13273 = vmatmul.mubr.msk.f32.gmra.mrb[8].mxu0 %vm215_vm0, %v15573_v39  ;;  %12571 = vmatprep.mubr.msk.f32.mxu1 %vm215_vm0, %v15576_v7  ;;  %v15608_v39 = vld [vmem:[%s14966_s16 + $0x159] sm:$0xff]  ;;  %v15616_v7 = vld [vmem:[%s14966_s16 + $0x169] sm:$0xff]  ;;  %18036 = vst [vmem:[#allocation61_spill] sm:$0xff] %v15619_v8 }
  0x8a   : > { %13275 = vmatprep.mubr.msk.f32.mxu0 %vm215_vm0, %v15579_v15  ;;  %18033 = vst [vmem:[#allocation58_spill] sm:$0xff] %v15608_v39  ;;  %v15613_v15 = vld [vmem:[%s14966_s16 + $0xcc] sm:$0xff]  ;;  %18035 = vst [vmem:[#allocation60_spill] sm:$0xff] %v15616_v7 }
  0x8b   : > { %18034 = vst [vmem:[#allocation59_spill] sm:$0xff] %v15613_v15 }
  0x8c   : > { %12572 = vmatmul.mubr.msk.f32.gmra.mrb[26].mxu1 %vm215_vm0, %v15588_v9  ;;  %v15637_v9 = vld [vmem:[%s14966_s16 + $0xf4] sm:$0xff] }
  0x8d   : > { %13276 = vmatmul.mubr.msk.f32.gmra.mrb[10].mxu0 %vm215_vm0, %v15593_v30  ;;  %12574 = vmatprep.mubr.msk.f32.mxu1 %vm215_vm0, %v15596_v0  ;;  %v15633_v30 = vld [vmem:[%s14966_s16 + $0xe4] sm:$0xff]  ;;  %18039 = vst [vmem:[#allocation64_spill] sm:$0xff] %v15637_v9 }
  0x8e   : > { %13278 = vmatprep.mubr.msk.f32.mxu0 %vm215_vm0, %v15599_v38  ;;  %v15628_v38 = vld [vmem:[%s14966_s16 + $0x171] sm:$0xff]  ;;  %18038 = vst [vmem:[#allocation63_spill] sm:$0xff] %v15633_v30  ;;  %v959_v0 = vld [vmem:[%s14966_s16 + $0x2] sm:$0xff] }
  0x8f   : > { %18037 = vst [vmem:[#allocation62_spill] sm:$0xff] %v15628_v38 }
  0x90   : > { %12575 = vmatmul.mubr.msk.f32.gmra.mrb[28].mxu1 %vm215_vm0, %v15608_v39  ;;  %v961_v39 = vld [vmem:[%s14966_s16 + $0x1a] sm:$0xff] }
  0x91   : > { %13279 = vmatmul.mubr.msk.f32.gmra.mrb[12].mxu0 %vm215_vm0, %v15613_v15  ;;  %12577 = vmatprep.mubr.msk.f32.mxu1 %vm215_vm0, %v15616_v7  ;;  %v10135_v15 = vld [vmem:[%s17852_s1 + $0x70] sm:$0xff]  ;;  %v10136_v7 = vld [vmem:[%s17852_s1 + $0x78] sm:$0xff] }
  0x92   : > { %13281 = vmatprep.mubr.msk.f32.mxu0 %vm215_vm0, %v15619_v8  ;;  %v960_v8 = vld [vmem:[%s14966_s16 + $0xa] sm:$0xff]  ;;  %v13896_v6 = vpack.c.bf16 %v10136_v7, %v10135_v15 }
  0x93   : > { %v15678_v15 = vld [vmem:[%s14966_s16 + $0x124] sm:$0xff] }
  0x94   : > { %12578 = vmatmul.mubr.msk.f32.gmra.mrb[30].mxu1 %vm215_vm0, %v15628_v38  ;;  %v15654_v38 = vld [vmem:[%s14966_s16 + $0xfc] sm:$0xff] }
  0x95   : > { %13282 = vmatmul.mubr.msk.f32.gmra.mrb[14].mxu0 %vm215_vm0, %v15633_v30  ;;  %12588 = vmatprep.mubr.msk.f32.mxu1 %vm215_vm0, %v959_v0  ;;  %v10169_v30 = vld [vmem:[%s17852_s1 + $0x80] sm:$0xff]  ;;  %v10170_v0 = vld [vmem:[%s17852_s1 + $0x88] sm:$0xff] }
  0x96   : > { %13284 = vmatprep.mubr.msk.f32.mxu0 %vm215_vm0, %v15637_v9  ;;  %v962_v9 = vld [vmem:[%s14966_s16 + $0x22] sm:$0xff]  ;;  %v15680_v7 = vpack.c.bf16 %v10170_v0, %v10169_v30  ;;  %v18047_v0 = vld [vmem:[#allocation20_spill] sm:$0xff] }
  0x97   : > { %v10847_v30 = vld [vmem:[%s14966_s16 + $0x19c] sm:$0xff] }
  0x98   : > { %12589 = vmatmul.mubr.msk.f32.vlgmr.msra.gmra.mrb[0].mxu1 %vm215_vm0, %v960_v8  ;;  %v15675_v8 = vld [vmem:[%s14966_s16 + $0x114] sm:$0xff] }
  0x99   : > { %13285 = vmatmul.mubr.msk.f32.gmra.mrb[16].mxu0 %vm215_vm0, %v15654_v38  ;;  %13895 = vmatpush3.bf16.msra.mxu1 %v15359_v28  ;;  %v15690_v28 = vld [vmem:[%s14966_s16 + $0x12c] sm:$0xff] }
  0x9a   : > { %12591 = vmatprep.mubr.msk.f32.mxu1 %vm215_vm0, %v961_v39  ;;  %13287 = vmatprep.mubr.msk.f32.mxu0 %vm215_vm0, %v15658_v34  ;;  %v15693_v39 = vld [vmem:[%s14966_s16 + $0x13c] sm:$0xff] }
  0x9b   : > { %13897 = vmatprep.subr.bf16.mxu1 %v13896_v6 }
  0x9c   : > { %12592 = vmatmul.mubr.msk.f32.gmra.mrb[2].mxu1 %vm215_vm0, %v962_v9  ;;  %v10238_v9 = vld [vmem:[%s17852_s1 + $0xa8] sm:$0xff] }
  0x9d   : > { %13288 = vmatmul.mubr.msk.f32.gmra.mrb[18].mxu0 %vm215_vm0, %v15675_v8  ;;  %12594 = vmatprep.mubr.msk.f32.mxu1 %vm215_vm0, %v14973_v20  ;;  %v15705_v20 = vld [vmem:[%s14966_s16 + $0x144] sm:$0xff] }
  0x9e   : > { %13290 = vmatprep.mubr.msk.f32.mxu0 %vm215_vm0, %v15678_v15  ;;  %13899 = vmatpush3.bf16.msra.mxu1 %v13896_v6  ;;  %v15708_v6 = vld [vmem:[%s14966_s16 + $0x154] sm:$0xff] }
  0x9f   : > { %13901 = vmatprep.subr.bf16.mxu1 %v15680_v7 }
  0xa0   : > { %12595 = vmatmul.mubr.msk.f32.gmra.mrb[4].mxu1 %vm215_vm0, %v14990_v25  ;;  %v15719_v25 = vld [vmem:[%s14966_s16 + $0x15c] sm:$0xff] }
  0xa1   : > { %13291 = vmatmul.mubr.msk.f32.gmra.mrb[20].mxu0 %vm215_vm0, %v15690_v28  ;;  %12597 = vmatprep.mubr.msk.f32.mxu1 %vm215_vm0, %v14994_v27  ;;  %v15722_v27 = vld [vmem:[%s14966_s16 + $0x16c] sm:$0xff] }
  0xa2   : > { %13293 = vmatprep.mubr.msk.f32.mxu0 %vm215_vm0, %v15693_v39 }
  0xa4   : > { %12598 = vmatmul.mubr.msk.f32.gmra.mrb[6].mxu1 %vm215_vm0, %v15016_v35  ;;  %v15733_v35 = vld [vmem:[%s14966_s16 + $0x174] sm:$0xff] }
  0xa5   : > { %13294 = vmatmul.mubr.msk.f32.gmra.mrb[22].mxu0 %vm215_vm0, %v15705_v20  ;;  %12600 = vmatprep.mubr.msk.f32.mxu1 %vm215_vm0, %v15020_v37  ;;  %v10845_v37 = vld [vmem:[%s14966_s16 + $0x184] sm:$0xff] }
  0xa6   : > { %13296 = vmatprep.mubr.msk.f32.mxu0 %vm215_vm0, %v15708_v6 }
  0xa8   : > { %12601 = vmatmul.mubr.msk.f32.gmra.mrb[8].mxu1 %vm215_vm0, %v15034_v41  ;;  %v10846_v41 = vld [vmem:[%s14966_s16 + $0x18c] sm:$0xff] }
  0xa9   : > { %13297 = vmatmul.mubr.msk.f32.gmra.mrb[24].mxu0 %vm215_vm0, %v15719_v25  ;;  %12603 = vmatprep.mubr.msk.f32.mxu1 %vm215_vm0, %v15040_v43  ;;  %v10848_v43 = vld [vmem:[%s14966_s16 + $0x1a4] sm:$0xff] }
  0xaa   : > { %13299 = vmatprep.mubr.msk.f32.mxu0 %vm215_vm0, %v15722_v27 }
  0xac   : > { %12604 = vmatmul.mubr.msk.f32.gmra.mrb[10].mxu1 %vm215_vm0, %v15055_v45  ;;  %v10987_v45 = vld [vmem:[%s17852_s1 + $0x210] sm:$0xff] }
  0xad   : > { %13300 = vmatmul.mubr.msk.f32.gmra.mrb[26].mxu0 %vm215_vm0, %v15733_v35  ;;  %12606 = vmatprep.mubr.msk.f32.mxu1 %vm215_vm0, %v15061_v47  ;;  %v10988_v47 = vld [vmem:[%s17852_s1 + $0x218] sm:$0xff] }
  0xae   : > { %13302 = vmatprep.mubr.msk.f32.mxu0 %vm215_vm0, %v10845_v37  ;;  %v18049_v37 = vld [vmem:[#allocation22_spill] sm:$0xff] }
  0xb0   : > { %12607 = vmatmul.mubr.msk.f32.gmra.mrb[12].mxu1 %vm215_vm0, %v15075_v49  ;;  %v14000_v49 = vpack.c.bf16 %v10988_v47, %v10987_v45  ;;  %v18053_v45 = vld [vmem:[#allocation26_spill] sm:$0xff]  ;;  %v18054_v47 = vld [vmem:[#allocation13_spill] sm:$0xff] }
  0xb1   : > { %13303 = vmatmul.mubr.msk.f32.gmra.mrb[28].mxu0 %vm215_vm0, %v10846_v41  ;;  %12609 = vmatprep.mubr.msk.f32.mxu1 %vm215_vm0, %v15081_v51  ;;  %v11053_v51 = vld [vmem:[%s17852_s1 + $0x220] sm:$0xff]  ;;  %v18050_v41 = vld [vmem:[#allocation11_spill] sm:$0xff] }
  0xb2   : > { %13305 = vmatprep.mubr.msk.f32.mxu0 %vm215_vm0, %v10847_v30  ;;  %v18051_v30 = vld [vmem:[#allocation24_spill] sm:$0xff] }
  0xb4   : > { %12610 = vmatmul.mubr.msk.f32.gmra.mrb[14].mxu1 %vm215_vm0, %v15095_v53  ;;  %v11054_v53 = vld [vmem:[%s17852_s1 + $0x228] sm:$0xff] }
  0xb5   : > { %13306 = vmatmul.mubr.msk.f32.gmra.mrb[30].mxu0 %vm215_vm0, %v10848_v43  ;;  %12612 = vmatprep.mubr.msk.f32.mxu1 %vm215_vm0, %v15101_v55  ;;  %v15783_v55 = vpack.c.bf16 %v11054_v53, %v11053_v51  ;;  %v18052_v43 = vld [vmem:[#allocation12_spill] sm:$0xff]  ;;  %v18056_v51 = vld [vmem:[#allocation14_spill] sm:$0xff]  ;;  %v18057_v53 = vld [vmem:[#allocation29_spill] sm:$0xff] }
  0xb6   : > { %13316 = vmatprep.mubr.msk.f32.mxu0 %vm215_vm0, %v15037_v42  ;;  %v15781_v42 = vld [vmem:[%s14966_s16 + $0xf2] sm:$0xff] }
  0xb8   : > { %12613 = vmatmul.mubr.msk.f32.gmra.mrb[16].mxu1 %vm215_vm0, %v15115_v57  ;;  %v15826_v57 = vld [vmem:[%s14966_s16 + $0x13a] sm:$0xff] }
  0xb9   : > { %13317 = vmatmul.mubr.msk.f32.vlgmr.msra.gmra.mrb[0].mxu0 %vm215_vm0, %v15050_v44  ;;  %12615 = vmatprep.mubr.msk.f32.mxu1 %vm215_vm0, %v15121_v59  ;;  %v15792_v44 = vld [vmem:[%s14966_s16 + $0xfa] sm:$0xff]  ;;  %v15854_v59 = vld [vmem:[%s14966_s16 + $0x16a] sm:$0xff] }
  0xba   : > { %13319 = vmatprep.mubr.msk.f32.mxu0 %vm215_vm0, %v15058_v46  ;;  %13999 = vmatpush3.bf16.msra.mxu0 %v15518_v12  ;;  %v15797_v46 = vld [vmem:[%s14966_s16 + $0x10a] sm:$0xff]  ;;  %v10237_v12 = vld [vmem:[%s17852_s1 + $0xa0] sm:$0xff] }
  0xbb   : > { %14001 = vmatprep.subr.bf16.mxu0 %v14000_v49 }
  0xbc   : > { %12616 = vmatmul.mubr.msk.f32.gmra.mrb[18].mxu1 %vm215_vm0, %v15135_v61  ;;  %v1349_v61 = vld [vmem:[%s14966_s16 + $0x3] sm:$0xff] }
  0xbd   : > { %13320 = vmatmul.mubr.msk.f32.gmra.mrb[2].mxu0 %vm215_vm0, %v15070_v48  ;;  %12618 = vmatprep.mubr.msk.f32.mxu1 %vm215_vm0, %v15781_v42  ;;  %v15807_v48 = vld [vmem:[%s14966_s16 + $0x112] sm:$0xff] }
  0xbe   : > { %13322 = vmatprep.mubr.msk.f32.mxu0 %vm215_vm0, %v15078_v50  ;;  %14003 = vmatpush3.bf16.msra.mxu0 %v14000_v49  ;;  %v15812_v50 = vld [vmem:[%s14966_s16 + $0x122] sm:$0xff]  ;;  %v18055_v49 = vld [vmem:[#allocation28_spill] sm:$0xff] }
  0xbf   : > { %14005 = vmatprep.subr.bf16.mxu0 %v15783_v55 }
  0xc0   : > { %12619 = vmatmul.mubr.msk.f32.gmra.mrb[20].mxu1 %vm215_vm0, %v15792_v44 }
  0xc1   : > { %13323 = vmatmul.mubr.msk.f32.gmra.mrb[4].mxu0 %vm215_vm0, %v15090_v52  ;;  %12621 = vmatprep.mubr.msk.f32.mxu1 %vm215_vm0, %v15797_v46  ;;  %v15821_v52 = vld [vmem:[%s14966_s16 + $0x12a] sm:$0xff] }
  0xc2   : > { %13325 = vmatprep.mubr.msk.f32.mxu0 %vm215_vm0, %v15098_v54  ;;  %v15835_v54 = vld [vmem:[%s14966_s16 + $0x142] sm:$0xff] }
  0xc4   : > { %12622 = vmatmul.mubr.msk.f32.gmra.mrb[22].mxu1 %vm215_vm0, %v15807_v48 }
  0xc5   : > { %13326 = vmatmul.mubr.msk.f32.gmra.mrb[6].mxu0 %vm215_vm0, %v15110_v56  ;;  %12624 = vmatprep.mubr.msk.f32.mxu1 %vm215_vm0, %v15812_v50  ;;  %v15840_v56 = vld [vmem:[%s14966_s16 + $0x152] sm:$0xff] }
  0xc6   : > { %13328 = vmatprep.mubr.msk.f32.mxu0 %vm215_vm0, %v15118_v58  ;;  %v15849_v58 = vld [vmem:[%s14966_s16 + $0x15a] sm:$0xff] }
  0xc8   : > { %12625 = vmatmul.mubr.msk.f32.gmra.mrb[24].mxu1 %vm215_vm0, %v15821_v52 }
  0xc9   : > { %13329 = vmatmul.mubr.msk.f32.gmra.mrb[8].mxu0 %vm215_vm0, %v15130_v60  ;;  %12627 = vmatprep.mubr.msk.f32.mxu1 %vm215_vm0, %v15826_v57  ;;  %v15863_v60 = vld [vmem:[%s14966_s16 + $0x172] sm:$0xff] }
  0xca   : > { %13331 = vmatprep.mubr.msk.f32.mxu0 %vm215_vm0, %v15138_v62  ;;  %v10171_v62 = vld [vmem:[%s17852_s1 + $0x90] sm:$0xff] }
  0xcc   : > { %12628 = vmatmul.mubr.msk.f32.gmra.mrb[26].mxu1 %vm215_vm0, %v15835_v54 }
  0xcd   : > { %13332 = vmatmul.mubr.msk.f32.gmra.mrb[10].mxu0 %vm215_vm0, %v15156_v2  ;;  %12630 = vmatprep.mubr.msk.f32.mxu1 %vm215_vm0, %v15840_v56  ;;  %v10172_v2 = vld [vmem:[%s17852_s1 + $0x98] sm:$0xff] }
  0xce   : > { %13334 = vmatprep.mubr.msk.f32.mxu0 %vm215_vm0, %v15164_v4  ;;  %v1350_v4 = vld [vmem:[%s14966_s16 + $0xb] sm:$0xff] }
  0xd0   : > { %12631 = vmatmul.mubr.msk.f32.gmra.mrb[28].mxu1 %vm215_vm0, %v15849_v58 }
  0xd1   : > { %13335 = vmatmul.mubr.msk.f32.gmra.mrb[12].mxu0 %vm215_vm0, %v15182_v10  ;;  %12633 = vmatprep.mubr.msk.f32.mxu1 %vm215_vm0, %v15854_v59  ;;  %v1351_v10 = vld [vmem:[%s14966_s16 + $0x1b] sm:$0xff] }
  0xd2   : > { %13337 = vmatprep.mubr.msk.f32.mxu0 %vm215_vm0, %v15191_v13  ;;  %v13904_v13 = vpack.c.bf16 %v10172_v2, %v10171_v62  ;;  %v18060_v62 = vld [vmem:[#allocation16_spill] sm:$0xff]  ;;  %v18061_v2 = vld [vmem:[#allocation31_spill] sm:$0xff] }
  0xd4   : > { %12634 = vmatmul.mubr.msk.f32.gmra.mrb[30].mxu1 %vm215_vm0, %v15863_v60 }
  0xd5   : > { %13338 = vmatmul.mubr.msk.f32.gmra.mrb[14].mxu0 %vm215_vm0, %v15205_v16  ;;  %12644 = vmatprep.mubr.msk.f32.mxu1 %vm215_vm0, %v1349_v61  ;;  %v1352_v16 = vld [vmem:[%s14966_s16 + $0x23] sm:$0xff] }
  0xd6   : > { %13340 = vmatprep.mubr.msk.f32.mxu0 %vm215_vm0, %v15213_v18  ;;  %v15897_v18 = vpack.c.bf16 %v10238_v9, %v10237_v12  ;;  %v18059_v61 = vld [vmem:[#allocation30_spill] sm:$0xff]  ;;  %v18066_v9 = vld [vmem:[#allocation21_spill] sm:$0xff] }
  0xd7   : > { %v18065_v12 = vld [vmem:[#allocation34_spill] sm:$0xff] }
  0xd8   : > { %12645 = vmatmul.mubr.msk.f32.vlgmr.msra.gmra.mrb[0].mxu1 %vm215_vm0, %v1350_v4  ;;  %v18062_v4 = vld [vmem:[#allocation17_spill] sm:$0xff] }
  0xd9   : > { %13341 = vmatmul.mubr.msk.f32.gmra.mrb[16].mxu0 %vm215_vm0, %v15226_v21  ;;  %13903 = vmatpush3.bf16.msra.mxu1 %v15680_v7  ;;  %v10916_v21 = vld [vmem:[%s14966_s16 + $0x1b8] sm:$0xff]  ;;  %v18048_v7 = vld [vmem:[#allocation10_spill] sm:$0xff] }
  0xda   : > { %12647 = vmatprep.mubr.msk.f32.mxu1 %vm215_vm0, %v1351_v10  ;;  %13343 = vmatprep.mubr.msk.f32.mxu0 %vm215_vm0, %v15234_v23  ;;  %v11055_v23 = vld [vmem:[%s17852_s1 + $0x230] sm:$0xff] }
  0xdb   : > { %13905 = vmatprep.subr.bf16.mxu1 %v13904_v13  ;;  %v18063_v10 = vld [vmem:[#allocation32_spill] sm:$0xff] }
  0xdc   : > { %12648 = vmatmul.mubr.msk.f32.gmra.mrb[2].mxu1 %vm215_vm0, %v1352_v16  ;;  %v18067_v16 = vld [vmem:[#allocation36_spill] sm:$0xff] }
  0xdd   : > { %13344 = vmatmul.mubr.msk.f32.gmra.mrb[18].mxu0 %vm215_vm0, %v15246_v26  ;;  %12650 = vmatprep.mubr.msk.f32.mxu1 %vm215_vm0, %v15141_v63  ;;  %v15924_v63 = vld [vmem:[%s14966_s16 + $0x180] sm:$0xff]  ;;  %v18043_v26 = vld [vmem:[#allocation7_spill] sm:$0xff] }
  0xde   : > { %13346 = vmatprep.mubr.msk.f32.mxu0 %vm215_vm0, %v15254_v29  ;;  %13907 = vmatpush3.bf16.msra.mxu1 %v13904_v13  ;;  %v18064_v13 = vld [vmem:[#allocation19_spill] sm:$0xff] }
  0xdf   : > { %13909 = vmatprep.subr.bf16.mxu1 %v15897_v18 }
  0xe0   : > { %12651 = vmatmul.mubr.msk.f32.gmra.mrb[4].mxu1 %vm215_vm0, %v15161_v3  ;;  %v15935_v3 = vld [vmem:[%s14966_s16 + $0x188] sm:$0xff] }
  0xe1   : > { %13347 = vmatmul.mubr.msk.f32.gmra.mrb[20].mxu0 %vm215_vm0, %v15266_v31  ;;  %12653 = vmatprep.mubr.msk.f32.mxu1 %vm215_vm0, %v15167_v5  ;;  %v10913_v5 = vld [vmem:[%s14966_s16 + $0x198] sm:$0xff]  ;;  %v18044_v31 = vld [vmem:[#allocation8_spill] sm:$0xff] }
  0xe2   : > { %13349 = vmatprep.mubr.msk.f32.mxu0 %vm215_vm0, %v15274_v33  ;;  %v11121_v33 = vld [vmem:[%s17852_s1 + $0x240] sm:$0xff] }
  0xe4   : > { %12654 = vmatmul.mubr.msk.f32.gmra.mrb[6].mxu1 %vm215_vm0, %v15188_v11  ;;  %v10914_v11 = vld [vmem:[%s14966_s16 + $0x1a0] sm:$0xff] }
  0xe5   : > { %13350 = vmatmul.mubr.msk.f32.gmra.mrb[22].mxu0 %vm215_vm0, %v15286_v36  ;;  %12656 = vmatprep.mubr.msk.f32.mxu1 %vm215_vm0, %v15194_v14  ;;  %v10915_v14 = vld [vmem:[%s14966_s16 + $0x1b0] sm:$0xff]  ;;  %v11122_v36 = vld [vmem:[%s17852_s1 + $0x248] sm:$0xff] }
  0xe6   : > { %13352 = vmatprep.mubr.msk.f32.mxu0 %vm215_vm0, %v15294_v40  ;;  %v18045_v40 = vld [vmem:[#allocation18_spill] sm:$0xff] }
  0xe8   : > { %12657 = vmatmul.mubr.msk.f32.gmra.mrb[8].mxu1 %vm215_vm0, %v15210_v17  ;;  %v18040_v17 = vld [vmem:[#allocation4_spill] sm:$0xff] }
  0xe9   : > { %13353 = vmatmul.mubr.msk.f32.gmra.mrb[24].mxu0 %vm215_vm0, %v15306_v1  ;;  %12659 = vmatprep.mubr.msk.f32.mxu1 %vm215_vm0, %v15216_v19  ;;  %v18041_v19 = vld [vmem:[#allocation5_spill] sm:$0xff] }
  0xea   : > { %13355 = vmatprep.mubr.msk.f32.mxu0 %vm215_vm0, %v15924_v63  ;;  %v18046_v1 = vld [vmem:[#allocation9_spill] sm:$0xff] }
  0xec   : > { %12660 = vmatmul.mubr.msk.f32.gmra.mrb[10].mxu1 %vm215_vm0, %v15231_v22  ;;  %v18042_v22 = vld [vmem:[#allocation6_spill] sm:$0xff] }
  0xed   : > { %13356 = vmatmul.mubr.msk.f32.gmra.mrb[26].mxu0 %vm215_vm0, %v15935_v3  ;;  %12662 = vmatprep.mubr.msk.f32.mxu1 %vm215_vm0, %v15237_v24  ;;  %v11056_v24 = vld [vmem:[%s17852_s1 + $0x238] sm:$0xff] }
  0xee   : > { %13358 = vmatprep.mubr.msk.f32.mxu0 %vm215_vm0, %v10913_v5  ;;  %v14008_v29 = vpack.c.bf16 %v11056_v24, %v11055_v23  ;;  %v18068_v5 = vld [vmem:[#allocation23_spill] sm:$0xff]  ;;  %v10240_v23 = vld [vmem:[%s17852_s1 + $0xb8] sm:$0xff]  ;;  %v18073_v24 = vld [vmem:[#allocation42_spill] sm:$0xff] }
  0xf0   : > { %12663 = vmatmul.mubr.msk.f32.gmra.mrb[12].mxu1 %vm215_vm0, %v18040_v17  ;;  %v18071_v17 = vld [vmem:[#allocation40_spill] sm:$0xff] }
  0xf1   : > { %13359 = vmatmul.mubr.msk.f32.gmra.mrb[28].mxu0 %vm215_vm0, %v10914_v11  ;;  %12665 = vmatprep.mubr.msk.f32.mxu1 %vm215_vm0, %v18041_v19  ;;  %v18069_v11 = vld [vmem:[#allocation38_spill] sm:$0xff] }
  0xf2   : > { %13361 = vmatprep.mubr.msk.f32.mxu0 %vm215_vm0, %v10915_v14  ;;  %v18070_v14 = vld [vmem:[#allocation25_spill] sm:$0xff]  ;;  %v1739_v19 = vld [vmem:[%s14966_s16 + $0x4] sm:$0xff] }
  0xf4   : > { %12666 = vmatmul.mubr.msk.f32.gmra.mrb[14].mxu1 %vm215_vm0, %v18042_v22  ;;  %v10239_v22 = vld [vmem:[%s17852_s1 + $0xb0] sm:$0xff] }
  0xf5   : > { %13362 = vmatmul.mubr.msk.f32.gmra.mrb[30].mxu0 %vm215_vm0, %v10916_v21  ;;  %12668 = vmatprep.mubr.msk.f32.mxu1 %vm215_vm0, %v18043_v26  ;;  %v18072_v21 = vld [vmem:[#allocation27_spill] sm:$0xff] }
  0xf6   : > { %13372 = vmatprep.mubr.msk.f32.mxu0 %vm215_vm0, %v15372_v32  ;;  %v15982_v32 = vpack.c.bf16 %v11122_v36, %v11121_v33  ;;  %v1740_v26 = vld [vmem:[%s14966_s16 + $0xc] sm:$0xff]  ;;  %v13912_v33 = vpack.c.bf16 %v10240_v23, %v10239_v22  ;;  %v10305_v36 = vld [vmem:[%s17852_s1 + $0xc0] sm:$0xff] }
  0xf7   : > { %v18095_v22 = vld [vmem:[#allocation55_spill] sm:$0xff]  ;;  %v11123_v23 = vld [vmem:[%s17852_s1 + $0x250] sm:$0xff] }
  0xf8   : > { %12669 = vmatmul.mubr.msk.f32.gmra.mrb[16].mxu1 %vm215_vm0, %v18044_v31  ;;  %v1741_v31 = vld [vmem:[%s14966_s16 + $0x1c] sm:$0xff] }
  0xf9   : > { %13373 = vmatmul.mubr.msk.f32.vlgmr.msra.gmra.mrb[0].mxu0 %vm215_vm0, %v18045_v40  ;;  %12671 = vmatprep.mubr.msk.f32.mxu1 %vm215_vm0, %v18046_v1  ;;  %v10306_v40 = vld [vmem:[%s17852_s1 + $0xc8] sm:$0xff]  ;;  %v18075_v1 = vld [vmem:[#allocation46_spill] sm:$0xff] }
  0xfa   : > { %13375 = vmatprep.mubr.msk.f32.mxu0 %vm215_vm0, %v18047_v0  ;;  %14007 = vmatpush3.bf16.msra.mxu0 %v15783_v55  ;;  %v18058_v55 = vld [vmem:[#allocation15_spill] sm:$0xff] }
  0xfb   : > { %14009 = vmatprep.subr.bf16.mxu0 %v14008_v29  ;;  %v1742_v0 = vld [vmem:[%s14966_s16 + $0x24] sm:$0xff] }
  0xfc   : > { %12672 = vmatmul.mubr.msk.f32.gmra.mrb[18].mxu1 %vm215_vm0, %v18048_v7  ;;  %v18076_v7 = vld [vmem:[#allocation48_spill] sm:$0xff] }
  0xfd   : > { %13376 = vmatmul.mubr.msk.f32.gmra.mrb[2].mxu0 %vm215_vm0, %v18049_v37  ;;  %12674 = vmatprep.mubr.msk.f32.mxu1 %vm215_vm0, %v18050_v41  ;;  %v16063_v37 = vpack.c.bf16 %v10306_v40, %v10305_v36  ;;  %v18077_v41 = vld [vmem:[#allocation50_spill] sm:$0xff]  ;;  %v18097_v36 = vld [vmem:[#allocation59_spill] sm:$0xff] }
  0xfe   : > { %13378 = vmatprep.mubr.msk.f32.mxu0 %vm215_vm0, %v18051_v30  ;;  %14011 = vmatpush3.bf16.msra.mxu0 %v14008_v29  ;;  %v18074_v29 = vld [vmem:[#allocation44_spill] sm:$0xff]  ;;  %v18078_v30 = vld [vmem:[#allocation33_spill] sm:$0xff]  ;;  %v11189_v40 = vld [vmem:[%s17852_s1 + $0x260] sm:$0xff] }
  0xff   : > { %14013 = vmatprep.subr.bf16.mxu0 %v15982_v32 }
 0x100   : > { %12675 = vmatmul.mubr.msk.f32.gmra.mrb[20].mxu1 %vm215_vm0, %v18052_v43  ;;  %v18079_v43 = vld [vmem:[#allocation52_spill] sm:$0xff] }
 0x101   : > { %13379 = vmatmul.mubr.msk.f32.gmra.mrb[4].mxu0 %vm215_vm0, %v18053_v45  ;;  %12677 = vmatprep.mubr.msk.f32.mxu1 %vm215_vm0, %v18054_v47  ;;  %v18081_v45 = vld [vmem:[#allocation54_spill] sm:$0xff]  ;;  %v18082_v47 = vld [vmem:[#allocation37_spill] sm:$0xff] }
 0x102   : > { %13381 = vmatprep.mubr.msk.f32.mxu0 %vm215_vm0, %v18055_v49  ;;  %v18083_v49 = vld [vmem:[#allocation56_spill] sm:$0xff] }
 0x104   : > { %12678 = vmatmul.mubr.msk.f32.gmra.mrb[22].mxu1 %vm215_vm0, %v18056_v51  ;;  %v18084_v51 = vld [vmem:[#allocation39_spill] sm:$0xff] }
 0x105   : > { %13382 = vmatmul.mubr.msk.f32.gmra.mrb[6].mxu0 %vm215_vm0, %v18057_v53  ;;  %12680 = vmatprep.mubr.msk.f32.mxu1 %vm215_vm0, %v18058_v55  ;;  %v18085_v53 = vld [vmem:[#allocation58_spill] sm:$0xff]  ;;  %v18086_v55 = vld [vmem:[#allocation41_spill] sm:$0xff] }
 0x106   : > { %13384 = vmatprep.mubr.msk.f32.mxu0 %vm215_vm0, %v18059_v61  ;;  %v18087_v61 = vld [vmem:[#allocation60_spill] sm:$0xff] }
 0x108   : > { %12681 = vmatmul.mubr.msk.f32.gmra.mrb[24].mxu1 %vm215_vm0, %v18060_v62  ;;  %v16090_v62 = vld [vmem:[%s14966_s16 + $0x181] sm:$0xff] }
 0x109   : > { %13385 = vmatmul.mubr.msk.f32.gmra.mrb[8].mxu0 %vm215_vm0, %v18061_v2  ;;  %12683 = vmatprep.mubr.msk.f32.mxu1 %vm215_vm0, %v18062_v4  ;;  %v18088_v2 = vld [vmem:[#allocation43_spill] sm:$0xff]  ;;  %v18089_v4 = vld [vmem:[#allocation62_spill] sm:$0xff] }
 0x10a   : > { %13387 = vmatprep.mubr.msk.f32.mxu0 %vm215_vm0, %v18063_v10  ;;  %v18090_v10 = vld [vmem:[#allocation45_spill] sm:$0xff] }
 0x10c   : > { %12684 = vmatmul.mubr.msk.f32.gmra.mrb[26].mxu1 %vm215_vm0, %v18064_v13  ;;  %v16101_v13 = vld [vmem:[%s14966_s16 + $0x189] sm:$0xff] }
 0x10d   : > { %13388 = vmatmul.mubr.msk.f32.gmra.mrb[10].mxu0 %vm215_vm0, %v18065_v12  ;;  %12686 = vmatprep.mubr.msk.f32.mxu1 %vm215_vm0, %v18066_v9  ;;  %v10981_v12 = vld [vmem:[%s14966_s16 + $0x199] sm:$0xff]  ;;  %v18091_v9 = vld [vmem:[#allocation47_spill] sm:$0xff] }
 0x10e   : > { %13390 = vmatprep.mubr.msk.f32.mxu0 %vm215_vm0, %v18067_v16  ;;  %v18092_v16 = vld [vmem:[#allocation49_spill] sm:$0xff] }
 0x110   : > { %12687 = vmatmul.mubr.msk.f32.gmra.mrb[28].mxu1 %vm215_vm0, %v18068_v5  ;;  %v10982_v5 = vld [vmem:[%s14966_s16 + $0x1a1] sm:$0xff] }
 0x111   : > { %13391 = vmatmul.mubr.msk.f32.gmra.mrb[12].mxu0 %vm215_vm0, %v18069_v11  ;;  %12689 = vmatprep.mubr.msk.f32.mxu1 %vm215_vm0, %v18070_v14  ;;  %v10983_v11 = vld [vmem:[%s14966_s16 + $0x1b1] sm:$0xff]  ;;  %v18093_v14 = vld [vmem:[#allocation51_spill] sm:$0xff] }
 0x112   : > { %13393 = vmatprep.mubr.msk.f32.mxu0 %vm215_vm0, %v18071_v17  ;;  %v18094_v17 = vld [vmem:[#allocation53_spill] sm:$0xff] }
 0x114   : > { %12690 = vmatmul.mubr.msk.f32.gmra.mrb[30].mxu1 %vm215_vm0, %v18072_v21  ;;  %v16121_v21 = vld [vmem:[%s14966_s16 + $0x4a] sm:$0xff] }
 0x115   : > { %13394 = vmatmul.mubr.msk.f32.gmra.mrb[14].mxu0 %vm215_vm0, %v18073_v24  ;;  %12700 = vmatprep.mubr.msk.f32.mxu1 %vm215_vm0, %v1739_v19  ;;  %v10984_v19 = vld [vmem:[%s14966_s16 + $0x1b9] sm:$0xff] }
 0x116   : > { %13396 = vmatprep.mubr.msk.f32.mxu0 %vm215_vm0, %v18074_v29  ;;  %v11124_v24 = vld [vmem:[%s17852_s1 + $0x258] sm:$0xff] }
 0x117   : > { %v16137_v29 = vld [vmem:[%s14966_s16 + $0x52] sm:$0xff] }
 0x118   : > { %12701 = vmatmul.mubr.msk.f32.vlgmr.msra.gmra.mrb[0].mxu1 %vm215_vm0, %v1740_v26  ;;  %v18096_v26 = vld [vmem:[#allocation57_spill] sm:$0xff] }
 0x119   : > { %13397 = vmatmul.mubr.msk.f32.gmra.mrb[16].mxu0 %vm215_vm0, %v18075_v1  ;;  %13911 = vmatpush3.bf16.msra.mxu1 %v15897_v18  ;;  %v18080_v18 = vld [vmem:[#allocation35_spill] sm:$0xff] }
 0x11a   : > { %12703 = vmatprep.mubr.msk.f32.mxu1 %vm215_vm0, %v1741_v31  ;;  %13399 = vmatprep.mubr.msk.f32.mxu0 %vm215_vm0, %v18076_v7  ;;  %v16140_v31 = vld [vmem:[%s14966_s16 + $0x62] sm:$0xff]  ;;  %v16158_v7 = vld [vmem:[%s14966_s16 + $0x6a] sm:$0xff] }
 0x11b   : > { %13913 = vmatprep.subr.bf16.mxu1 %v13912_v33  ;;  %v11190_v1 = vld [vmem:[%s17852_s1 + $0x268] sm:$0xff] }
 0x11c   : > { %12704 = vmatmul.mubr.msk.f32.gmra.mrb[2].mxu1 %vm215_vm0, %v1742_v0  ;;  %v18098_v0 = vld [vmem:[#allocation61_spill] sm:$0xff] }
 0x11d   : > { %13400 = vmatmul.mubr.msk.f32.gmra.mrb[18].mxu0 %vm215_vm0, %v18077_v41  ;;  %12706 = vmatprep.mubr.msk.f32.mxu1 %vm215_vm0, %v18078_v30  ;;  %v16161_v41 = vld [vmem:[%s14966_s16 + $0x7a] sm:$0xff]  ;;  %v16163_v30 = vpack.c.bf16 %v11190_v1, %v11189_v40  ;;  %v16408_v40 = vld [vmem:[%s14966_s16 + $0x6b] sm:$0xff] }
 0x11e   : > { %13402 = vmatprep.mubr.msk.f32.mxu0 %vm215_vm0, %v18079_v43  ;;  %13915 = vmatpush3.bf16.msra.mxu1 %v13912_v33  ;;  %v14016_v33 = vpack.c.bf16 %v11124_v24, %v11123_v23  ;;  %v18099_v43 = vld [vmem:[#allocation63_spill] sm:$0xff] }
 0x11f   : > { %13917 = vmatprep.subr.bf16.mxu1 %v16063_v37  ;;  %v16387_v23 = vld [vmem:[%s14966_s16 + $0x63] sm:$0xff] }
 0x120   : > { %12707 = vmatmul.mubr.msk.f32.gmra.mrb[4].mxu1 %vm215_vm0, %v18080_v18  ;;  %v18100_v18 = vld [vmem:[#allocation64_spill] sm:$0xff]  ;;  %v16411_v1 = vld [vmem:[%s14966_s16 + $0x108] sm:$0xff] }
 0x121   : > { %13403 = vmatmul.mubr.msk.f32.gmra.mrb[20].mxu0 %vm215_vm0, %v18081_v45  ;;  %12709 = vmatprep.mubr.msk.f32.mxu1 %vm215_vm0, %v18082_v47  ;;  %v16177_v45 = vld [vmem:[%s14966_s16 + $0x92] sm:$0xff]  ;;  %v16189_v47 = vld [vmem:[%s14966_s16 + $0x9a] sm:$0xff] }
 0x122   : > { %13405 = vmatprep.mubr.msk.f32.mxu0 %vm215_vm0, %v18083_v49  ;;  %v16192_v49 = vld [vmem:[%s14966_s16 + $0xaa] sm:$0xff] }
 0x124   : > { %12710 = vmatmul.mubr.msk.f32.gmra.mrb[6].mxu1 %vm215_vm0, %v18084_v51  ;;  %v10209_v51 = vld [vmem:[%s14966_s16 + $0x48] sm:$0xff] }
 0x125   : > { %13406 = vmatmul.mubr.msk.f32.gmra.mrb[22].mxu0 %vm215_vm0, %v18085_v53  ;;  %12712 = vmatprep.mubr.msk.f32.mxu1 %vm215_vm0, %v18086_v55  ;;  %v16330_v55 = vld [vmem:[%s14966_s16 + $0xa8] sm:$0xff] }
 0x126   : > { %13408 = vmatprep.mubr.msk.f32.mxu0 %vm215_vm0, %v18087_v61  ;;  %v11049_v61 = vld [vmem:[%s14966_s16 + $0x19a] sm:$0xff] }
 0x128   : > { %12713 = vmatmul.mubr.msk.f32.gmra.mrb[8].mxu1 %vm215_vm0, %v18088_v2  ;;  %v11050_v2 = vld [vmem:[%s14966_s16 + $0x1a2] sm:$0xff] }
 0x129   : > { %13409 = vmatmul.mubr.msk.f32.gmra.mrb[24].mxu0 %vm215_vm0, %v18089_v4  ;;  %12715 = vmatprep.mubr.msk.f32.mxu1 %vm215_vm0, %v18090_v10  ;;  %v16345_v4 = vld [vmem:[%s14966_s16 + $0xc0] sm:$0xff]  ;;  %v11051_v10 = vld [vmem:[%s14966_s16 + $0x1b2] sm:$0xff] }
 0x12a   : > { %13411 = vmatprep.mubr.msk.f32.mxu0 %vm215_vm0, %v16090_v62 }
 0x12c   : > { %12716 = vmatmul.mubr.msk.f32.gmra.mrb[10].mxu1 %vm215_vm0, %v18091_v9  ;;  %v11052_v9 = vld [vmem:[%s14966_s16 + $0x1ba] sm:$0xff] }
 0x12d   : > { %13412 = vmatmul.mubr.msk.f32.gmra.mrb[26].mxu0 %vm215_vm0, %v16101_v13  ;;  %12718 = vmatprep.mubr.msk.f32.mxu1 %vm215_vm0, %v18092_v16  ;;  %v16359_v16 = vld [vmem:[%s14966_s16 + $0xd8] sm:$0xff] }
 0x12e   : > { %13414 = vmatprep.mubr.msk.f32.mxu0 %vm215_vm0, %v10981_v12  ;;  %v16354_v12 = vld [vmem:[%s14966_s16 + $0xc8] sm:$0xff] }
 0x130   : > { %12719 = vmatmul.mubr.msk.f32.gmra.mrb[12].mxu1 %vm215_vm0, %v18093_v14  ;;  %v11192_v14 = vld [vmem:[%s17852_s1 + $0x278] sm:$0xff] }
 0x131   : > { %13415 = vmatmul.mubr.msk.f32.gmra.mrb[28].mxu0 %vm215_vm0, %v10982_v5  ;;  %12721 = vmatprep.mubr.msk.f32.mxu1 %vm215_vm0, %v18094_v17  ;;  %v16362_v5 = vld [vmem:[%s14966_s16 + $0x4b] sm:$0xff]  ;;  %v16376_v17 = vld [vmem:[%s14966_s16 + $0xe0] sm:$0xff] }
 0x132   : > { %13417 = vmatprep.mubr.msk.f32.mxu0 %vm215_vm0, %v10983_v11  ;;  %v11191_v11 = vld [vmem:[%s17852_s1 + $0x270] sm:$0xff] }
 0x133   : > { %v14024_v24 = vpack.c.bf16 %v11192_v14, %v11191_v11  ;;  %v16511_v11 = vld [vmem:[%s14966_s16 + $0xe3] sm:$0xff]  ;;  %v16514_v14 = vld [vmem:[%s14966_s16 + $0xf3] sm:$0xff] }
 0x134   : > { %12722 = vmatmul.mubr.msk.f32.gmra.mrb[14].mxu1 %vm215_vm0, %v18095_v22  ;;  %v16384_v22 = vld [vmem:[%s14966_s16 + $0xf0] sm:$0xff]  ;;  %18105 = vst [vmem:[#allocation8_spill] sm:$0xff] %v16511_v11  ;;  %18106 = vst [vmem:[#allocation18_spill] sm:$0xff] %v16514_v14 }
 0x135   : > { %13418 = vmatmul.mubr.msk.f32.gmra.mrb[30].mxu0 %vm215_vm0, %v10984_v19  ;;  %12724 = vmatprep.mubr.msk.f32.mxu1 %vm215_vm0, %v18096_v26  ;;  %v16381_v19 = vld [vmem:[%s14966_s16 + $0x53] sm:$0xff]  ;;  %v11257_v26 = vld [vmem:[%s17852_s1 + $0x280] sm:$0xff] }
 0x136   : > { %13428 = vmatprep.mubr.msk.f32.mxu0 %vm215_vm0, %v16121_v21 }
 0x138   : > { %12725 = vmatmul.mubr.msk.f32.gmra.mrb[16].mxu1 %vm215_vm0, %v18097_v36  ;;  %v16402_v36 = vld [vmem:[%s14966_s16 + $0xf8] sm:$0xff] }
 0x139   : > { %13429 = vmatmul.mubr.msk.f32.vlgmr.msra.gmra.mrb[0].mxu0 %vm215_vm0, %v16137_v29  ;;  %12727 = vmatprep.mubr.msk.f32.mxu1 %vm215_vm0, %v18098_v0  ;;  %v16414_v0 = vld [vmem:[%s14966_s16 + $0x7b] sm:$0xff] }
 0x13a   : > { %13431 = vmatprep.mubr.msk.f32.mxu0 %vm215_vm0, %v16140_v31  ;;  %14015 = vmatpush3.bf16.msra.mxu0 %v15982_v32  ;;  %v16174_v32 = vld [vmem:[%s14966_s16 + $0x82] sm:$0xff] }
 0x13b   : > { %14017 = vmatprep.subr.bf16.mxu0 %v14016_v33 }
 0x13c   : > { %12728 = vmatmul.mubr.msk.f32.gmra.mrb[18].mxu1 %vm215_vm0, %v18099_v43 }
 0x13d   : > { %13432 = vmatmul.mubr.msk.f32.gmra.mrb[2].mxu0 %vm215_vm0, %v16158_v7  ;;  %12730 = vmatprep.mubr.msk.f32.mxu1 %vm215_vm0, %v18100_v18  ;;  %v16430_v18 = vld [vmem:[%s14966_s16 + $0x83] sm:$0xff] }
 0x13e   : > { %13434 = vmatprep.mubr.msk.f32.mxu0 %vm215_vm0, %v16161_v41  ;;  %14019 = vmatpush3.bf16.msra.mxu0 %v14016_v33  ;;  %v11258_v33 = vld [vmem:[%s17852_s1 + $0x288] sm:$0xff] }
 0x13f   : > { %14021 = vmatprep.subr.bf16.mxu0 %v16163_v30  ;;  %v16416_v43 = vpack.c.bf16 %v11258_v33, %v11257_v26  ;;  %v10273_v26 = vld [vmem:[%s14966_s16 + $0x19] sm:$0xff]  ;;  %v16529_v33 = vld [vmem:[%s14966_s16 + $0x10b] sm:$0xff] }
 0x140   : > { %12731 = vmatmul.mubr.msk.f32.gmra.mrb[20].mxu1 %vm215_vm0, %v15654_v38  ;;  %v16203_v38 = vld [vmem:[%s14966_s16 + $0xb2] sm:$0xff]  ;;  %18108 = vst [vmem:[#allocation20_spill] sm:$0xff] %v16529_v33 }
 0x141   : > { %13435 = vmatmul.mubr.msk.f32.gmra.mrb[4].mxu0 %vm215_vm0, %v16174_v32  ;;  %12733 = vmatprep.mubr.msk.f32.mxu1 %vm215_vm0, %v15658_v34  ;;  %v16206_v34 = vld [vmem:[%s14966_s16 + $0xc2] sm:$0xff] }
 0x142   : > { %13437 = vmatprep.mubr.msk.f32.mxu0 %vm215_vm0, %v16177_v45 }
 0x144   : > { %12734 = vmatmul.mubr.msk.f32.gmra.mrb[22].mxu1 %vm215_vm0, %v15675_v8  ;;  %v16217_v8 = vld [vmem:[%s14966_s16 + $0xca] sm:$0xff] }
 0x145   : > { %13438 = vmatmul.mubr.msk.f32.gmra.mrb[6].mxu0 %vm215_vm0, %v16189_v47  ;;  %12736 = vmatprep.mubr.msk.f32.mxu1 %vm215_vm0, %v15678_v15  ;;  %v16220_v15 = vld [vmem:[%s14966_s16 + $0xda] sm:$0xff] }
 0x146   : > { %13440 = vmatprep.mubr.msk.f32.mxu0 %vm215_vm0, %v16192_v49 }
 0x148   : > { %12737 = vmatmul.mubr.msk.f32.gmra.mrb[24].mxu1 %vm215_vm0, %v15690_v28  ;;  %v16231_v28 = vld [vmem:[%s14966_s16 + $0xe2] sm:$0xff] }
 0x149   : > { %13441 = vmatmul.mubr.msk.f32.gmra.mrb[8].mxu0 %vm215_vm0, %v16203_v38  ;;  %12739 = vmatprep.mubr.msk.f32.mxu1 %vm215_vm0, %v15693_v39  ;;  %v10205_v39 = vld [vmem:[%s14966_s16 + $0x18] sm:$0xff] }
 0x14a   : > { %13443 = vmatprep.mubr.msk.f32.mxu0 %vm215_vm0, %v16206_v34 }
 0x14c   : > { %12740 = vmatmul.mubr.msk.f32.gmra.mrb[26].mxu1 %vm215_vm0, %v15705_v20  ;;  %v10307_v20 = vld [vmem:[%s17852_s1 + $0xd0] sm:$0xff] }
 0x14d   : > { %13444 = vmatmul.mubr.msk.f32.gmra.mrb[10].mxu0 %vm215_vm0, %v16217_v8  ;;  %12742 = vmatprep.mubr.msk.f32.mxu1 %vm215_vm0, %v15708_v6  ;;  %v10308_v6 = vld [vmem:[%s17852_s1 + $0xd8] sm:$0xff] }
 0x14e   : > { %13446 = vmatprep.mubr.msk.f32.mxu0 %vm215_vm0, %v16220_v15 }
 0x150   : > { %12743 = vmatmul.mubr.msk.f32.gmra.mrb[28].mxu1 %vm215_vm0, %v15719_v25  ;;  %v10206_v25 = vld [vmem:[%s14966_s16 + $0x20] sm:$0xff] }
 0x151   : > { %13447 = vmatmul.mubr.msk.f32.gmra.mrb[12].mxu0 %vm215_vm0, %v16231_v28  ;;  %12745 = vmatprep.mubr.msk.f32.mxu1 %vm215_vm0, %v15722_v27  ;;  %v10207_v27 = vld [vmem:[%s14966_s16 + $0x30] sm:$0xff] }
 0x152   : > { %13449 = vmatprep.mubr.msk.f32.mxu0 %vm215_vm0, %v15781_v42  ;;  %v10373_v42 = vld [vmem:[%s17852_s1 + $0xe0] sm:$0xff] }
 0x154   : > { %12746 = vmatmul.mubr.msk.f32.gmra.mrb[30].mxu1 %vm215_vm0, %v15733_v35  ;;  %v13920_v35 = vpack.c.bf16 %v10308_v6, %v10307_v20  ;;  %v16436_v20 = vld [vmem:[%s14966_s16 + $0x93] sm:$0xff]  ;;  %v16446_v6 = vld [vmem:[%s14966_s16 + $0x128] sm:$0xff] }
 0x155   : > { %13450 = vmatmul.mubr.msk.f32.gmra.mrb[14].mxu0 %vm215_vm0, %v15792_v44  ;;  %12756 = vmatprep.mubr.msk.f32.mxu1 %vm215_vm0, %v10205_v39  ;;  %v10374_v44 = vld [vmem:[%s17852_s1 + $0xe8] sm:$0xff]  ;;  %v16433_v39 = vld [vmem:[%s14966_s16 + $0x120] sm:$0xff] }
 0x156   : > { %13452 = vmatprep.mubr.msk.f32.mxu0 %vm215_vm0, %v15797_v46  ;;  %v10208_v46 = vld [vmem:[%s14966_s16 + $0x38] sm:$0xff]  ;;  %v16272_v53 = vpack.c.bf16 %v10374_v44, %v10373_v42  ;;  %v16466_v42 = vld [vmem:[%s14966_s16 + $0x140] sm:$0xff] }
 0x157   : > { %v16471_v44 = vld [vmem:[%s14966_s16 + $0xb3] sm:$0xff] }
 0x158   : > { %12757 = vmatmul.mubr.msk.f32.vlgmr.msra.gmra.mrb[0].mxu1 %vm215_vm0, %v10206_v25  ;;  %v16451_v25 = vld [vmem:[%s14966_s16 + $0x9b] sm:$0xff]  ;;  %18101 = vst [vmem:[#allocation4_spill] sm:$0xff] %v16471_v44 }
 0x159   : > { %13453 = vmatmul.mubr.msk.f32.gmra.mrb[16].mxu0 %vm215_vm0, %v15807_v48  ;;  %13919 = vmatpush3.bf16.msra.mxu1 %v16063_v37  ;;  %v10210_v48 = vld [vmem:[%s14966_s16 + $0x50] sm:$0xff]  ;;  %v16313_v37 = vld [vmem:[%s14966_s16 + $0x182] sm:$0xff] }
 0x15a   : > { %12759 = vmatprep.mubr.msk.f32.mxu1 %vm215_vm0, %v10207_v27  ;;  %13455 = vmatprep.mubr.msk.f32.mxu0 %vm215_vm0, %v15812_v50  ;;  %v16282_v50 = vld [vmem:[%s14966_s16 + $0x60] sm:$0xff]  ;;  %v16454_v27 = vld [vmem:[%s14966_s16 + $0x138] sm:$0xff] }
 0x15b   : > { %13921 = vmatprep.subr.bf16.mxu1 %v13920_v35 }
 0x15c   : > { %12760 = vmatmul.mubr.msk.f32.gmra.mrb[2].mxu1 %vm215_vm0, %v10208_v46  ;;  %v16474_v46 = vld [vmem:[%s14966_s16 + $0x150] sm:$0xff] }
 0x15d   : > { %13456 = vmatmul.mubr.msk.f32.gmra.mrb[18].mxu0 %vm215_vm0, %v15821_v52  ;;  %12762 = vmatprep.mubr.msk.f32.mxu1 %vm215_vm0, %v10209_v51  ;;  %v16291_v52 = vld [vmem:[%s14966_s16 + $0x68] sm:$0xff] }
 0x15e   : > { %13458 = vmatprep.mubr.msk.f32.mxu0 %vm215_vm0, %v15826_v57  ;;  %13923 = vmatpush3.bf16.msra.mxu1 %v13920_v35  ;;  %v16296_v57 = vld [vmem:[%s14966_s16 + $0x78] sm:$0xff]  ;;  %v16457_v35 = vld [vmem:[%s14966_s16 + $0xab] sm:$0xff]  ;;  %v16477_v51 = vld [vmem:[%s14966_s16 + $0xc3] sm:$0xff] }
 0x15f   : > { %13925 = vmatprep.subr.bf16.mxu1 %v16272_v53  ;;  %18102 = vst [vmem:[#allocation5_spill] sm:$0xff] %v16477_v51 }
 0x160   : > { %12763 = vmatmul.mubr.msk.f32.gmra.mrb[4].mxu1 %vm215_vm0, %v10210_v48  ;;  %v16486_v48 = vld [vmem:[%s14966_s16 + $0x158] sm:$0xff] }
 0x161   : > { %13459 = vmatmul.mubr.msk.f32.gmra.mrb[20].mxu0 %vm215_vm0, %v15835_v54  ;;  %12765 = vmatprep.mubr.msk.f32.mxu1 %vm215_vm0, %v16282_v50  ;;  %v16305_v54 = vld [vmem:[%s14966_s16 + $0x80] sm:$0xff] }
 0x162   : > { %13461 = vmatprep.mubr.msk.f32.mxu0 %vm215_vm0, %v15840_v56  ;;  %v16310_v56 = vld [vmem:[%s14966_s16 + $0x90] sm:$0xff] }
 0x164   : > { %12766 = vmatmul.mubr.msk.f32.gmra.mrb[6].mxu1 %vm215_vm0, %v16291_v52 }
 0x165   : > { %13462 = vmatmul.mubr.msk.f32.gmra.mrb[22].mxu0 %vm215_vm0, %v15849_v58  ;;  %12768 = vmatprep.mubr.msk.f32.mxu1 %vm215_vm0, %v16296_v57  ;;  %v16322_v58 = vld [vmem:[%s14966_s16 + $0x98] sm:$0xff] }
 0x166   : > { %13464 = vmatprep.mubr.msk.f32.mxu0 %vm215_vm0, %v15854_v59  ;;  %v16327_v59 = vld [vmem:[%s14966_s16 + $0x18a] sm:$0xff] }
 0x168   : > { %12769 = vmatmul.mubr.msk.f32.gmra.mrb[8].mxu1 %vm215_vm0, %v16305_v54 }
 0x169   : > { %13465 = vmatmul.mubr.msk.f32.gmra.mrb[24].mxu0 %vm215_vm0, %v15863_v60  ;;  %12771 = vmatprep.mubr.msk.f32.mxu1 %vm215_vm0, %v16310_v56  ;;  %v16340_v60 = vld [vmem:[%s14966_s16 + $0xb0] sm:$0xff] }
 0x16a   : > { %13467 = vmatprep.mubr.msk.f32.mxu0 %vm215_vm0, %v16313_v37 }
 0x16c   : > { %12772 = vmatmul.mubr.msk.f32.gmra.mrb[10].mxu1 %vm215_vm0, %v16322_v58 }
 0x16d   : > { %13468 = vmatmul.mubr.msk.f32.gmra.mrb[26].mxu0 %vm215_vm0, %v16327_v59  ;;  %12774 = vmatprep.mubr.msk.f32.mxu1 %vm215_vm0, %v16330_v55 }
 0x16e   : > { %13470 = vmatprep.mubr.msk.f32.mxu0 %vm215_vm0, %v11049_v61  ;;  %v16491_v61 = vld [vmem:[%s14966_s16 + $0xcb] sm:$0xff] }
 0x16f   : > { %18103 = vst [vmem:[#allocation6_spill] sm:$0xff] %v16491_v61 }
 0x170   : > { %12775 = vmatmul.mubr.msk.f32.gmra.mrb[12].mxu1 %vm215_vm0, %v16340_v60 }
 0x171   : > { %13471 = vmatmul.mubr.msk.f32.gmra.mrb[28].mxu0 %vm215_vm0, %v11050_v2  ;;  %12777 = vmatprep.mubr.msk.f32.mxu1 %vm215_vm0, %v16345_v4  ;;  %v16494_v2 = vld [vmem:[%s14966_s16 + $0x168] sm:$0xff] }
 0x172   : > { %13473 = vmatprep.mubr.msk.f32.mxu0 %vm215_vm0, %v11051_v10  ;;  %v16497_v10 = vld [vmem:[%s14966_s16 + $0xdb] sm:$0xff] }
 0x173   : > { %18104 = vst [vmem:[#allocation7_spill] sm:$0xff] %v16497_v10 }
 0x174   : > { %12778 = vmatmul.mubr.msk.f32.gmra.mrb[14].mxu1 %vm215_vm0, %v16354_v12 }
 0x175   : > { %13474 = vmatmul.mubr.msk.f32.gmra.mrb[30].mxu0 %vm215_vm0, %v11052_v9  ;;  %12780 = vmatprep.mubr.msk.f32.mxu1 %vm215_vm0, %v16359_v16  ;;  %v16506_v9 = vld [vmem:[%s14966_s16 + $0x170] sm:$0xff] }
 0x176   : > { %13484 = vmatprep.mubr.msk.f32.mxu0 %vm215_vm0, %v16362_v5 }
 0x178   : > { %12781 = vmatmul.mubr.msk.f32.gmra.mrb[16].mxu1 %vm215_vm0, %v16376_v17 }
 0x179   : > { %13485 = vmatmul.mubr.msk.f32.vlgmr.msra.gmra.mrb[0].mxu0 %vm215_vm0, %v16381_v19  ;;  %12783 = vmatprep.mubr.msk.f32.mxu1 %vm215_vm0, %v16384_v22 }
 0x17a   : > { %13487 = vmatprep.mubr.msk.f32.mxu0 %vm215_vm0, %v16387_v23  ;;  %14023 = vmatpush3.bf16.msra.mxu0 %v16163_v30  ;;  %v16425_v30 = vld [vmem:[%s14966_s16 + $0x110] sm:$0xff] }
 0x17b   : > { %14025 = vmatprep.subr.bf16.mxu0 %v14024_v24 }
 0x17c   : > { %12784 = vmatmul.mubr.msk.f32.gmra.mrb[18].mxu1 %vm215_vm0, %v16402_v36 }
 0x17d   : > { %13488 = vmatmul.mubr.msk.f32.gmra.mrb[2].mxu0 %vm215_vm0, %v16408_v40  ;;  %12786 = vmatprep.mubr.msk.f32.mxu1 %vm215_vm0, %v16411_v1 }
 0x17e   : > { %13490 = vmatprep.mubr.msk.f32.mxu0 %vm215_vm0, %v16414_v0  ;;  %14027 = vmatpush3.bf16.msra.mxu0 %v14024_v24  ;;  %v16525_v24 = vld [vmem:[%s14966_s16 + $0xfb] sm:$0xff] }
 0x17f   : > { %14029 = vmatprep.subr.bf16.mxu0 %v16416_v43  ;;  %18107 = vst [vmem:[#allocation9_spill] sm:$0xff] %v16525_v24 }
 0x180   : > { %12787 = vmatmul.mubr.msk.f32.gmra.mrb[20].mxu1 %vm215_vm0, %v16425_v30 }
 0x181   : > { %13491 = vmatmul.mubr.msk.f32.gmra.mrb[4].mxu0 %vm215_vm0, %v16430_v18  ;;  %12789 = vmatprep.mubr.msk.f32.mxu1 %vm215_vm0, %v16433_v39 }
 0x182   : > { %13493 = vmatprep.mubr.msk.f32.mxu0 %vm215_vm0, %v16436_v20 }
 0x184   : > { %12790 = vmatmul.mubr.msk.f32.gmra.mrb[22].mxu1 %vm215_vm0, %v16446_v6 }
 0x185   : > { %13494 = vmatmul.mubr.msk.f32.gmra.mrb[6].mxu0 %vm215_vm0, %v16451_v25  ;;  %12792 = vmatprep.mubr.msk.f32.mxu1 %vm215_vm0, %v16454_v27 }
 0x186   : > { %13496 = vmatprep.mubr.msk.f32.mxu0 %vm215_vm0, %v16457_v35 }
 0x188   : > { %12793 = vmatmul.mubr.msk.f32.gmra.mrb[24].mxu1 %vm215_vm0, %v16466_v42 }
 0x189   : > { %13497 = vmatmul.mubr.msk.f32.gmra.mrb[8].mxu0 %vm215_vm0, %v16471_v44  ;;  %12795 = vmatprep.mubr.msk.f32.mxu1 %vm215_vm0, %v16474_v46 }
 0x18a   : > { %13499 = vmatprep.mubr.msk.f32.mxu0 %vm215_vm0, %v16477_v51 }
 0x18c   : > { %12796 = vmatmul.mubr.msk.f32.gmra.mrb[26].mxu1 %vm215_vm0, %v16486_v48 }
 0x18d   : > { %13500 = vmatmul.mubr.msk.f32.gmra.mrb[10].mxu0 %vm215_vm0, %v16491_v61  ;;  %12798 = vmatprep.mubr.msk.f32.mxu1 %vm215_vm0, %v16494_v2  ;;  %v16550_v61 = vld [vmem:[%s14966_s16 + $0x123] sm:$0xff] }
 0x18e   : > { %13502 = vmatprep.mubr.msk.f32.mxu0 %vm215_vm0, %v16497_v10  ;;  %v10375_v10 = vld [vmem:[%s17852_s1 + $0xf0] sm:$0xff]  ;;  %18110 = vst [vmem:[#allocation22_spill] sm:$0xff] %v16550_v61 }
 0x190   : > { %12799 = vmatmul.mubr.msk.f32.gmra.mrb[28].mxu1 %vm215_vm0, %v16506_v9 }
 0x191   : > { %13503 = vmatmul.mubr.msk.f32.gmra.mrb[12].mxu0 %vm215_vm0, %v16511_v11  ;;  %12801 = vmatprep.mubr.msk.f32.mxu1 %vm215_vm0, %v15924_v63  ;;  %v10376_v63 = vld [vmem:[%s17852_s1 + $0xf8] sm:$0xff] }
 0x192   : > { %13505 = vmatprep.mubr.msk.f32.mxu0 %vm215_vm0, %v16514_v14  ;;  %v10274_v14 = vld [vmem:[%s14966_s16 + $0x21] sm:$0xff]  ;;  %v10275_v11 = vld [vmem:[%s14966_s16 + $0x31] sm:$0xff]  ;;  %v13928_v51 = vpack.c.bf16 %v10376_v63, %v10375_v10 }
 0x193   : > { %v16567_v10 = vld [vmem:[%s14966_s16 + $0x12b] sm:$0xff]  ;;  %v16571_v63 = vld [vmem:[%s14966_s16 + $0x13b] sm:$0xff] }
 0x194   : > { %12802 = vmatmul.mubr.msk.f32.gmra.mrb[30].mxu1 %vm215_vm0, %v15935_v3  ;;  %v16546_v3 = vld [vmem:[%s14966_s16 + $0x113] sm:$0xff]  ;;  %18111 = vst [vmem:[#allocation11_spill] sm:$0xff] %v16567_v10  ;;  %18112 = vst [vmem:[#allocation24_spill] sm:$0xff] %v16571_v63 }
 0x195   : > { %13506 = vmatmul.mubr.msk.f32.gmra.mrb[14].mxu0 %vm215_vm0, %v16525_v24  ;;  %12812 = vmatprep.mubr.msk.f32.mxu1 %vm215_vm0, %v10273_v26  ;;  %18109 = vst [vmem:[#allocation10_spill] sm:$0xff] %v16546_v3  ;;  %v10441_v24 = vld [vmem:[%s17852_s1 + $0x100] sm:$0xff]  ;;  %v10442_v26 = vld [vmem:[%s17852_s1 + $0x108] sm:$0xff] }
 0x196   : > { %13508 = vmatprep.mubr.msk.f32.mxu0 %vm215_vm0, %v16529_v33  ;;  %v10276_v33 = vld [vmem:[%s14966_s16 + $0x39] sm:$0xff]  ;;  %v16573_v44 = vpack.c.bf16 %v10442_v26, %v10441_v24 }
 0x197   : > { %v16589_v24 = vld [vmem:[%s14966_s16 + $0x153] sm:$0xff] }
 0x198   : > { %12813 = vmatmul.mubr.msk.f32.vlgmr.msra.gmra.mrb[0].mxu1 %vm215_vm0, %v10274_v14  ;;  %v10277_v14 = vld [vmem:[%s14966_s16 + $0x49] sm:$0xff]  ;;  %18114 = vst [vmem:[#allocation26_spill] sm:$0xff] %v16589_v24  ;;  %v16606_v26 = vld [vmem:[%s14966_s16 + $0x79] sm:$0xff] }
 0x199   : > { %13509 = vmatmul.mubr.msk.f32.gmra.mrb[16].mxu0 %vm215_vm0, %v16546_v3  ;;  %13927 = vmatpush3.bf16.msra.mxu1 %v16272_v53  ;;  %v10278_v53 = vld [vmem:[%s14966_s16 + $0x51] sm:$0xff]  ;;  %18117 = vst [vmem:[#allocation14_spill] sm:$0xff] %v16606_v26  ;;  %v11117_v3 = vld [vmem:[%s14966_s16 + $0x19b] sm:$0xff] }
 0x19a   : > { %12815 = vmatprep.mubr.msk.f32.mxu1 %vm215_vm0, %v10275_v11  ;;  %13511 = vmatprep.mubr.msk.f32.mxu0 %vm215_vm0, %v16550_v61  ;;  %v16583_v11 = vld [vmem:[%s14966_s16 + $0x143] sm:$0xff] }
 0x19b   : > { %13929 = vmatprep.subr.bf16.mxu1 %v13928_v51  ;;  %18113 = vst [vmem:[#allocation12_spill] sm:$0xff] %v16583_v11  ;;  %v16586_v61 = vld [vmem:[%s14966_s16 + $0x61] sm:$0xff] }
 0x19c   : > { %12816 = vmatmul.mubr.msk.f32.gmra.mrb[2].mxu1 %vm215_vm0, %v10276_v33  ;;  %v16598_v33 = vld [vmem:[%s14966_s16 + $0x69] sm:$0xff] }
 0x19d   : > { %13512 = vmatmul.mubr.msk.f32.gmra.mrb[18].mxu0 %vm215_vm0, %v16567_v10  ;;  %12818 = vmatprep.mubr.msk.f32.mxu1 %vm215_vm0, %v10277_v14  ;;  %18115 = vst [vmem:[#allocation13_spill] sm:$0xff] %v16598_v33  ;;  %v16609_v14 = vld [vmem:[%s14966_s16 + $0x16b] sm:$0xff] }
 0x19e   : > { %13514 = vmatprep.mubr.msk.f32.mxu0 %vm215_vm0, %v16571_v63  ;;  %13931 = vmatpush3.bf16.msra.mxu1 %v13928_v51  ;;  %v16603_v51 = vld [vmem:[%s14966_s16 + $0x15b] sm:$0xff]  ;;  %18118 = vst [vmem:[#allocation29_spill] sm:$0xff] %v16609_v14  ;;  %v16629_v63 = vld [vmem:[%s14966_s16 + $0x183] sm:$0xff] }
 0x19f   : > { %13933 = vmatprep.subr.bf16.mxu1 %v16573_v44  ;;  %18116 = vst [vmem:[#allocation28_spill] sm:$0xff] %v16603_v51  ;;  %18122 = vst [vmem:[#allocation31_spill] sm:$0xff] %v16629_v63  ;;  %v16646_v10 = vld [vmem:[%s14966_s16 + $0xa9] sm:$0xff] }
 0x1a0   : > { %12819 = vmatmul.mubr.msk.f32.gmra.mrb[4].mxu1 %vm215_vm0, %v10278_v53  ;;  %v16618_v53 = vld [vmem:[%s14966_s16 + $0x81] sm:$0xff]  ;;  %18125 = vst [vmem:[#allocation19_spill] sm:$0xff] %v16646_v10 }
 0x1a1   : > { %13515 = vmatmul.mubr.msk.f32.gmra.mrb[20].mxu0 %vm215_vm0, %v16583_v11  ;;  %12821 = vmatprep.mubr.msk.f32.mxu1 %vm215_vm0, %v16586_v61  ;;  %18119 = vst [vmem:[#allocation15_spill] sm:$0xff] %v16618_v53  ;;  %v16626_v11 = vld [vmem:[%s14966_s16 + $0x91] sm:$0xff] }
 0x1a2   : > { %13517 = vmatprep.mubr.msk.f32.mxu0 %vm215_vm0, %v16589_v24  ;;  %v16623_v24 = vld [vmem:[%s14966_s16 + $0x173] sm:$0xff]  ;;  %18121 = vst [vmem:[#allocation16_spill] sm:$0xff] %v16626_v11 }
 0x1a3   : > { %18120 = vst [vmem:[#allocation30_spill] sm:$0xff] %v16623_v24 }
 0x1a4   : > { %12822 = vmatmul.mubr.msk.f32.gmra.mrb[6].mxu1 %vm215_vm0, %v16598_v33 }
 0x1a5   : > { %13518 = vmatmul.mubr.msk.f32.gmra.mrb[22].mxu0 %vm215_vm0, %v16603_v51  ;;  %12824 = vmatprep.mubr.msk.f32.mxu1 %vm215_vm0, %v16606_v26  ;;  %v16638_v51 = vld [vmem:[%s14966_s16 + $0x99] sm:$0xff]  ;;  %v16703_v26 = vld [vmem:[%s14966_s16 + $0x64] sm:$0xff] }
 0x1a6   : > { %13520 = vmatprep.mubr.msk.f32.mxu0 %vm215_vm0, %v16609_v14  ;;  %18123 = vst [vmem:[#allocation17_spill] sm:$0xff] %v16638_v51  ;;  %v16643_v14 = vld [vmem:[%s14966_s16 + $0x18b] sm:$0xff]  ;;  %18133 = vst [vmem:[#allocation27_spill] sm:$0xff] %v16703_v26 }
 0x1a7   : > { %18124 = vst [vmem:[#allocation32_spill] sm:$0xff] %v16643_v14 }
 0x1a8   : > { %12825 = vmatmul.mubr.msk.f32.gmra.mrb[8].mxu1 %vm215_vm0, %v16618_v53  ;;  %v11119_v53 = vld [vmem:[%s14966_s16 + $0x1b3] sm:$0xff] }
 0x1a9   : > { %13521 = vmatmul.mubr.msk.f32.gmra.mrb[24].mxu0 %vm215_vm0, %v16623_v24  ;;  %12827 = vmatprep.mubr.msk.f32.mxu1 %vm215_vm0, %v16626_v11  ;;  %v16656_v24 = vld [vmem:[%s14966_s16 + $0xb1] sm:$0xff]  ;;  %v16661_v11 = vld [vmem:[%s14966_s16 + $0xc1] sm:$0xff] }
 0x1aa   : > { %13523 = vmatprep.mubr.msk.f32.mxu0 %vm215_vm0, %v16629_v63  ;;  %18126 = vst [vmem:[#allocation34_spill] sm:$0xff] %v16656_v24  ;;  %v11118_v63 = vld [vmem:[%s14966_s16 + $0x1a3] sm:$0xff]  ;;  %18127 = vst [vmem:[#allocation21_spill] sm:$0xff] %v16661_v11 }
 0x1ac   : > { %12828 = vmatmul.mubr.msk.f32.gmra.mrb[10].mxu1 %vm215_vm0, %v16638_v51  ;;  %v16678_v51 = vld [vmem:[%s14966_s16 + $0x4c] sm:$0xff] }
 0x1ad   : > { %13524 = vmatmul.mubr.msk.f32.gmra.mrb[26].mxu0 %vm215_vm0, %v16643_v14  ;;  %12830 = vmatprep.mubr.msk.f32.mxu1 %vm215_vm0, %v16646_v10  ;;  %v16670_v14 = vld [vmem:[%s14966_s16 + $0xc9] sm:$0xff]  ;;  %v16675_v10 = vld [vmem:[%s14966_s16 + $0xd9] sm:$0xff]  ;;  %18130 = vst [vmem:[#allocation38_spill] sm:$0xff] %v16678_v51 }
 0x1ae   : > { %13526 = vmatprep.mubr.msk.f32.mxu0 %vm215_vm0, %v11117_v3  ;;  %18128 = vst [vmem:[#allocation36_spill] sm:$0xff] %v16670_v14  ;;  %v11120_v3 = vld [vmem:[%s14966_s16 + $0x1bb] sm:$0xff]  ;;  %18129 = vst [vmem:[#allocation23_spill] sm:$0xff] %v16675_v10 }
 0x1b0   : > { %12831 = vmatmul.mubr.msk.f32.gmra.mrb[12].mxu1 %vm215_vm0, %v16656_v24  ;;  %v16700_v24 = vld [vmem:[%s14966_s16 + $0xf1] sm:$0xff] }
 0x1b1   : > { %13527 = vmatmul.mubr.msk.f32.gmra.mrb[28].mxu0 %vm215_vm0, %v11118_v63  ;;  %12833 = vmatprep.mubr.msk.f32.mxu1 %vm215_vm0, %v16661_v11  ;;  %v11259_v63 = vld [vmem:[%s17852_s1 + $0x290] sm:$0xff]  ;;  %v11260_v11 = vld [vmem:[%s17852_s1 + $0x298] sm:$0xff] }
 0x1b2   : > { %13529 = vmatprep.mubr.msk.f32.mxu0 %vm215_vm0, %v11119_v53  ;;  %v16692_v53 = vld [vmem:[%s14966_s16 + $0xe1] sm:$0xff]  ;;  %v14032_v33 = vpack.c.bf16 %v11260_v11, %v11259_v63  ;;  %v16718_v11 = vld [vmem:[%s14966_s16 + $0xf9] sm:$0xff]  ;;  %v16724_v63 = vld [vmem:[%s14966_s16 + $0x6c] sm:$0xff] }
 0x1b3   : > { %18131 = vst [vmem:[#allocation25_spill] sm:$0xff] %v16692_v53  ;;  %18134 = vst [vmem:[#allocation42_spill] sm:$0xff] %v16724_v63 }
 0x1b4   : > { %12834 = vmatmul.mubr.msk.f32.gmra.mrb[14].mxu1 %vm215_vm0, %v16670_v14  ;;  %v16697_v14 = vld [vmem:[%s14966_s16 + $0x54] sm:$0xff] }
 0x1b5   : > { %13530 = vmatmul.mubr.msk.f32.gmra.mrb[30].mxu0 %vm215_vm0, %v11120_v3  ;;  %12836 = vmatprep.mubr.msk.f32.mxu1 %vm215_vm0, %v16675_v10  ;;  %18132 = vst [vmem:[#allocation40_spill] sm:$0xff] %v16697_v14  ;;  %v11325_v3 = vld [vmem:[%s17852_s1 + $0x2a0] sm:$0xff]  ;;  %v11326_v10 = vld [vmem:[%s17852_s1 + $0x2a8] sm:$0xff] }
 0x1b6   : > { %13540 = vmatprep.mubr.msk.f32.mxu0 %vm215_vm0, %v16678_v51  ;;  %v16727_v51 = vld [vmem:[%s14966_s16 + $0x109] sm:$0xff] }
 0x1b7   : > { %18135 = vst [vmem:[#allocation44_spill] sm:$0xff] %v16727_v51 }
 0x1b8   : > { %12837 = vmatmul.mubr.msk.f32.gmra.mrb[16].mxu1 %vm215_vm0, %v16692_v53  ;;  %v16730_v53 = vld [vmem:[%s14966_s16 + $0x7c] sm:$0xff] }
 0x1b9   : > { %13541 = vmatmul.mubr.msk.f32.vlgmr.msra.gmra.mrb[0].mxu0 %vm215_vm0, %v16697_v14  ;;  %12839 = vmatprep.mubr.msk.f32.mxu1 %vm215_vm0, %v16700_v24  ;;  %18136 = vst [vmem:[#allocation46_spill] sm:$0xff] %v16730_v53  ;;  %v16732_v14 = vpack.c.bf16 %v11326_v10, %v11325_v3  ;;  %v16749_v10 = vld [vmem:[%s14966_s16 + $0x121] sm:$0xff]  ;;  %v16752_v3 = vld [vmem:[%s14966_s16 + $0x94] sm:$0xff] }
 0x1ba   : > { %13543 = vmatprep.mubr.msk.f32.mxu0 %vm215_vm0, %v16703_v26  ;;  %14031 = vmatpush3.bf16.msra.mxu0 %v16416_v43  ;;  %v16741_v43 = vld [vmem:[%s14966_s16 + $0x111] sm:$0xff]  ;;  %v16746_v26 = vld [vmem:[%s14966_s16 + $0x84] sm:$0xff]  ;;  %18139 = vst [vmem:[#allocation33_spill] sm:$0xff] %v16749_v10  ;;  %18140 = vst [vmem:[#allocation52_spill] sm:$0xff] %v16752_v3 }
 0x1bb   : > { %14033 = vmatprep.subr.bf16.mxu0 %v14032_v33  ;;  %18137 = vst [vmem:[#allocation48_spill] sm:$0xff] %v16741_v43  ;;  %18138 = vst [vmem:[#allocation50_spill] sm:$0xff] %v16746_v26 }
 0x1bc   : > { %12840 = vmatmul.mubr.msk.f32.gmra.mrb[18].mxu1 %vm215_vm0, %v16718_v11 }
 0x1bd   : > { %13544 = vmatmul.mubr.msk.f32.gmra.mrb[2].mxu0 %vm215_vm0, %v16724_v63  ;;  %12842 = vmatprep.mubr.msk.f32.mxu1 %vm215_vm0, %v16727_v51  ;;  %v16770_v63 = vld [vmem:[%s14966_s16 + $0x139] sm:$0xff]  ;;  %v16773_v51 = vld [vmem:[%s14966_s16 + $0xac] sm:$0xff] }
 0x1be   : > { %13546 = vmatprep.mubr.msk.f32.mxu0 %vm215_vm0, %v16730_v53  ;;  %14035 = vmatpush3.bf16.msra.mxu0 %v14032_v33  ;;  %v16762_v53 = vld [vmem:[%s14966_s16 + $0x129] sm:$0xff]  ;;  %v16767_v33 = vld [vmem:[%s14966_s16 + $0x9c] sm:$0xff]  ;;  %18143 = vst [vmem:[#allocation37_spill] sm:$0xff] %v16770_v63  ;;  %18144 = vst [vmem:[#allocation56_spill] sm:$0xff] %v16773_v51 }
 0x1bf   : > { %14037 = vmatprep.subr.bf16.mxu0 %v16732_v14  ;;  %18141 = vst [vmem:[#allocation35_spill] sm:$0xff] %v16762_v53  ;;  %18142 = vst [vmem:[#allocation54_spill] sm:$0xff] %v16767_v33 }
 0x1c0   : > { %12843 = vmatmul.mubr.msk.f32.gmra.mrb[20].mxu1 %vm215_vm0, %v16741_v43  ;;  %v16793_v43 = vld [vmem:[%s14966_s16 + $0xc4] sm:$0xff] }
 0x1c1   : > { %13547 = vmatmul.mubr.msk.f32.gmra.mrb[4].mxu0 %vm215_vm0, %v16746_v26  ;;  %12845 = vmatprep.mubr.msk.f32.mxu1 %vm215_vm0, %v16749_v10  ;;  %v16782_v26 = vld [vmem:[%s14966_s16 + $0x141] sm:$0xff]  ;;  %v16790_v10 = vld [vmem:[%s14966_s16 + $0x151] sm:$0xff]  ;;  %18148 = vst [vmem:[#allocation60_spill] sm:$0xff] %v16793_v43 }
 0x1c2   : > { %13549 = vmatprep.mubr.msk.f32.mxu0 %vm215_vm0, %v16752_v3  ;;  %18145 = vst [vmem:[#allocation39_spill] sm:$0xff] %v16782_v26  ;;  %v16787_v3 = vld [vmem:[%s14966_s16 + $0xb4] sm:$0xff]  ;;  %18147 = vst [vmem:[#allocation41_spill] sm:$0xff] %v16790_v10 }
 0x1c3   : > { %18146 = vst [vmem:[#allocation58_spill] sm:$0xff] %v16787_v3 }
 0x1c4   : > { %12846 = vmatmul.mubr.msk.f32.gmra.mrb[22].mxu1 %vm215_vm0, %v16762_v53  ;;  %v16813_v53 = vld [vmem:[%s14966_s16 + $0xdc] sm:$0xff] }
 0x1c5   : > { %13550 = vmatmul.mubr.msk.f32.gmra.mrb[6].mxu0 %vm215_vm0, %v16767_v33  ;;  %12848 = vmatprep.mubr.msk.f32.mxu1 %vm215_vm0, %v16770_v63  ;;  %v16802_v33 = vld [vmem:[%s14966_s16 + $0x159] sm:$0xff]  ;;  %v16810_v63 = vld [vmem:[%s14966_s16 + $0x169] sm:$0xff]  ;;  %18152 = vst [vmem:[#allocation47_spill] sm:$0xff] %v16813_v53 }
 0x1c6   : > { %13552 = vmatprep.mubr.msk.f32.mxu0 %vm215_vm0, %v16773_v51  ;;  %18149 = vst [vmem:[#allocation43_spill] sm:$0xff] %v16802_v33  ;;  %v16807_v51 = vld [vmem:[%s14966_s16 + $0xcc] sm:$0xff]  ;;  %18151 = vst [vmem:[#allocation45_spill] sm:$0xff] %v16810_v63 }
 0x1c7   : > { %18150 = vst [vmem:[#allocation62_spill] sm:$0xff] %v16807_v51 }
 0x1c8   : > { %12849 = vmatmul.mubr.msk.f32.gmra.mrb[24].mxu1 %vm215_vm0, %v16782_v26 }
 0x1c9   : > { %13553 = vmatmul.mubr.msk.f32.gmra.mrb[8].mxu0 %vm215_vm0, %v16787_v3  ;;  %12851 = vmatprep.mubr.msk.f32.mxu1 %vm215_vm0, %v16790_v10  ;;  %v16822_v3 = vld [vmem:[%s14966_s16 + $0x171] sm:$0xff] }
 0x1ca   : > { %13555 = vmatprep.mubr.msk.f32.mxu0 %vm215_vm0, %v16793_v43  ;;  %18153 = vst [vmem:[#allocation49_spill] sm:$0xff] %v16822_v3  ;;  %v16827_v43 = vld [vmem:[%s14966_s16 + $0xe4] sm:$0xff]  ;;  %v16830_v10 = vld [vmem:[%s14966_s16 + $0xf4] sm:$0xff] }
 0x1cb   : > { %18154 = vst [vmem:[#allocation51_spill] sm:$0xff] %v16827_v43  ;;  %18155 = vst [vmem:[#allocation53_spill] sm:$0xff] %v16830_v10 }
 0x1cc   : > { %12852 = vmatmul.mubr.msk.f32.gmra.mrb[26].mxu1 %vm215_vm0, %v16802_v33  ;;  %v16866_v33 = vld [vmem:[%s14966_s16 + $0x124] sm:$0xff] }
 0x1cd   : > { %13556 = vmatmul.mubr.msk.f32.gmra.mrb[10].mxu0 %vm215_vm0, %v16807_v51  ;;  %12854 = vmatprep.mubr.msk.f32.mxu1 %vm215_vm0, %v16810_v63  ;;  %v10341_v51 = vld [vmem:[%s14966_s16 + $0x1a] sm:$0xff]  ;;  %v16845_v63 = vld [vmem:[%s14966_s16 + $0x10c] sm:$0xff] }
 0x1ce   : > { %13558 = vmatprep.mubr.msk.f32.mxu0 %vm215_vm0, %v16813_v53  ;;  %v16841_v53 = vld [vmem:[%s14966_s16 + $0xfc] sm:$0xff]  ;;  %18157 = vst [vmem:[#allocation57_spill] sm:$0xff] %v16845_v63 }
 0x1cf   : > { %18156 = vst [vmem:[#allocation55_spill] sm:$0xff] %v16841_v53 }
 0x1d0   : > { %12855 = vmatmul.mubr.msk.f32.gmra.mrb[28].mxu1 %vm215_vm0, %v16822_v3  ;;  %v10443_v3 = vld [vmem:[%s17852_s1 + $0x110] sm:$0xff] }
 0x1d1   : > { %13559 = vmatmul.mubr.msk.f32.gmra.mrb[12].mxu0 %vm215_vm0, %v16827_v43  ;;  %12857 = vmatprep.mubr.msk.f32.mxu1 %vm215_vm0, %v16090_v62  ;;  %v10444_v62 = vld [vmem:[%s17852_s1 + $0x118] sm:$0xff] }
 0x1d2   : > { %13561 = vmatprep.mubr.msk.f32.mxu0 %vm215_vm0, %v16830_v10  ;;  %v10342_v10 = vld [vmem:[%s14966_s16 + $0x22] sm:$0xff]  ;;  %v10343_v43 = vld [vmem:[%s14966_s16 + $0x32] sm:$0xff]  ;;  %v13936_v26 = vpack.c.bf16 %v10444_v62, %v10443_v3 }
 0x1d3   : > { %v16886_v3 = vld [vmem:[%s14966_s16 + $0x13c] sm:$0xff] }
 0x1d4   : > { %12858 = vmatmul.mubr.msk.f32.gmra.mrb[30].mxu1 %vm215_vm0, %v16101_v13  ;;  %v16862_v13 = vld [vmem:[%s14966_s16 + $0x114] sm:$0xff] }
 0x1d5   : > { %13562 = vmatmul.mubr.msk.f32.gmra.mrb[14].mxu0 %vm215_vm0, %v16841_v53  ;;  %12868 = vmatprep.mubr.msk.f32.mxu1 %vm215_vm0, %v10341_v51  ;;  %v10509_v53 = vld [vmem:[%s17852_s1 + $0x120] sm:$0xff]  ;;  %v10510_v51 = vld [vmem:[%s17852_s1 + $0x128] sm:$0xff] }
 0x1d6   : > { %13564 = vmatprep.mubr.msk.f32.mxu0 %vm215_vm0, %v16845_v63  ;;  %v10344_v63 = vld [vmem:[%s14966_s16 + $0x3a] sm:$0xff]  ;;  %v16888_v62 = vpack.c.bf16 %v10510_v51, %v10509_v53 }
 0x1d7   : > { %v11393_v53 = vld [vmem:[%s17852_s1 + $0x2c0] sm:$0xff] }
 0x1d8   : > { %12869 = vmatmul.mubr.msk.f32.vlgmr.msra.gmra.mrb[0].mxu1 %vm215_vm0, %v10342_v10  ;;  %v16883_v10 = vld [vmem:[%s14966_s16 + $0x12c] sm:$0xff]  ;;  %v11461_v51 = vld [vmem:[%s17852_s1 + $0x2e0] sm:$0xff] }
 0x1d9   : > { %13565 = vmatmul.mubr.msk.f32.gmra.mrb[16].mxu0 %vm215_vm0, %v16862_v13  ;;  %13935 = vmatpush3.bf16.msra.mxu1 %v16573_v44  ;;  %v16898_v44 = vld [vmem:[%s14966_s16 + $0x144] sm:$0xff] }
 0x1da   : > { %12871 = vmatprep.mubr.msk.f32.mxu1 %vm215_vm0, %v10343_v43  ;;  %13567 = vmatprep.mubr.msk.f32.mxu0 %vm215_vm0, %v16866_v33  ;;  %v16901_v43 = vld [vmem:[%s14966_s16 + $0x154] sm:$0xff] }
 0x1db   : > { %13937 = vmatprep.subr.bf16.mxu1 %v13936_v26 }
 0x1dc   : > { %12872 = vmatmul.mubr.msk.f32.gmra.mrb[2].mxu1 %vm215_vm0, %v10344_v63  ;;  %v11394_v63 = vld [vmem:[%s17852_s1 + $0x2c8] sm:$0xff] }
 0x1dd   : > { %13568 = vmatmul.mubr.msk.f32.gmra.mrb[18].mxu0 %vm215_vm0, %v16883_v10  ;;  %12874 = vmatprep.mubr.msk.f32.mxu1 %vm215_vm0, %v16121_v21  ;;  %v16913_v21 = vld [vmem:[%s14966_s16 + $0x15c] sm:$0xff] }
 0x1de   : > { %13570 = vmatprep.mubr.msk.f32.mxu0 %vm215_vm0, %v16886_v3  ;;  %13939 = vmatpush3.bf16.msra.mxu1 %v13936_v26  ;;  %v16916_v26 = vld [vmem:[%s14966_s16 + $0x16c] sm:$0xff] }
 0x1df   : > { %13941 = vmatprep.subr.bf16.mxu1 %v16888_v62 }
 0x1e0   : > { %12875 = vmatmul.mubr.msk.f32.gmra.mrb[4].mxu1 %vm215_vm0, %v16137_v29  ;;  %v16927_v29 = vld [vmem:[%s14966_s16 + $0x174] sm:$0xff] }
 0x1e1   : > { %13571 = vmatmul.mubr.msk.f32.gmra.mrb[20].mxu0 %vm215_vm0, %v16898_v44  ;;  %12877 = vmatprep.mubr.msk.f32.mxu1 %vm215_vm0, %v16140_v31  ;;  %v16930_v31 = vld [vmem:[%s14966_s16 + $0x184] sm:$0xff] }
 0x1e2   : > { %13573 = vmatprep.mubr.msk.f32.mxu0 %vm215_vm0, %v16901_v43 }
 0x1e4   : > { %12878 = vmatmul.mubr.msk.f32.gmra.mrb[6].mxu1 %vm215_vm0, %v16158_v7  ;;  %v16941_v7 = vld [vmem:[%s14966_s16 + $0x18c] sm:$0xff] }
 0x1e5   : > { %13574 = vmatmul.mubr.msk.f32.gmra.mrb[22].mxu0 %vm215_vm0, %v16913_v21  ;;  %12880 = vmatprep.mubr.msk.f32.mxu1 %vm215_vm0, %v16161_v41  ;;  %v11185_v41 = vld [vmem:[%s14966_s16 + $0x19c] sm:$0xff] }
 0x1e6   : > { %13576 = vmatprep.mubr.msk.f32.mxu0 %vm215_vm0, %v16916_v26 }
 0x1e8   : > { %12881 = vmatmul.mubr.msk.f32.gmra.mrb[8].mxu1 %vm215_vm0, %v16174_v32  ;;  %v11186_v32 = vld [vmem:[%s14966_s16 + $0x1a4] sm:$0xff] }
 0x1e9   : > { %13577 = vmatmul.mubr.msk.f32.gmra.mrb[24].mxu0 %vm215_vm0, %v16927_v29  ;;  %12883 = vmatprep.mubr.msk.f32.mxu1 %vm215_vm0, %v16177_v45  ;;  %v11187_v45 = vld [vmem:[%s14966_s16 + $0x1b4] sm:$0xff] }
 0x1ea   : > { %13579 = vmatprep.mubr.msk.f32.mxu0 %vm215_vm0, %v16930_v31 }
 0x1ec   : > { %12884 = vmatmul.mubr.msk.f32.gmra.mrb[10].mxu1 %vm215_vm0, %v16189_v47  ;;  %v11188_v47 = vld [vmem:[%s14966_s16 + $0x1bc] sm:$0xff] }
 0x1ed   : > { %13580 = vmatmul.mubr.msk.f32.gmra.mrb[26].mxu0 %vm215_vm0, %v16941_v7  ;;  %12886 = vmatprep.mubr.msk.f32.mxu1 %vm215_vm0, %v16192_v49  ;;  %v11327_v49 = vld [vmem:[%s17852_s1 + $0x2b0] sm:$0xff] }
 0x1ee   : > { %13582 = vmatprep.mubr.msk.f32.mxu0 %vm215_vm0, %v11185_v41  ;;  %v18163_v41 = vld [vmem:[#allocation13_spill] sm:$0xff] }
 0x1f0   : > { %12887 = vmatmul.mubr.msk.f32.gmra.mrb[12].mxu1 %vm215_vm0, %v16203_v38  ;;  %v11328_v38 = vld [vmem:[%s17852_s1 + $0x2b8] sm:$0xff] }
 0x1f1   : > { %13583 = vmatmul.mubr.msk.f32.gmra.mrb[28].mxu0 %vm215_vm0, %v11186_v32  ;;  %12889 = vmatprep.mubr.msk.f32.mxu1 %vm215_vm0, %v16206_v34  ;;  %v16974_v34 = vld [vmem:[%s14966_s16 + $0xf2] sm:$0xff]  ;;  %v18164_v32 = vld [vmem:[#allocation18_spill] sm:$0xff] }
 0x1f2   : > { %13585 = vmatprep.mubr.msk.f32.mxu0 %vm215_vm0, %v11187_v45  ;;  %v18165_v45 = vld [vmem:[#allocation14_spill] sm:$0xff] }
 0x1f4   : > { %12890 = vmatmul.mubr.msk.f32.gmra.mrb[14].mxu1 %vm215_vm0, %v16217_v8  ;;  %v14040_v8 = vpack.c.bf16 %v11328_v38, %v11327_v49  ;;  %v18167_v49 = vld [vmem:[#allocation15_spill] sm:$0xff]  ;;  %v18168_v38 = vld [vmem:[#allocation20_spill] sm:$0xff] }
 0x1f5   : > { %13586 = vmatmul.mubr.msk.f32.gmra.mrb[30].mxu0 %vm215_vm0, %v11188_v47  ;;  %12892 = vmatprep.mubr.msk.f32.mxu1 %vm215_vm0, %v16220_v15  ;;  %v16989_v15 = vld [vmem:[%s14966_s16 + $0xfa] sm:$0xff] }
 0x1f6   : > { %13596 = vmatprep.mubr.msk.f32.mxu0 %vm215_vm0, %v16282_v50  ;;  %v16997_v50 = vpack.c.bf16 %v11394_v63, %v11393_v53  ;;  %v18166_v47 = vld [vmem:[#allocation9_spill] sm:$0xff]  ;;  %v18170_v53 = vld [vmem:[#allocation10_spill] sm:$0xff] }
 0x1f7   : > { %v18171_v63 = vld [vmem:[#allocation17_spill] sm:$0xff] }
 0x1f8   : > { %12893 = vmatmul.mubr.msk.f32.gmra.mrb[16].mxu1 %vm215_vm0, %v16231_v28  ;;  %v16995_v28 = vld [vmem:[%s14966_s16 + $0x10a] sm:$0xff] }
 0x1f9   : > { %13597 = vmatmul.mubr.msk.f32.vlgmr.msra.gmra.mrb[0].mxu0 %vm215_vm0, %v16291_v52  ;;  %12895 = vmatprep.mubr.msk.f32.mxu1 %vm215_vm0, %v16974_v34  ;;  %v17006_v52 = vld [vmem:[%s14966_s16 + $0x112] sm:$0xff] }
 0x1fa   : > { %13599 = vmatprep.mubr.msk.f32.mxu0 %vm215_vm0, %v16296_v57  ;;  %14039 = vmatpush3.bf16.msra.mxu0 %v16732_v14  ;;  %v17011_v57 = vld [vmem:[%s14966_s16 + $0x122] sm:$0xff]  ;;  %v17040_v14 = vld [vmem:[%s14966_s16 + $0x152] sm:$0xff] }
 0x1fb   : > { %14041 = vmatprep.subr.bf16.mxu0 %v14040_v8 }
 0x1fc   : > { %12896 = vmatmul.mubr.msk.f32.gmra.mrb[18].mxu1 %vm215_vm0, %v16989_v15 }
 0x1fd   : > { %13600 = vmatmul.mubr.msk.f32.gmra.mrb[2].mxu0 %vm215_vm0, %v16305_v54  ;;  %12898 = vmatprep.mubr.msk.f32.mxu1 %vm215_vm0, %v16995_v28  ;;  %v17021_v54 = vld [vmem:[%s14966_s16 + $0x12a] sm:$0xff] }
 0x1fe   : > { %13602 = vmatprep.mubr.msk.f32.mxu0 %vm215_vm0, %v16310_v56  ;;  %14043 = vmatpush3.bf16.msra.mxu0 %v14040_v8  ;;  %v17026_v56 = vld [vmem:[%s14966_s16 + $0x13a] sm:$0xff]  ;;  %v18169_v8 = vld [vmem:[#allocation16_spill] sm:$0xff] }
 0x1ff   : > { %14045 = vmatprep.subr.bf16.mxu0 %v16997_v50 }
 0x200   : > { %12899 = vmatmul.mubr.msk.f32.gmra.mrb[20].mxu1 %vm215_vm0, %v17006_v52 }
 0x201   : > { %13603 = vmatmul.mubr.msk.f32.gmra.mrb[4].mxu0 %vm215_vm0, %v16322_v58  ;;  %12901 = vmatprep.mubr.msk.f32.mxu1 %vm215_vm0, %v17011_v57  ;;  %v17035_v58 = vld [vmem:[%s14966_s16 + $0x142] sm:$0xff] }
 0x202   : > { %13605 = vmatprep.mubr.msk.f32.mxu0 %vm215_vm0, %v16330_v55  ;;  %v17049_v55 = vld [vmem:[%s14966_s16 + $0x15a] sm:$0xff] }
 0x204   : > { %12902 = vmatmul.mubr.msk.f32.gmra.mrb[22].mxu1 %vm215_vm0, %v17021_v54 }
 0x205   : > { %13606 = vmatmul.mubr.msk.f32.gmra.mrb[6].mxu0 %vm215_vm0, %v16340_v60  ;;  %12904 = vmatprep.mubr.msk.f32.mxu1 %vm215_vm0, %v17026_v56  ;;  %v17054_v60 = vld [vmem:[%s14966_s16 + $0x16a] sm:$0xff] }
 0x206   : > { %13608 = vmatprep.mubr.msk.f32.mxu0 %vm215_vm0, %v16345_v4  ;;  %v17063_v4 = vld [vmem:[%s14966_s16 + $0x172] sm:$0xff] }
 0x208   : > { %12905 = vmatmul.mubr.msk.f32.gmra.mrb[24].mxu1 %vm215_vm0, %v17035_v58 }
 0x209   : > { %13609 = vmatmul.mubr.msk.f32.gmra.mrb[8].mxu0 %vm215_vm0, %v16354_v12  ;;  %12907 = vmatprep.mubr.msk.f32.mxu1 %vm215_vm0, %v17040_v14  ;;  %v10409_v12 = vld [vmem:[%s14966_s16 + $0x1b] sm:$0xff] }
 0x20a   : > { %13611 = vmatprep.mubr.msk.f32.mxu0 %vm215_vm0, %v16359_v16  ;;  %v10511_v16 = vld [vmem:[%s17852_s1 + $0x130] sm:$0xff] }
 0x20c   : > { %12908 = vmatmul.mubr.msk.f32.gmra.mrb[26].mxu1 %vm215_vm0, %v17049_v55 }
 0x20d   : > { %13612 = vmatmul.mubr.msk.f32.gmra.mrb[10].mxu0 %vm215_vm0, %v16376_v17  ;;  %12910 = vmatprep.mubr.msk.f32.mxu1 %vm215_vm0, %v17054_v60  ;;  %v10512_v17 = vld [vmem:[%s17852_s1 + $0x138] sm:$0xff] }
 0x20e   : > { %13614 = vmatprep.mubr.msk.f32.mxu0 %vm215_vm0, %v16384_v22  ;;  %v10411_v22 = vld [vmem:[%s14966_s16 + $0x33] sm:$0xff] }
 0x210   : > { %12911 = vmatmul.mubr.msk.f32.gmra.mrb[28].mxu1 %vm215_vm0, %v17063_v4 }
 0x211   : > { %13615 = vmatmul.mubr.msk.f32.gmra.mrb[12].mxu0 %vm215_vm0, %v16402_v36  ;;  %12913 = vmatprep.mubr.msk.f32.mxu1 %vm215_vm0, %v16313_v37  ;;  %v10410_v37 = vld [vmem:[%s14966_s16 + $0x23] sm:$0xff]  ;;  %v13944_v36 = vpack.c.bf16 %v10512_v17, %v10511_v16 }
 0x212   : > { %13617 = vmatprep.mubr.msk.f32.mxu0 %vm215_vm0, %v16411_v1  ;;  %v10578_v1 = vld [vmem:[%s17852_s1 + $0x148] sm:$0xff]  ;;  %v18175_v17 = vld [vmem:[#allocation34_spill] sm:$0xff] }
 0x213   : > { %v18174_v16 = vld [vmem:[#allocation11_spill] sm:$0xff] }
 0x214   : > { %12914 = vmatmul.mubr.msk.f32.gmra.mrb[30].mxu1 %vm215_vm0, %v16327_v59  ;;  %v10577_v59 = vld [vmem:[%s17852_s1 + $0x140] sm:$0xff] }
 0x215   : > { %13618 = vmatmul.mubr.msk.f32.gmra.mrb[14].mxu0 %vm215_vm0, %v16425_v30  ;;  %12924 = vmatprep.mubr.msk.f32.mxu1 %vm215_vm0, %v10409_v12  ;;  %v10412_v30 = vld [vmem:[%s14966_s16 + $0x3b] sm:$0xff]  ;;  %v18173_v12 = vld [vmem:[#allocation19_spill] sm:$0xff] }
 0x216   : > { %13620 = vmatprep.mubr.msk.f32.mxu0 %vm215_vm0, %v16433_v39  ;;  %v17105_v39 = vpack.c.bf16 %v10578_v1, %v10577_v59  ;;  %v18179_v59 = vld [vmem:[#allocation36_spill] sm:$0xff]  ;;  %v18180_v1 = vld [vmem:[#allocation26_spill] sm:$0xff] }
 0x218   : > { %12925 = vmatmul.mubr.msk.f32.vlgmr.msra.gmra.mrb[0].mxu1 %vm215_vm0, %v10410_v37  ;;  %v18176_v37 = vld [vmem:[#allocation24_spill] sm:$0xff] }
 0x219   : > { %13621 = vmatmul.mubr.msk.f32.gmra.mrb[16].mxu0 %vm215_vm0, %v16446_v6  ;;  %13943 = vmatpush3.bf16.msra.mxu1 %v16888_v62  ;;  %v11255_v6 = vld [vmem:[%s14966_s16 + $0x1c8] sm:$0xff] }
 0x21a   : > { %12927 = vmatprep.mubr.msk.f32.mxu1 %vm215_vm0, %v10411_v22  ;;  %13623 = vmatprep.mubr.msk.f32.mxu0 %vm215_vm0, %v16454_v27  ;;  %v18159_v27 = vld [vmem:[#allocation5_spill] sm:$0xff]  ;;  %v11462_v62 = vld [vmem:[%s17852_s1 + $0x2e8] sm:$0xff] }
 0x21b   : > { %13945 = vmatprep.subr.bf16.mxu1 %v13944_v36  ;;  %v18177_v22 = vld [vmem:[#allocation21_spill] sm:$0xff] }
 0x21c   : > { %12928 = vmatmul.mubr.msk.f32.gmra.mrb[2].mxu1 %vm215_vm0, %v10412_v30  ;;  %v18181_v30 = vld [vmem:[#allocation23_spill] sm:$0xff] }
 0x21d   : > { %13624 = vmatmul.mubr.msk.f32.gmra.mrb[18].mxu0 %vm215_vm0, %v16466_v42  ;;  %12930 = vmatprep.mubr.msk.f32.mxu1 %vm215_vm0, %v16362_v5  ;;  %v17124_v5 = vld [vmem:[%s14966_s16 + $0x180] sm:$0xff] }
 0x21e   : > { %13626 = vmatprep.mubr.msk.f32.mxu0 %vm215_vm0, %v16474_v46  ;;  %13947 = vmatpush3.bf16.msra.mxu1 %v13944_v36  ;;  %v18160_v42 = vld [vmem:[#allocation6_spill] sm:$0xff]  ;;  %v11396_v46 = vld [vmem:[%s17852_s1 + $0x2d8] sm:$0xff]  ;;  %v18178_v36 = vld [vmem:[#allocation12_spill] sm:$0xff] }
 0x21f   : > { %13949 = vmatprep.subr.bf16.mxu1 %v17105_v39 }
 0x220   : > { %12931 = vmatmul.mubr.msk.f32.gmra.mrb[4].mxu1 %vm215_vm0, %v16381_v19  ;;  %v17135_v19 = vld [vmem:[%s14966_s16 + $0x188] sm:$0xff] }
 0x221   : > { %13627 = vmatmul.mubr.msk.f32.gmra.mrb[20].mxu0 %vm215_vm0, %v16486_v48  ;;  %12933 = vmatprep.mubr.msk.f32.mxu1 %vm215_vm0, %v16387_v23  ;;  %v17138_v23 = vld [vmem:[%s14966_s16 + $0x198] sm:$0xff]  ;;  %v18161_v48 = vld [vmem:[#allocation7_spill] sm:$0xff] }
 0x222   : > { %13629 = vmatprep.mubr.msk.f32.mxu0 %vm215_vm0, %v16494_v2 }
 0x224   : > { %12934 = vmatmul.mubr.msk.f32.gmra.mrb[6].mxu1 %vm215_vm0, %v16408_v40  ;;  %v17149_v40 = vld [vmem:[%s14966_s16 + $0x1a0] sm:$0xff] }
 0x225   : > { %13630 = vmatmul.mubr.msk.f32.gmra.mrb[22].mxu0 %vm215_vm0, %v16506_v9  ;;  %12936 = vmatprep.mubr.msk.f32.mxu1 %vm215_vm0, %v16414_v0  ;;  %v11253_v0 = vld [vmem:[%s14966_s16 + $0x1b0] sm:$0xff] }
 0x226   : > { %13632 = vmatprep.mubr.msk.f32.mxu0 %vm215_vm0, %v17124_v5  ;;  %v18162_v9 = vld [vmem:[#allocation8_spill] sm:$0xff] }
 0x228   : > { %12937 = vmatmul.mubr.msk.f32.gmra.mrb[8].mxu1 %vm215_vm0, %v16430_v18  ;;  %v11254_v18 = vld [vmem:[%s14966_s16 + $0x1b8] sm:$0xff] }
 0x229   : > { %13633 = vmatmul.mubr.msk.f32.gmra.mrb[24].mxu0 %vm215_vm0, %v17135_v19  ;;  %12939 = vmatprep.mubr.msk.f32.mxu1 %vm215_vm0, %v16436_v20  ;;  %v18158_v20 = vld [vmem:[#allocation4_spill] sm:$0xff] }
 0x22a   : > { %13635 = vmatprep.mubr.msk.f32.mxu0 %vm215_vm0, %v17138_v23 }
 0x22c   : > { %12940 = vmatmul.mubr.msk.f32.gmra.mrb[10].mxu1 %vm215_vm0, %v16451_v25  ;;  %v11256_v25 = vld [vmem:[%s14966_s16 + $0x1d0] sm:$0xff] }
 0x22d   : > { %13636 = vmatmul.mubr.msk.f32.gmra.mrb[26].mxu0 %vm215_vm0, %v17149_v40  ;;  %12942 = vmatprep.mubr.msk.f32.mxu1 %vm215_vm0, %v16457_v35  ;;  %v11395_v35 = vld [vmem:[%s17852_s1 + $0x2d0] sm:$0xff] }
 0x22e   : > { %13638 = vmatprep.mubr.msk.f32.mxu0 %vm215_vm0, %v11253_v0  ;;  %v14048_v2 = vpack.c.bf16 %v11396_v46, %v11395_v35  ;;  %v18182_v0 = vld [vmem:[#allocation28_spill] sm:$0xff]  ;;  %v10580_v46 = vld [vmem:[%s17852_s1 + $0x158] sm:$0xff] }
 0x22f   : > { %v18188_v35 = vld [vmem:[#allocation32_spill] sm:$0xff] }
 0x230   : > { %12943 = vmatmul.mubr.msk.f32.gmra.mrb[12].mxu1 %vm215_vm0, %v18158_v20  ;;  %v18185_v20 = vld [vmem:[#allocation30_spill] sm:$0xff] }
 0x231   : > { %13639 = vmatmul.mubr.msk.f32.gmra.mrb[28].mxu0 %vm215_vm0, %v11254_v18  ;;  %12945 = vmatprep.mubr.msk.f32.mxu1 %vm215_vm0, %v18159_v27  ;;  %v18183_v18 = vld [vmem:[#allocation25_spill] sm:$0xff]  ;;  %v18186_v27 = vld [vmem:[#allocation31_spill] sm:$0xff] }
 0x232   : > { %13641 = vmatprep.mubr.msk.f32.mxu0 %vm215_vm0, %v11255_v6  ;;  %v18184_v6 = vld [vmem:[#allocation29_spill] sm:$0xff] }
 0x234   : > { %12946 = vmatmul.mubr.msk.f32.gmra.mrb[14].mxu1 %vm215_vm0, %v18160_v42  ;;  %v10477_v42 = vld [vmem:[%s14966_s16 + $0x1c] sm:$0xff] }
 0x235   : > { %13642 = vmatmul.mubr.msk.f32.gmra.mrb[30].mxu0 %vm215_vm0, %v11256_v25  ;;  %12948 = vmatprep.mubr.msk.f32.mxu1 %vm215_vm0, %v18161_v48  ;;  %v18187_v25 = vld [vmem:[#allocation44_spill] sm:$0xff]  ;;  %v10478_v48 = vld [vmem:[%s14966_s16 + $0x24] sm:$0xff] }
 0x236   : > { %13652 = vmatprep.mubr.msk.f32.mxu0 %vm215_vm0, %v16586_v61  ;;  %v17196_v61 = vpack.c.bf16 %v11462_v62, %v11461_v51  ;;  %v10645_v62 = vld [vmem:[%s17852_s1 + $0x160] sm:$0xff] }
 0x238   : > { %12949 = vmatmul.mubr.msk.f32.gmra.mrb[16].mxu1 %vm215_vm0, %v18162_v9  ;;  %v10479_v9 = vld [vmem:[%s14966_s16 + $0x34] sm:$0xff] }
 0x239   : > { %13653 = vmatmul.mubr.msk.f32.vlgmr.msra.gmra.mrb[0].mxu0 %vm215_vm0, %v18163_v41  ;;  %12951 = vmatprep.mubr.msk.f32.mxu1 %vm215_vm0, %v18164_v32  ;;  %v10646_v41 = vld [vmem:[%s17852_s1 + $0x168] sm:$0xff] }
 0x23a   : > { %13655 = vmatprep.mubr.msk.f32.mxu0 %vm215_vm0, %v18165_v45  ;;  %14047 = vmatpush3.bf16.msra.mxu0 %v16997_v50  ;;  %v18172_v50 = vld [vmem:[#allocation22_spill] sm:$0xff]  ;;  %v18191_v32 = vld [vmem:[#allocation35_spill] sm:$0xff] }
 0x23b   : > { %14049 = vmatprep.subr.bf16.mxu0 %v14048_v2  ;;  %v10480_v45 = vld [vmem:[%s14966_s16 + $0x3c] sm:$0xff] }
 0x23c   : > { %12952 = vmatmul.mubr.msk.f32.gmra.mrb[18].mxu1 %vm215_vm0, %v18166_v47  ;;  %v18192_v47 = vld [vmem:[#allocation37_spill] sm:$0xff] }
 0x23d   : > { %13656 = vmatmul.mubr.msk.f32.gmra.mrb[2].mxu0 %vm215_vm0, %v18167_v49  ;;  %12954 = vmatprep.mubr.msk.f32.mxu1 %vm215_vm0, %v18168_v38  ;;  %v17277_v49 = vpack.c.bf16 %v10646_v41, %v10645_v62  ;;  %v18193_v38 = vld [vmem:[#allocation39_spill] sm:$0xff]  ;;  %v11363_v62 = vld [vmem:[%s14966_s16 + $0x7a] sm:$0xff] }
 0x23e   : > { %13658 = vmatprep.mubr.msk.f32.mxu0 %vm215_vm0, %v18169_v8  ;;  %14051 = vmatpush3.bf16.msra.mxu0 %v14048_v2  ;;  %v18190_v2 = vld [vmem:[#allocation33_spill] sm:$0xff]  ;;  %v18194_v8 = vld [vmem:[#allocation38_spill] sm:$0xff] }
 0x23f   : > { %14053 = vmatprep.subr.bf16.mxu0 %v17196_v61 }
 0x240   : > { %12955 = vmatmul.mubr.msk.f32.gmra.mrb[20].mxu1 %vm215_vm0, %v18170_v53  ;;  %v18196_v53 = vld [vmem:[#allocation40_spill] sm:$0xff] }
 0x241   : > { %13659 = vmatmul.mubr.msk.f32.gmra.mrb[4].mxu0 %vm215_vm0, %v18171_v63  ;;  %12957 = vmatprep.mubr.msk.f32.mxu1 %vm215_vm0, %v18172_v50  ;;  %v18197_v63 = vld [vmem:[#allocation43_spill] sm:$0xff] }
 0x242   : > { %13661 = vmatprep.mubr.msk.f32.mxu0 %vm215_vm0, %v18173_v12  ;;  %v18198_v50 = vld [vmem:[#allocation27_spill] sm:$0xff]  ;;  %v18199_v12 = vld [vmem:[#allocation45_spill] sm:$0xff] }
 0x244   : > { %12958 = vmatmul.mubr.msk.f32.gmra.mrb[22].mxu1 %vm215_vm0, %v18174_v16  ;;  %v17296_v16 = vld [vmem:[%s14966_s16 + $0x181] sm:$0xff] }
 0x245   : > { %13662 = vmatmul.mubr.msk.f32.gmra.mrb[6].mxu0 %vm215_vm0, %v18175_v17  ;;  %12960 = vmatprep.mubr.msk.f32.mxu1 %vm215_vm0, %v18176_v37  ;;  %v18200_v17 = vld [vmem:[#allocation42_spill] sm:$0xff]  ;;  %v18201_v37 = vld [vmem:[#allocation49_spill] sm:$0xff] }
 0x246   : > { %13664 = vmatprep.mubr.msk.f32.mxu0 %vm215_vm0, %v18177_v22  ;;  %v18202_v22 = vld [vmem:[#allocation46_spill] sm:$0xff] }
 0x248   : > { %12961 = vmatmul.mubr.msk.f32.gmra.mrb[24].mxu1 %vm215_vm0, %v18178_v36  ;;  %v17307_v36 = vld [vmem:[%s14966_s16 + $0x189] sm:$0xff] }
 0x249   : > { %13665 = vmatmul.mubr.msk.f32.gmra.mrb[8].mxu0 %vm215_vm0, %v18179_v59  ;;  %12963 = vmatprep.mubr.msk.f32.mxu1 %vm215_vm0, %v18180_v1  ;;  %v17310_v59 = vld [vmem:[%s14966_s16 + $0x199] sm:$0xff] }
 0x24a   : > { %13667 = vmatprep.mubr.msk.f32.mxu0 %vm215_vm0, %v18181_v30  ;;  %v18203_v1 = vld [vmem:[#allocation50_spill] sm:$0xff]  ;;  %v18204_v30 = vld [vmem:[#allocation52_spill] sm:$0xff] }
 0x24c   : > { %12964 = vmatmul.mubr.msk.f32.gmra.mrb[26].mxu1 %vm215_vm0, %v18182_v0  ;;  %v17321_v0 = vld [vmem:[%s14966_s16 + $0x1a1] sm:$0xff] }
 0x24d   : > { %13668 = vmatmul.mubr.msk.f32.gmra.mrb[10].mxu0 %vm215_vm0, %v18183_v18  ;;  %12966 = vmatprep.mubr.msk.f32.mxu1 %vm215_vm0, %v18184_v6  ;;  %v11321_v18 = vld [vmem:[%s14966_s16 + $0x1b1] sm:$0xff]  ;;  %v18205_v6 = vld [vmem:[#allocation54_spill] sm:$0xff] }
 0x24e   : > { %13670 = vmatprep.mubr.msk.f32.mxu0 %vm215_vm0, %v16700_v24  ;;  %v10579_v24 = vld [vmem:[%s17852_s1 + $0x150] sm:$0xff] }
 0x24f   : > { %v13952_v51 = vpack.c.bf16 %v10580_v46, %v10579_v24  ;;  %v11324_v24 = vld [vmem:[%s14966_s16 + $0x1d1] sm:$0xff]  ;;  %v11361_v46 = vld [vmem:[%s14966_s16 + $0x62] sm:$0xff] }
 0x250   : > { %12967 = vmatmul.mubr.msk.f32.gmra.mrb[28].mxu1 %vm215_vm0, %v18185_v20  ;;  %v18206_v20 = vld [vmem:[#allocation56_spill] sm:$0xff] }
 0x251   : > { %13671 = vmatmul.mubr.msk.f32.gmra.mrb[12].mxu0 %vm215_vm0, %v16718_v11  ;;  %12969 = vmatprep.mubr.msk.f32.mxu1 %vm215_vm0, %v18186_v27  ;;  %v18189_v11 = vld [vmem:[#allocation48_spill] sm:$0xff]  ;;  %v11322_v27 = vld [vmem:[%s14966_s16 + $0x1b9] sm:$0xff] }
 0x252   : > { %13673 = vmatprep.mubr.msk.f32.mxu0 %vm215_vm0, %v18187_v25  ;;  %v11323_v25 = vld [vmem:[%s14966_s16 + $0x1c9] sm:$0xff] }
 0x254   : > { %12970 = vmatmul.mubr.msk.f32.gmra.mrb[30].mxu1 %vm215_vm0, %v18188_v35  ;;  %v18208_v35 = vld [vmem:[#allocation60_spill] sm:$0xff] }
 0x255   : > { %13674 = vmatmul.mubr.msk.f32.gmra.mrb[14].mxu0 %vm215_vm0, %v18189_v11  ;;  %12980 = vmatprep.mubr.msk.f32.mxu1 %vm215_vm0, %v10477_v42  ;;  %v18207_v42 = vld [vmem:[#allocation58_spill] sm:$0xff] }
 0x256   : > { %13676 = vmatprep.mubr.msk.f32.mxu0 %vm215_vm0, %v18190_v2  ;;  %v18209_v11 = vld [vmem:[#allocation62_spill] sm:$0xff]  ;;  %v11464_v2 = vld [vmem:[%s17852_s1 + $0x2f8] sm:$0xff] }
 0x258   : > { %12981 = vmatmul.mubr.msk.f32.vlgmr.msra.gmra.mrb[0].mxu1 %vm215_vm0, %v10478_v48  ;;  %v11463_v48 = vld [vmem:[%s17852_s1 + $0x2f0] sm:$0xff] }
 0x259   : > { %13677 = vmatmul.mubr.msk.f32.gmra.mrb[16].mxu0 %vm215_vm0, %v18191_v32  ;;  %13951 = vmatpush3.bf16.msra.mxu1 %v17105_v39  ;;  %v18195_v39 = vld [vmem:[#allocation41_spill] sm:$0xff]  ;;  %v14056_v41 = vpack.c.bf16 %v11464_v2, %v11463_v48  ;;  %v18211_v32 = vld [vmem:[#allocation51_spill] sm:$0xff] }
 0x25a   : > { %12983 = vmatprep.mubr.msk.f32.mxu1 %vm215_vm0, %v10479_v9  ;;  %13679 = vmatprep.mubr.msk.f32.mxu0 %vm215_vm0, %v18192_v47  ;;  %v18210_v9 = vld [vmem:[#allocation47_spill] sm:$0xff]  ;;  %v11431_v2 = vld [vmem:[%s14966_s16 + $0x7b] sm:$0xff] }
 0x25b   : > { %13953 = vmatprep.subr.bf16.mxu1 %v13952_v51  ;;  %v11530_v47 = vld [vmem:[%s17852_s1 + $0x308] sm:$0xff] }
 0x25c   : > { %12984 = vmatmul.mubr.msk.f32.gmra.mrb[2].mxu1 %vm215_vm0, %v10480_v45  ;;  %v11529_v45 = vld [vmem:[%s17852_s1 + $0x300] sm:$0xff]  ;;  %v10563_v48 = vld [vmem:[%s14966_s16 + $0x108] sm:$0xff] }
 0x25d   : > { %13680 = vmatmul.mubr.msk.f32.gmra.mrb[18].mxu0 %vm215_vm0, %v18193_v38  ;;  %12986 = vmatprep.mubr.msk.f32.mxu1 %vm215_vm0, %v18194_v8  ;;  %v18212_v38 = vld [vmem:[#allocation53_spill] sm:$0xff]  ;;  %v11364_v8 = vld [vmem:[%s14966_s16 + $0x82] sm:$0xff] }
 0x25e   : > { %13682 = vmatprep.mubr.msk.f32.mxu0 %vm215_vm0, %v18195_v39  ;;  %13955 = vmatpush3.bf16.msra.mxu1 %v13952_v51  ;;  %v11362_v51 = vld [vmem:[%s14966_s16 + $0x6a] sm:$0xff]  ;;  %v11365_v39 = vld [vmem:[%s14966_s16 + $0x92] sm:$0xff] }
 0x25f   : > { %13957 = vmatprep.subr.bf16.mxu1 %v17277_v49 }
 0x260   : > { %12987 = vmatmul.mubr.msk.f32.gmra.mrb[4].mxu1 %vm215_vm0, %v18196_v53  ;;  %v17370_v53 = vpack.c.bf16 %v11530_v47, %v11529_v45  ;;  %v10566_v45 = vld [vmem:[%s14966_s16 + $0x128] sm:$0xff]  ;;  %v11434_v47 = vld [vmem:[%s14966_s16 + $0x9b] sm:$0xff] }
 0x261   : > { %13683 = vmatmul.mubr.msk.f32.gmra.mrb[20].mxu0 %vm215_vm0, %v18197_v63  ;;  %12989 = vmatprep.mubr.msk.f32.mxu1 %vm215_vm0, %v18198_v50  ;;  %v18213_v63 = vld [vmem:[#allocation55_spill] sm:$0xff]  ;;  %v18214_v50 = vld [vmem:[#allocation57_spill] sm:$0xff] }
 0x262   : > { %13685 = vmatprep.mubr.msk.f32.mxu0 %vm215_vm0, %v18199_v12  ;;  %v11367_v12 = vld [vmem:[%s14966_s16 + $0xaa] sm:$0xff] }
 0x264   : > { %12990 = vmatmul.mubr.msk.f32.gmra.mrb[6].mxu1 %vm215_vm0, %v18200_v17  ;;  %v11368_v17 = vld [vmem:[%s14966_s16 + $0xb2] sm:$0xff] }
 0x265   : > { %13686 = vmatmul.mubr.msk.f32.gmra.mrb[22].mxu0 %vm215_vm0, %v18201_v37  ;;  %12992 = vmatprep.mubr.msk.f32.mxu1 %vm215_vm0, %v18202_v22  ;;  %v11369_v37 = vld [vmem:[%s14966_s16 + $0xc2] sm:$0xff]  ;;  %v11371_v22 = vld [vmem:[%s14966_s16 + $0xda] sm:$0xff] }
 0x266   : > { %13688 = vmatprep.mubr.msk.f32.mxu0 %vm215_vm0, %v17296_v16 }
 0x268   : > { %12993 = vmatmul.mubr.msk.f32.gmra.mrb[8].mxu1 %vm215_vm0, %v18203_v1  ;;  %v10558_v1 = vld [vmem:[%s14966_s16 + $0xc8] sm:$0xff] }
 0x269   : > { %13689 = vmatmul.mubr.msk.f32.gmra.mrb[24].mxu0 %vm215_vm0, %v17307_v36  ;;  %12995 = vmatprep.mubr.msk.f32.mxu1 %vm215_vm0, %v18204_v30  ;;  %v11390_v30 = vld [vmem:[%s14966_s16 + $0x1ba] sm:$0xff] }
 0x26a   : > { %13691 = vmatprep.mubr.msk.f32.mxu0 %vm215_vm0, %v17310_v59 }
 0x26c   : > { %12996 = vmatmul.mubr.msk.f32.gmra.mrb[10].mxu1 %vm215_vm0, %v18205_v6  ;;  %v11391_v6 = vld [vmem:[%s14966_s16 + $0x1ca] sm:$0xff] }
 0x26d   : > { %13692 = vmatmul.mubr.msk.f32.gmra.mrb[26].mxu0 %vm215_vm0, %v17321_v0  ;;  %12998 = vmatprep.mubr.msk.f32.mxu1 %vm215_vm0, %v18206_v20  ;;  %v10560_v20 = vld [vmem:[%s14966_s16 + $0xe0] sm:$0xff] }
 0x26e   : > { %13694 = vmatprep.mubr.msk.f32.mxu0 %vm215_vm0, %v11321_v18  ;;  %v10559_v18 = vld [vmem:[%s14966_s16 + $0xd8] sm:$0xff] }
 0x270   : > { %12999 = vmatmul.mubr.msk.f32.gmra.mrb[12].mxu1 %vm215_vm0, %v18207_v42  ;;  %v11429_v42 = vld [vmem:[%s14966_s16 + $0x63] sm:$0xff] }
 0x271   : > { %13695 = vmatmul.mubr.msk.f32.gmra.mrb[28].mxu0 %vm215_vm0, %v11322_v27  ;;  %13001 = vmatprep.mubr.msk.f32.mxu1 %vm215_vm0, %v18208_v35  ;;  %v11392_v27 = vld [vmem:[%s14966_s16 + $0x1d2] sm:$0xff] }
 0x272   : > { %13697 = vmatprep.mubr.msk.f32.mxu0 %vm215_vm0, %v11323_v25  ;;  %v10561_v25 = vld [vmem:[%s14966_s16 + $0xf0] sm:$0xff] }
 0x273   : > { %v11531_v35 = vld [vmem:[%s17852_s1 + $0x310] sm:$0xff] }
 0x274   : > { %13002 = vmatmul.mubr.msk.f32.gmra.mrb[14].mxu1 %vm215_vm0, %v18209_v11  ;;  %v11430_v11 = vld [vmem:[%s14966_s16 + $0x6b] sm:$0xff] }
 0x275   : > { %13698 = vmatmul.mubr.msk.f32.gmra.mrb[30].mxu0 %vm215_vm0, %v11324_v24  ;;  %13004 = vmatprep.mubr.msk.f32.mxu1 %vm215_vm0, %v18210_v9  ;;  %v11532_v24 = vld [vmem:[%s17852_s1 + $0x318] sm:$0xff] }
 0x276   : > { %13708 = vmatprep.mubr.msk.f32.mxu0 %vm215_vm0, %v11361_v46  ;;  %v10562_v46 = vld [vmem:[%s14966_s16 + $0xf8] sm:$0xff]  ;;  %v14064_v9 = vpack.c.bf16 %v11532_v24, %v11531_v35  ;;  %v10626_v35 = vld [vmem:[%s14966_s16 + $0xc9] sm:$0xff] }
 0x277   : > { %v11458_v24 = vld [vmem:[%s14966_s16 + $0x1bb] sm:$0xff] }
 0x278   : > { %13005 = vmatmul.mubr.msk.f32.gmra.mrb[16].mxu1 %vm215_vm0, %v18211_v32  ;;  %v11433_v32 = vld [vmem:[%s14966_s16 + $0x93] sm:$0xff] }
 0x279   : > { %13709 = vmatmul.mubr.msk.f32.vlgmr.msra.gmra.mrb[0].mxu0 %vm215_vm0, %v11362_v51  ;;  %13007 = vmatprep.mubr.msk.f32.mxu1 %vm215_vm0, %v18212_v38  ;;  %v10564_v51 = vld [vmem:[%s14966_s16 + $0x110] sm:$0xff]  ;;  %v10567_v38 = vld [vmem:[%s14966_s16 + $0x138] sm:$0xff] }
 0x27a   : > { %13711 = vmatprep.mubr.msk.f32.mxu0 %vm215_vm0, %v11363_v62  ;;  %14055 = vmatpush3.bf16.msra.mxu0 %v17196_v61  ;;  %v11366_v61 = vld [vmem:[%s14966_s16 + $0x9a] sm:$0xff]  ;;  %v11432_v62 = vld [vmem:[%s14966_s16 + $0x83] sm:$0xff] }
 0x27b   : > { %14057 = vmatprep.subr.bf16.mxu0 %v14056_v41 }
 0x27c   : > { %13008 = vmatmul.mubr.msk.f32.gmra.mrb[18].mxu1 %vm215_vm0, %v18213_v63  ;;  %v10569_v63 = vld [vmem:[%s14966_s16 + $0x150] sm:$0xff] }
 0x27d   : > { %13712 = vmatmul.mubr.msk.f32.gmra.mrb[2].mxu0 %vm215_vm0, %v11364_v8  ;;  %13010 = vmatprep.mubr.msk.f32.mxu1 %vm215_vm0, %v18214_v50  ;;  %v11435_v8 = vld [vmem:[%s14966_s16 + $0xab] sm:$0xff]  ;;  %v11437_v50 = vld [vmem:[%s14966_s16 + $0xc3] sm:$0xff] }
 0x27e   : > { %13714 = vmatprep.mubr.msk.f32.mxu0 %vm215_vm0, %v11365_v39  ;;  %14059 = vmatpush3.bf16.msra.mxu0 %v14056_v41  ;;  %v10565_v41 = vld [vmem:[%s14966_s16 + $0x120] sm:$0xff] }
 0x27f   : > { %14061 = vmatprep.subr.bf16.mxu0 %v17370_v53  ;;  %v10568_v39 = vld [vmem:[%s14966_s16 + $0x140] sm:$0xff] }
 0x280   : > { %13011 = vmatmul.mubr.msk.f32.gmra.mrb[20].mxu1 %vm215_vm0, %v16862_v13  ;;  %v11370_v13 = vld [vmem:[%s14966_s16 + $0xca] sm:$0xff] }
 0x281   : > { %13715 = vmatmul.mubr.msk.f32.gmra.mrb[4].mxu0 %vm215_vm0, %v11366_v61  ;;  %13013 = vmatprep.mubr.msk.f32.mxu1 %vm215_vm0, %v16866_v33  ;;  %v11372_v33 = vld [vmem:[%s14966_s16 + $0xe2] sm:$0xff]  ;;  %v10570_v61 = vld [vmem:[%s14966_s16 + $0x158] sm:$0xff] }
 0x282   : > { %13717 = vmatprep.mubr.msk.f32.mxu0 %vm215_vm0, %v11367_v12  ;;  %v11438_v12 = vld [vmem:[%s14966_s16 + $0xcb] sm:$0xff] }
 0x284   : > { %13014 = vmatmul.mubr.msk.f32.gmra.mrb[22].mxu1 %vm215_vm0, %v16883_v10  ;;  %v10545_v10 = vld [vmem:[%s14966_s16 + $0x30] sm:$0xff] }
 0x285   : > { %13718 = vmatmul.mubr.msk.f32.gmra.mrb[6].mxu0 %vm215_vm0, %v11368_v17  ;;  %13016 = vmatprep.mubr.msk.f32.mxu1 %vm215_vm0, %v16886_v3  ;;  %v10647_v3 = vld [vmem:[%s17852_s1 + $0x170] sm:$0xff]  ;;  %v10571_v17 = vld [vmem:[%s14966_s16 + $0x168] sm:$0xff] }
 0x286   : > { %13720 = vmatprep.mubr.msk.f32.mxu0 %vm215_vm0, %v11369_v37  ;;  %v11439_v37 = vld [vmem:[%s14966_s16 + $0xdb] sm:$0xff] }
 0x288   : > { %13017 = vmatmul.mubr.msk.f32.gmra.mrb[24].mxu1 %vm215_vm0, %v16898_v44  ;;  %v10648_v44 = vld [vmem:[%s17852_s1 + $0x178] sm:$0xff] }
 0x289   : > { %13721 = vmatmul.mubr.msk.f32.gmra.mrb[8].mxu0 %vm215_vm0, %v11370_v13  ;;  %13019 = vmatprep.mubr.msk.f32.mxu1 %vm215_vm0, %v16901_v43  ;;  %v10546_v43 = vld [vmem:[%s14966_s16 + $0x38] sm:$0xff]  ;;  %v10572_v13 = vld [vmem:[%s14966_s16 + $0x170] sm:$0xff] }
 0x28a   : > { %13723 = vmatprep.mubr.msk.f32.mxu0 %vm215_vm0, %v11371_v22  ;;  %v11440_v22 = vld [vmem:[%s14966_s16 + $0xe3] sm:$0xff] }
 0x28c   : > { %13020 = vmatmul.mubr.msk.f32.gmra.mrb[26].mxu1 %vm215_vm0, %v16913_v21  ;;  %v10547_v21 = vld [vmem:[%s14966_s16 + $0x48] sm:$0xff] }
 0x28d   : > { %13724 = vmatmul.mubr.msk.f32.gmra.mrb[10].mxu0 %vm215_vm0, %v11372_v33  ;;  %13022 = vmatprep.mubr.msk.f32.mxu1 %vm215_vm0, %v16916_v26  ;;  %v13960_v26 = vpack.c.bf16 %v10648_v44, %v10647_v3  ;;  %v11441_v33 = vld [vmem:[%s14966_s16 + $0xf3] sm:$0xff]  ;;  %v11443_v3 = vld [vmem:[%s14966_s16 + $0x10b] sm:$0xff] }
 0x28e   : > { %13726 = vmatprep.mubr.msk.f32.mxu0 %vm215_vm0, %v16974_v34  ;;  %v10551_v34 = vld [vmem:[%s14966_s16 + $0x78] sm:$0xff] }
 0x28f   : > { %v11444_v44 = vld [vmem:[%s14966_s16 + $0x113] sm:$0xff] }
 0x290   : > { %13023 = vmatmul.mubr.msk.f32.gmra.mrb[28].mxu1 %vm215_vm0, %v16927_v29  ;;  %v10548_v29 = vld [vmem:[%s14966_s16 + $0x50] sm:$0xff] }
 0x291   : > { %13727 = vmatmul.mubr.msk.f32.gmra.mrb[12].mxu0 %vm215_vm0, %v16989_v15  ;;  %13025 = vmatprep.mubr.msk.f32.mxu1 %vm215_vm0, %v16930_v31  ;;  %v10549_v31 = vld [vmem:[%s14966_s16 + $0x60] sm:$0xff] }
 0x292   : > { %13729 = vmatprep.mubr.msk.f32.mxu0 %vm215_vm0, %v16995_v28  ;;  %v18215_v15 = vld [vmem:[#allocation2_spill] sm:$0xff] }
 0x293   : > { %v10552_v28 = vld [vmem:[%s14966_s16 + $0x80] sm:$0xff] }
 0x294   : > { %13026 = vmatmul.mubr.msk.f32.gmra.mrb[30].mxu1 %vm215_vm0, %v16941_v7  ;;  %v10550_v7 = vld [vmem:[%s14966_s16 + $0x68] sm:$0xff] }
 0x295   : > { %13730 = vmatmul.mubr.msk.f32.gmra.mrb[14].mxu0 %vm215_vm0, %v17006_v52  ;;  %13036 = vmatprep.mubr.msk.f32.mxu1 %vm215_vm0, %v10545_v10  ;;  %v10553_v52 = vld [vmem:[%s14966_s16 + $0x90] sm:$0xff]  ;;  %v11442_v10 = vld [vmem:[%s14966_s16 + $0xfb] sm:$0xff] }
 0x296   : > { %13732 = vmatprep.mubr.msk.f32.mxu0 %vm215_vm0, %v17011_v57  ;;  %v17462_v57 = vld [vmem:[%s14966_s16 + $0x182] sm:$0xff] }
 0x298   : > { %13037 = vmatmul.mubr.msk.f32.vlgmr.msra.gmra.mrb[0].mxu1 %vm215_vm0, %v10546_v43  ;;  %v11445_v43 = vld [vmem:[%s14966_s16 + $0x123] sm:$0xff] }
 0x299   : > { %13733 = vmatmul.mubr.msk.f32.gmra.mrb[16].mxu0 %vm215_vm0, %v17021_v54  ;;  %13959 = vmatpush3.bf16.msra.mxu1 %v17277_v49  ;;  %v10554_v54 = vld [vmem:[%s14966_s16 + $0x98] sm:$0xff] }
 0x29a   : > { %13039 = vmatprep.mubr.msk.f32.mxu1 %vm215_vm0, %v10547_v21  ;;  %13735 = vmatprep.mubr.msk.f32.mxu0 %vm215_vm0, %v17026_v56  ;;  %v17472_v56 = vld [vmem:[%s14966_s16 + $0x18a] sm:$0xff]  ;;  %v11389_v49 = vld [vmem:[%s14966_s16 + $0x1b2] sm:$0xff] }
 0x29b   : > { %13961 = vmatprep.subr.bf16.mxu1 %v13960_v26  ;;  %v10615_v21 = vld [vmem:[%s14966_s16 + $0x49] sm:$0xff] }
 0x29c   : > { %13040 = vmatmul.mubr.msk.f32.gmra.mrb[2].mxu1 %vm215_vm0, %v10548_v29  ;;  %v11448_v29 = vld [vmem:[%s14966_s16 + $0x143] sm:$0xff] }
 0x29d   : > { %13736 = vmatmul.mubr.msk.f32.gmra.mrb[18].mxu0 %vm215_vm0, %v17035_v58  ;;  %13042 = vmatprep.mubr.msk.f32.mxu1 %vm215_vm0, %v10549_v31  ;;  %v10555_v58 = vld [vmem:[%s14966_s16 + $0xa8] sm:$0xff] }
 0x29e   : > { %13738 = vmatprep.mubr.msk.f32.mxu0 %vm215_vm0, %v17040_v14  ;;  %13963 = vmatpush3.bf16.msra.mxu1 %v13960_v26  ;;  %v17476_v14 = vld [vmem:[%s14966_s16 + $0x19a] sm:$0xff] }
 0x29f   : > { %14068 = vmatprep.subr.bf16.mxu1 %v18215_v15  ;;  %v11447_v26 = vld [vmem:[%s14966_s16 + $0x13b] sm:$0xff] }
 0x2a0   : > { %13043 = vmatmul.mubr.msk.f32.gmra.mrb[4].mxu1 %vm215_vm0, %v10550_v7  ;;  %v10617_v31 = vld [vmem:[%s14966_s16 + $0x61] sm:$0xff]  ;;  %v11449_v7 = vld [vmem:[%s14966_s16 + $0x153] sm:$0xff] }
 0x2a1   : > { %13739 = vmatmul.mubr.msk.f32.gmra.mrb[20].mxu0 %vm215_vm0, %v17049_v55  ;;  %13045 = vmatprep.mubr.msk.f32.mxu1 %vm215_vm0, %v10551_v34  ;;  %v10556_v55 = vld [vmem:[%s14966_s16 + $0xb0] sm:$0xff]  ;;  %v18216_v34 = vld [vmem:[#allocation3_spill] sm:$0xff] }
 0x2a2   : > { %13741 = vmatprep.mubr.msk.f32.mxu0 %vm215_vm0, %v17054_v60  ;;  %v17486_v60 = vld [vmem:[%s14966_s16 + $0x1a2] sm:$0xff] }
 0x2a4   : > { %13046 = vmatmul.mubr.msk.f32.gmra.mrb[6].mxu1 %vm215_vm0, %v10552_v28  ;;  %v11450_v28 = vld [vmem:[%s14966_s16 + $0x15b] sm:$0xff] }
 0x2a5   : > { %13742 = vmatmul.mubr.msk.f32.gmra.mrb[22].mxu0 %vm215_vm0, %v17063_v4  ;;  %13048 = vmatprep.mubr.msk.f32.mxu1 %vm215_vm0, %v10553_v52  ;;  %v10557_v4 = vld [vmem:[%s14966_s16 + $0xc0] sm:$0xff] }
 0x2a6   : > { %13744 = vmatprep.mubr.msk.f32.mxu0 %vm215_vm0, %v17462_v57  ;;  %v10619_v52 = vld [vmem:[%s14966_s16 + $0x79] sm:$0xff] }
 0x2a8   : > { %13049 = vmatmul.mubr.msk.f32.gmra.mrb[8].mxu1 %vm215_vm0, %v10554_v54  ;;  %v11451_v54 = vld [vmem:[%s14966_s16 + $0x16b] sm:$0xff] }
 0x2a9   : > { %13745 = vmatmul.mubr.msk.f32.gmra.mrb[24].mxu0 %vm215_vm0, %v17472_v56  ;;  %13051 = vmatprep.mubr.msk.f32.mxu1 %vm215_vm0, %v10555_v58  ;;  %v10620_v58 = vld [vmem:[%s14966_s16 + $0x81] sm:$0xff] }
 0x2aa   : > { %13747 = vmatprep.mubr.msk.f32.mxu0 %vm215_vm0, %v17476_v14 }
 0x2ac   : > { %13052 = vmatmul.mubr.msk.f32.gmra.mrb[10].mxu1 %vm215_vm0, %v10556_v55  ;;  %v11452_v55 = vld [vmem:[%s14966_s16 + $0x173] sm:$0xff] }
 0x2ad   : > { %13748 = vmatmul.mubr.msk.f32.gmra.mrb[26].mxu0 %vm215_vm0, %v17486_v60  ;;  %13054 = vmatprep.mubr.msk.f32.mxu1 %vm215_vm0, %v10557_v4  ;;  %v10621_v4 = vld [vmem:[%s14966_s16 + $0x91] sm:$0xff] }
 0x2ae   : > { %13750 = vmatprep.mubr.msk.f32.mxu0 %vm215_vm0, %v11389_v49  ;;  %v11453_v49 = vld [vmem:[%s14966_s16 + $0x183] sm:$0xff] }
 0x2b0   : > { %13055 = vmatmul.mubr.msk.f32.gmra.mrb[12].mxu1 %vm215_vm0, %v10558_v1  ;;  %v10622_v1 = vld [vmem:[%s14966_s16 + $0x99] sm:$0xff] }
 0x2b1   : > { %13751 = vmatmul.mubr.msk.f32.gmra.mrb[28].mxu0 %vm215_vm0, %v11390_v30  ;;  %13057 = vmatprep.mubr.msk.f32.mxu1 %vm215_vm0, %v10559_v18  ;;  %v11454_v30 = vld [vmem:[%s14966_s16 + $0x18b] sm:$0xff] }
 0x2b2   : > { %13753 = vmatprep.mubr.msk.f32.mxu0 %vm215_vm0, %v11391_v6  ;;  %v10623_v18 = vld [vmem:[%s14966_s16 + $0xa9] sm:$0xff]  ;;  %v11455_v6 = vld [vmem:[%s14966_s16 + $0x19b] sm:$0xff] }
 0x2b4   : > { %13058 = vmatmul.mubr.msk.f32.gmra.mrb[14].mxu1 %vm215_vm0, %v10560_v20  ;;  %v10624_v20 = vld [vmem:[%s14966_s16 + $0xb1] sm:$0xff] }
 0x2b5   : > { %13754 = vmatmul.mubr.msk.f32.gmra.mrb[30].mxu0 %vm215_vm0, %v11392_v27  ;;  %13060 = vmatprep.mubr.msk.f32.mxu1 %vm215_vm0, %v10561_v25  ;;  %v11456_v27 = vld [vmem:[%s14966_s16 + $0x1a3] sm:$0xff] }
 0x2b6   : > { %13764 = vmatprep.mubr.msk.f32.mxu0 %vm215_vm0, %v11429_v42  ;;  %v10625_v25 = vld [vmem:[%s14966_s16 + $0xc1] sm:$0xff]  ;;  %v11457_v42 = vld [vmem:[%s14966_s16 + $0x1b3] sm:$0xff] }
 0x2b8   : > { %13061 = vmatmul.mubr.msk.f32.gmra.mrb[16].mxu1 %vm215_vm0, %v10562_v46  ;;  %v10627_v46 = vld [vmem:[%s14966_s16 + $0xd9] sm:$0xff] }
 0x2b9   : > { %13765 = vmatmul.mubr.msk.f32.vlgmr.msra.gmra.mrb[0].mxu0 %vm215_vm0, %v11430_v11  ;;  %13063 = vmatprep.mubr.msk.f32.mxu1 %vm215_vm0, %v10563_v48  ;;  %v11459_v11 = vld [vmem:[%s14966_s16 + $0x1cb] sm:$0xff]  ;;  %v10628_v48 = vld [vmem:[%s14966_s16 + $0xe1] sm:$0xff] }
 0x2ba   : > { %13767 = vmatprep.mubr.msk.f32.mxu0 %vm215_vm0, %v11431_v2  ;;  %14063 = vmatpush3.bf16.msra.mxu0 %v17370_v53  ;;  %v11436_v53 = vld [vmem:[%s14966_s16 + $0xb3] sm:$0xff] }
 0x2bb   : > { %14065 = vmatprep.subr.bf16.mxu0 %v14064_v9  ;;  %v11460_v2 = vld [vmem:[%s14966_s16 + $0x1d3] sm:$0xff] }
 0x2bc   : > { %13064 = vmatmul.mubr.msk.f32.gmra.mrb[18].mxu1 %vm215_vm0, %v10564_v51  ;;  %v11497_v51 = vld [vmem:[%s14966_s16 + $0x64] sm:$0xff] }
 0x2bd   : > { %13768 = vmatmul.mubr.msk.f32.gmra.mrb[2].mxu0 %vm215_vm0, %v11432_v62  ;;  %13066 = vmatprep.mubr.msk.f32.mxu1 %vm215_vm0, %v10565_v41  ;;  %v10630_v62 = vld [vmem:[%s14966_s16 + $0xf9] sm:$0xff]  ;;  %v11498_v41 = vld [vmem:[%s14966_s16 + $0x6c] sm:$0xff] }
 0x2be   : > { %13770 = vmatprep.mubr.msk.f32.mxu0 %vm215_vm0, %v11433_v32  ;;  %14067 = vmatpush3.bf16.msra.mxu0 %v14064_v9  ;;  %v10629_v9 = vld [vmem:[%s14966_s16 + $0xf1] sm:$0xff]  ;;  %v10631_v32 = vld [vmem:[%s14966_s16 + $0x109] sm:$0xff] }
 0x2c0   : > { %13067 = vmatmul.mubr.msk.f32.gmra.mrb[20].mxu1 %vm215_vm0, %v10566_v45  ;;  %v11499_v45 = vld [vmem:[%s14966_s16 + $0x7c] sm:$0xff] }
 0x2c1   : > { %13771 = vmatmul.mubr.msk.f32.gmra.mrb[4].mxu0 %vm215_vm0, %v11434_v47  ;;  %13069 = vmatprep.mubr.msk.f32.mxu1 %vm215_vm0, %v10567_v38  ;;  %v10632_v47 = vld [vmem:[%s14966_s16 + $0x111] sm:$0xff]  ;;  %v11500_v38 = vld [vmem:[%s14966_s16 + $0x84] sm:$0xff] }
 0x2c2   : > { %13773 = vmatprep.mubr.msk.f32.mxu0 %vm215_vm0, %v11435_v8  ;;  %v10633_v8 = vld [vmem:[%s14966_s16 + $0x121] sm:$0xff] }
 0x2c4   : > { %13070 = vmatmul.mubr.msk.f32.gmra.mrb[22].mxu1 %vm215_vm0, %v10568_v39  ;;  %v11501_v39 = vld [vmem:[%s14966_s16 + $0x94] sm:$0xff] }
 0x2c5   : > { %13774 = vmatmul.mubr.msk.f32.gmra.mrb[6].mxu0 %vm215_vm0, %v11436_v53  ;;  %13072 = vmatprep.mubr.msk.f32.mxu1 %vm215_vm0, %v10569_v63  ;;  %v10634_v53 = vld [vmem:[%s14966_s16 + $0x129] sm:$0xff]  ;;  %v11502_v63 = vld [vmem:[%s14966_s16 + $0x9c] sm:$0xff] }
 0x2c6   : > { %13776 = vmatprep.mubr.msk.f32.mxu0 %vm215_vm0, %v11437_v50  ;;  %v10635_v50 = vld [vmem:[%s14966_s16 + $0x139] sm:$0xff] }
 0x2c8   : > { %13073 = vmatmul.mubr.msk.f32.gmra.mrb[24].mxu1 %vm215_vm0, %v10570_v61  ;;  %v11503_v61 = vld [vmem:[%s14966_s16 + $0xac] sm:$0xff] }
 0x2c9   : > { %13777 = vmatmul.mubr.msk.f32.gmra.mrb[8].mxu0 %vm215_vm0, %v11438_v12  ;;  %13075 = vmatprep.mubr.msk.f32.mxu1 %vm215_vm0, %v10571_v17  ;;  %v10636_v12 = vld [vmem:[%s14966_s16 + $0x141] sm:$0xff]  ;;  %v11504_v17 = vld [vmem:[%s14966_s16 + $0xb4] sm:$0xff] }
 0x2ca   : > { %13779 = vmatprep.mubr.msk.f32.mxu0 %vm215_vm0, %v11439_v37  ;;  %v10637_v37 = vld [vmem:[%s14966_s16 + $0x151] sm:$0xff] }
 0x2cc   : > { %13076 = vmatmul.mubr.msk.f32.gmra.mrb[26].mxu1 %vm215_vm0, %v10572_v13  ;;  %v11505_v13 = vld [vmem:[%s14966_s16 + $0xc4] sm:$0xff] }
 0x2cd   : > { %13780 = vmatmul.mubr.msk.f32.gmra.mrb[10].mxu0 %vm215_vm0, %v11440_v22  ;;  %13078 = vmatprep.mubr.msk.f32.mxu1 %vm215_vm0, %v17124_v5  ;;  %v10613_v5 = vld [vmem:[%s14966_s16 + $0x31] sm:$0xff]  ;;  %v10638_v22 = vld [vmem:[%s14966_s16 + $0x159] sm:$0xff] }
 0x2ce   : > { %13782 = vmatprep.mubr.msk.f32.mxu0 %vm215_vm0, %v11441_v33  ;;  %v11506_v33 = vld [vmem:[%s14966_s16 + $0xcc] sm:$0xff] }
 0x2d0   : > { %13079 = vmatmul.mubr.msk.f32.gmra.mrb[28].mxu1 %vm215_vm0, %v17135_v19  ;;  %v10614_v19 = vld [vmem:[%s14966_s16 + $0x39] sm:$0xff] }
 0x2d1   : > { %13783 = vmatmul.mubr.msk.f32.gmra.mrb[12].mxu0 %vm215_vm0, %v11442_v10  ;;  %13081 = vmatprep.mubr.msk.f32.mxu1 %vm215_vm0, %v17138_v23  ;;  %v11446_v23 = vld [vmem:[%s14966_s16 + $0x12b] sm:$0xff] }
 0x2d2   : > { %13785 = vmatprep.mubr.msk.f32.mxu0 %vm215_vm0, %v11443_v3  ;;  %v10639_v10 = vld [vmem:[%s14966_s16 + $0x169] sm:$0xff]  ;;  %v11507_v3 = vld [vmem:[%s14966_s16 + $0xdc] sm:$0xff] }
 0x2d4   : > { %13082 = vmatmul.mubr.msk.f32.gmra.mrb[30].mxu1 %vm215_vm0, %v17149_v40  ;;  %v10616_v40 = vld [vmem:[%s14966_s16 + $0x51] sm:$0xff] }
 0x2d5   : > { %13786 = vmatmul.mubr.msk.f32.gmra.mrb[14].mxu0 %vm215_vm0, %v11444_v44  ;;  %13092 = vmatprep.mubr.msk.f32.mxu1 %vm215_vm0, %v10613_v5  ;;  %v10640_v44 = vld [vmem:[%s14966_s16 + $0x171] sm:$0xff]  ;;  %v11508_v5 = vld [vmem:[%s14966_s16 + $0xe4] sm:$0xff] }
 0x2d6   : > { %13788 = vmatprep.mubr.msk.f32.mxu0 %vm215_vm0, %v11445_v43  ;;  %v11509_v43 = vld [vmem:[%s14966_s16 + $0xf4] sm:$0xff] }
 0x2d8   : > { %13093 = vmatmul.mubr.msk.f32.vlgmr.msra.gmra.mrb[0].mxu1 %vm215_vm0, %v10614_v19  ;;  %v11510_v19 = vld [vmem:[%s14966_s16 + $0xfc] sm:$0xff] }
 0x2d9   : > { %13789 = vmatmul.mubr.msk.f32.gmra.mrb[16].mxu0 %vm215_vm0, %v11446_v23  ;;  %14070 = vmatpush3.bf16.msra.mxu1 %v18215_v15  ;;  %v10618_v15 = vld [vmem:[%s14966_s16 + $0x69] sm:$0xff] }
 0x2da   : > { %13095 = vmatprep.mubr.msk.f32.mxu1 %vm215_vm0, %v10615_v21  ;;  %13791 = vmatprep.mubr.msk.f32.mxu0 %vm215_vm0, %v11447_v26  ;;  %v11511_v23 = vld [vmem:[%s14966_s16 + $0x10c] sm:$0xff]  ;;  %v11512_v21 = vld [vmem:[%s14966_s16 + $0x114] sm:$0xff]  ;;  %v11513_v26 = vld [vmem:[%s14966_s16 + $0x124] sm:$0xff] }
 0x2db   : > { %14069 = vmatprep.subr.bf16.mxu1 %v18216_v34 }
 0x2dc   : > { %13096 = vmatmul.mubr.msk.f32.gmra.mrb[2].mxu1 %vm215_vm0, %v10616_v40  ;;  %v10699_v40 = vld [vmem:[%s14966_s16 + $0x10a] sm:$0xff] }
 0x2dd   : > { %13792 = vmatmul.mubr.msk.f32.gmra.mrb[18].mxu0 %vm215_vm0, %v11448_v29  ;;  %13098 = vmatprep.mubr.msk.f32.mxu1 %vm215_vm0, %v10617_v31  ;;  %v11515_v29 = vld [vmem:[%s14966_s16 + $0x13c] sm:$0xff]  ;;  %v11516_v31 = vld [vmem:[%s14966_s16 + $0x144] sm:$0xff] }
 0x2de   : > { %13794 = vmatprep.mubr.msk.f32.mxu0 %vm215_vm0, %v11449_v7  ;;  %14071 = vmatpush3.bf16.msra.mxu1 %v18216_v34  ;;  %v10701_v7 = vld [vmem:[%s14966_s16 + $0x122] sm:$0xff]  ;;  %v11517_v34 = vld [vmem:[%s14966_s16 + $0x154] sm:$0xff] }
 0x2e0   : > { %13099 = vmatmul.mubr.msk.f32.gmra.mrb[4].mxu1 %vm215_vm0, %v10618_v15  ;;  %v10702_v15 = vld [vmem:[%s14966_s16 + $0x12a] sm:$0xff] }
 0x2e1   : > { %13795 = vmatmul.mubr.msk.f32.gmra.mrb[20].mxu0 %vm215_vm0, %v11450_v28  ;;  %13101 = vmatprep.mubr.msk.f32.mxu1 %vm215_vm0, %v10619_v52  ;;  %v11518_v28 = vld [vmem:[%s14966_s16 + $0x15c] sm:$0xff] }
 0x2e2   : > { %13797 = vmatprep.mubr.msk.f32.mxu0 %vm215_vm0, %v11451_v54  ;;  %v10703_v52 = vld [vmem:[%s14966_s16 + $0x13a] sm:$0xff]  ;;  %v11519_v54 = vld [vmem:[%s14966_s16 + $0x16c] sm:$0xff] }
 0x2e4   : > { %13102 = vmatmul.mubr.msk.f32.gmra.mrb[6].mxu1 %vm215_vm0, %v10620_v58  ;;  %v10704_v58 = vld [vmem:[%s14966_s16 + $0x142] sm:$0xff] }
 0x2e5   : > { %13798 = vmatmul.mubr.msk.f32.gmra.mrb[22].mxu0 %vm215_vm0, %v11452_v55  ;;  %13104 = vmatprep.mubr.msk.f32.mxu1 %vm215_vm0, %v10621_v4  ;;  %v11520_v55 = vld [vmem:[%s14966_s16 + $0x174] sm:$0xff] }
 0x2e6   : > { %13800 = vmatprep.mubr.msk.f32.mxu0 %vm215_vm0, %v11453_v49  ;;  %v10705_v4 = vld [vmem:[%s14966_s16 + $0x152] sm:$0xff]  ;;  %v11521_v49 = vld [vmem:[%s14966_s16 + $0x184] sm:$0xff] }
 0x2e8   : > { %13105 = vmatmul.mubr.msk.f32.gmra.mrb[8].mxu1 %vm215_vm0, %v10622_v1  ;;  %v10706_v1 = vld [vmem:[%s14966_s16 + $0x15a] sm:$0xff] }
 0x2e9   : > { %13801 = vmatmul.mubr.msk.f32.gmra.mrb[24].mxu0 %vm215_vm0, %v11454_v30  ;;  %13107 = vmatprep.mubr.msk.f32.mxu1 %vm215_vm0, %v10623_v18  ;;  %v11522_v30 = vld [vmem:[%s14966_s16 + $0x18c] sm:$0xff] }
 0x2ea   : > { %13803 = vmatprep.mubr.msk.f32.mxu0 %vm215_vm0, %v11455_v6  ;;  %v10707_v18 = vld [vmem:[%s14966_s16 + $0x16a] sm:$0xff]  ;;  %v11523_v6 = vld [vmem:[%s14966_s16 + $0x19c] sm:$0xff] }
 0x2ec   : > { %13108 = vmatmul.mubr.msk.f32.gmra.mrb[10].mxu1 %vm215_vm0, %v10624_v20  ;;  %v10708_v20 = vld [vmem:[%s14966_s16 + $0x172] sm:$0xff] }
 0x2ed   : > { %13804 = vmatmul.mubr.msk.f32.gmra.mrb[26].mxu0 %vm215_vm0, %v11456_v27  ;;  %13110 = vmatprep.mubr.msk.f32.mxu1 %vm215_vm0, %v10625_v25  ;;  %v11524_v27 = vld [vmem:[%s14966_s16 + $0x1a4] sm:$0xff]  ;;  %v11525_v25 = vld [vmem:[%s14966_s16 + $0x1b4] sm:$0xff] }
 0x2ee   : > { %13806 = vmatprep.mubr.msk.f32.mxu0 %vm215_vm0, %v11457_v42  ;;  %v11526_v42 = vld [vmem:[%s14966_s16 + $0x1bc] sm:$0xff] }
 0x2f0   : > { %13111 = vmatmul.mubr.msk.f32.gmra.mrb[12].mxu1 %vm215_vm0, %v10626_v35  ;;  %v11527_v35 = vld [vmem:[%s14966_s16 + $0x1cc] sm:$0xff] }
 0x2f1   : > { %13807 = vmatmul.mubr.msk.f32.gmra.mrb[28].mxu0 %vm215_vm0, %v11458_v24  ;;  %13113 = vmatprep.mubr.msk.f32.mxu1 %vm215_vm0, %v10627_v46  ;;  %v11528_v24 = vld [vmem:[%s14966_s16 + $0x1d4] sm:$0xff] }
 0x2f2   : > { %13809 = vmatprep.mubr.msk.f32.mxu0 %vm215_vm0, %v11459_v11 }
 0x2f4   : > { %13114 = vmatmul.mubr.msk.f32.gmra.mrb[14].mxu1 %vm215_vm0, %v10628_v48 }
 0x2f5   : > { %13810 = vmatmul.mubr.msk.f32.gmra.mrb[30].mxu0 %vm215_vm0, %v11460_v2  ;;  %13116 = vmatprep.mubr.msk.f32.mxu1 %vm215_vm0, %v10629_v9 }
 0x2f6   : > { %13820 = vmatprep.mubr.msk.f32.mxu0 %vm215_vm0, %v11497_v51 }
 0x2f8   : > { %13117 = vmatmul.mubr.msk.f32.gmra.mrb[16].mxu1 %vm215_vm0, %v10630_v62 }
 0x2f9   : > { %13821 = vmatmul.mubr.msk.f32.vlgmr.msra.gmra.mrb[0].mxu0 %vm215_vm0, %v11498_v41  ;;  %13119 = vmatprep.mubr.msk.f32.mxu1 %vm215_vm0, %v10631_v32 }
 0x2fa   : > { %13823 = vmatprep.mubr.msk.f32.mxu0 %vm215_vm0, %v11499_v45 }
 0x2fc   : > { %13120 = vmatmul.mubr.msk.f32.gmra.mrb[18].mxu1 %vm215_vm0, %v10632_v47 }
 0x2fd   : > { %13824 = vmatmul.mubr.msk.f32.gmra.mrb[2].mxu0 %vm215_vm0, %v11500_v38  ;;  %13122 = vmatprep.mubr.msk.f32.mxu1 %vm215_vm0, %v10633_v8 }
 0x2fe   : > { %13826 = vmatprep.mubr.msk.f32.mxu0 %vm215_vm0, %v11501_v39 }
 0x300   : > { %13123 = vmatmul.mubr.msk.f32.gmra.mrb[20].mxu1 %vm215_vm0, %v10634_v53 }
 0x301   : > { %13827 = vmatmul.mubr.msk.f32.gmra.mrb[4].mxu0 %vm215_vm0, %v11502_v63  ;;  %13125 = vmatprep.mubr.msk.f32.mxu1 %vm215_vm0, %v10635_v50 }
 0x302   : > { %13829 = vmatprep.mubr.msk.f32.mxu0 %vm215_vm0, %v11503_v61 }
 0x304   : > { %13126 = vmatmul.mubr.msk.f32.gmra.mrb[22].mxu1 %vm215_vm0, %v10636_v12 }
 0x305   : > { %13830 = vmatmul.mubr.msk.f32.gmra.mrb[6].mxu0 %vm215_vm0, %v11504_v17  ;;  %13128 = vmatprep.mubr.msk.f32.mxu1 %vm215_vm0, %v10637_v37 }
 0x306   : > { %13832 = vmatprep.mubr.msk.f32.mxu0 %vm215_vm0, %v11505_v13 }
 0x308   : > { %13129 = vmatmul.mubr.msk.f32.gmra.mrb[24].mxu1 %vm215_vm0, %v10638_v22 }
 0x309   : > { %13833 = vmatmul.mubr.msk.f32.gmra.mrb[8].mxu0 %vm215_vm0, %v11506_v33  ;;  %13131 = vmatprep.mubr.msk.f32.mxu1 %vm215_vm0, %v10639_v10 }
 0x30a   : > { %13835 = vmatprep.mubr.msk.f32.mxu0 %vm215_vm0, %v11507_v3 }
 0x30c   : > { %13132 = vmatmul.mubr.msk.f32.gmra.mrb[26].mxu1 %vm215_vm0, %v10640_v44 }
 0x30d   : > { %13836 = vmatmul.mubr.msk.f32.gmra.mrb[10].mxu0 %vm215_vm0, %v11508_v5  ;;  %13134 = vmatprep.mubr.msk.f32.mxu1 %vm215_vm0, %v17296_v16  ;;  %v10697_v16 = vld [vmem:[%s14966_s16 + $0xf2] sm:$0xff] }
 0x30e   : > { %13838 = vmatprep.mubr.msk.f32.mxu0 %vm215_vm0, %v11509_v43 }
 0x310   : > { %13135 = vmatmul.mubr.msk.f32.gmra.mrb[28].mxu1 %vm215_vm0, %v17307_v36  ;;  %v10698_v36 = vld [vmem:[%s14966_s16 + $0xfa] sm:$0xff] }
 0x311   : > { %13839 = vmatmul.mubr.msk.f32.gmra.mrb[12].mxu0 %vm215_vm0, %v11510_v19  ;;  %13137 = vmatprep.mubr.msk.f32.mxu1 %vm215_vm0, %v17310_v59  ;;  %v11514_v59 = vld [vmem:[%s14966_s16 + $0x12c] sm:$0xff] }
 0x312   : > { %13841 = vmatprep.mubr.msk.f32.mxu0 %vm215_vm0, %v11511_v23 }
 0x314   : > { %13138 = vmatmul.mubr.msk.f32.gmra.mrb[30].mxu1 %vm215_vm0, %v17321_v0  ;;  %v10700_v0 = vld [vmem:[%s14966_s16 + $0x112] sm:$0xff] }
 0x315   : > { %13842 = vmatmul.mubr.msk.f32.gmra.mrb[14].mxu0 %vm215_vm0, %v11512_v21  ;;  %13172 = vmatprep.mubr.msk.f32.mxu1 %vm215_vm0, %v10697_v16 }
 0x316   : > { %13844 = vmatprep.mubr.msk.f32.mxu0 %vm215_vm0, %v11513_v26 }
 0x318   : > { %13173 = vmatmul.mubr.msk.f32.vlgmr.msra.gmra.mrb[16].mxu1 %vm215_vm0, %v10698_v36 }
 0x319   : > { %13845 = vmatmul.mubr.msk.f32.gmra.mrb[16].mxu0 %vm215_vm0, %v11514_v59  ;;  %13175 = vmatprep.mubr.msk.f32.mxu1 %vm215_vm0, %v10699_v40 }
 0x31a   : > { %13847 = vmatprep.mubr.msk.f32.mxu0 %vm215_vm0, %v11515_v29 }
 0x31c   : > { %13176 = vmatmul.mubr.msk.f32.gmra.mrb[18].mxu1 %vm215_vm0, %v10700_v0 }
 0x31d   : > { %13848 = vmatmul.mubr.msk.f32.gmra.mrb[18].mxu0 %vm215_vm0, %v11516_v31  ;;  %13178 = vmatprep.mubr.msk.f32.mxu1 %vm215_vm0, %v10701_v7 }
 0x31e   : > { %13850 = vmatprep.mubr.msk.f32.mxu0 %vm215_vm0, %v11517_v34 }
 0x320   : > { %13179 = vmatmul.mubr.msk.f32.gmra.mrb[20].mxu1 %vm215_vm0, %v10702_v15 }
 0x321   : > { %13851 = vmatmul.mubr.msk.f32.gmra.mrb[20].mxu0 %vm215_vm0, %v11518_v28  ;;  %13181 = vmatprep.mubr.msk.f32.mxu1 %vm215_vm0, %v10703_v52 }
 0x322   : > { %13853 = vmatprep.mubr.msk.f32.mxu0 %vm215_vm0, %v11519_v54 }
 0x324   : > { %13182 = vmatmul.mubr.msk.f32.gmra.mrb[22].mxu1 %vm215_vm0, %v10704_v58 }
 0x325   : > { %13854 = vmatmul.mubr.msk.f32.gmra.mrb[22].mxu0 %vm215_vm0, %v11520_v55  ;;  %13184 = vmatprep.mubr.msk.f32.mxu1 %vm215_vm0, %v10705_v4 }
 0x326   : > { %13856 = vmatprep.mubr.msk.f32.mxu0 %vm215_vm0, %v11521_v49 }
 0x328   : > { %13185 = vmatmul.mubr.msk.f32.gmra.mrb[24].mxu1 %vm215_vm0, %v10706_v1 }
 0x329   : > { %13857 = vmatmul.mubr.msk.f32.gmra.mrb[24].mxu0 %vm215_vm0, %v11522_v30  ;;  %13187 = vmatprep.mubr.msk.f32.mxu1 %vm215_vm0, %v10707_v18 }
 0x32a   : > { %13859 = vmatprep.mubr.msk.f32.mxu0 %vm215_vm0, %v11523_v6 }
 0x32c   : > { %13188 = vmatmul.mubr.msk.f32.gmra.mrb[26].mxu1 %vm215_vm0, %v10708_v20 }
 0x32d   : > { %13860 = vmatmul.mubr.msk.f32.gmra.mrb[26].mxu0 %vm215_vm0, %v11524_v27  ;;  %13190 = vmatprep.mubr.msk.f32.mxu1 %vm215_vm0, %v17462_v57 }
 0x32e   : > { %13862 = vmatprep.mubr.msk.f32.mxu0 %vm215_vm0, %v11525_v25 }
 0x330   : > { %13191 = vmatmul.mubr.msk.f32.gmra.mrb[28].mxu1 %vm215_vm0, %v17472_v56 }
 0x331   : > { %13863 = vmatmul.mubr.msk.f32.gmra.mrb[28].mxu0 %vm215_vm0, %v11526_v42  ;;  %13193 = vmatprep.mubr.msk.f32.mxu1 %vm215_vm0, %v17476_v14 }
 0x332   : > { %13865 = vmatprep.mubr.msk.f32.mxu0 %vm215_vm0, %v11527_v35 }
 0x334   : > { %13194 = vmatmul.mubr.msk.f32.gmra.mrb[30].mxu1 %vm215_vm0, %v17486_v60  ;;  %v17776_v60 = vld [vmem:[%s17853_s2] ss:$0 sm:$0xff] }
 0x335   : > { %13866 = vmatmul.mubr.msk.f32.gmra.mrb[30].mxu0 %vm215_vm0, %v11528_v24 }
 0x3ab   : > { %v13094_v57 = vpop.f32.mrb[0].mxu1 }
 0x3ac   : > { %v4670_v46 = vpop.f32.mrb[1].mxu1  ;;  %v14072_v39 = vadd.f32 %v13094_v57, %v17776_v60 }
 0x3ad   : > { %v14074_v53 = vadd.f32 %v17776_v60, %v4670_v46 }
 0x3af   : > { %v13097_v11 = vpop.f32.mrb[2].mxu1 }
 0x3b0   : > { %v4680_v48 = vpop.f32.mrb[3].mxu1  ;;  %v14076_v17 = vadd.f32 %v13097_v11, %v17776_v60 }
 0x3b1   : > { %v14078_v37 = vadd.f32 %v17776_v60, %v4680_v48 }
 0x3b3   : > { %v13100_v2 = vpop.f32.mrb[4].mxu1 }
 0x3b4   : > { %v4690_v56 = vpop.f32.mrb[5].mxu1  ;;  %v14080_v3 = vadd.f32 %v13100_v2, %v17776_v60 }
 0x3b5   : > { %v14082_v44 = vadd.f32 %v17776_v60, %v4690_v56 }
 0x3b7   : > { %v13103_v9 = vpop.f32.mrb[6].mxu1 }
 0x3b8   : > { %v4700_v51 = vpop.f32.mrb[7].mxu1  ;;  %v14084_v21 = vadd.f32 %v13103_v9, %v17776_v60 }
 0x3b9   : > { %v14086_v16 = vadd.f32 %v17776_v60, %v4700_v51 }
 0x3bb   : > { %v13106_v62 = vpop.f32.mrb[8].mxu1 }
 0x3bc   : > { %v4710_v41 = vpop.f32.mrb[9].mxu1  ;;  %v14088_v29 = vadd.f32 %v13106_v62, %v17776_v60 }
 0x3bd   : > { %v14090_v0 = vadd.f32 %v17776_v60, %v4710_v41 }
 0x3bf   : > { %v13109_v14 = vpop.f32.mrb[10].mxu1 }
 0x3c0   : > { %v4720_v32 = vpop.f32.mrb[11].mxu1  ;;  %v14092_v28 = vadd.f32 %v13109_v14, %v17776_v60 }
 0x3c1   : > { %v14094_v52 = vadd.f32 %v17776_v60, %v4720_v32 }
 0x3c3   : > { %v13112_v45 = vpop.f32.mrb[12].mxu1 }
 0x3c4   : > { %v4730_v47 = vpop.f32.mrb[13].mxu1  ;;  %v14096_v49 = vadd.f32 %v13112_v45, %v17776_v60 }
 0x3c5   : > { %v14098_v1 = vadd.f32 %v17776_v60, %v4730_v47 }
 0x3c7   : > { %v13115_v38 = vpop.f32.mrb[14].mxu1 }
 0x3c8   : > { %v4740_v8 = vpop.f32.mrb[15].mxu1  ;;  %v14100_v27 = vadd.f32 %v13115_v38, %v17776_v60 }
 0x3c9   : > { %v14102_v25 = vadd.f32 %v17776_v60, %v4740_v8 }
 0x3cc   : > { %v13822_v63 = vpop.f32.mrb[0].mxu0 }
 0x3cd   : > { %v14073_v50 = vadd.f32 %v14072_v39, %v13822_v63  ;;  %v9742_v61 = vpop.f32.mrb[1].mxu0 }
 0x3ce   : > { %v14075_v12 = vadd.f32 %v14074_v53, %v9742_v61 }
 0x3cf   : > { %9934 = vst [vmem:[%s17784_s29 + $0x8] sm:$0xff] %v14073_v50 }
 0x3d0   : > { %9933 = vst [vmem:[%s17784_s29] sm:$0xff] %v14075_v12  ;;  %v13825_v13 = vpop.f32.mrb[2].mxu0 }
 0x3d1   : > { %v14077_v22 = vadd.f32 %v14076_v17, %v13825_v13  ;;  %v9752_v33 = vpop.f32.mrb[3].mxu0 }
 0x3d2   : > { %v14079_v10 = vadd.f32 %v14078_v37, %v9752_v33 }
 0x3d3   : > { %9936 = vst [vmem:[%s17784_s29 + $0x18] sm:$0xff] %v14077_v22 }
 0x3d4   : > { %9935 = vst [vmem:[%s17784_s29 + $0x10] sm:$0xff] %v14079_v10  ;;  %v13828_v5 = vpop.f32.mrb[4].mxu0 }
 0x3d5   : > { %v14081_v43 = vadd.f32 %v14080_v3, %v13828_v5  ;;  %v9762_v19 = vpop.f32.mrb[5].mxu0 }
 0x3d6   : > { %v14083_v23 = vadd.f32 %v14082_v44, %v9762_v19 }
 0x3d7   : > { %9938 = vst [vmem:[%s17784_s29 + $0x28] sm:$0xff] %v14081_v43 }
 0x3d8   : > { %9937 = vst [vmem:[%s17784_s29 + $0x20] sm:$0xff] %v14083_v23  ;;  %v13831_v26 = vpop.f32.mrb[6].mxu0 }
 0x3d9   : > { %v14085_v36 = vadd.f32 %v14084_v21, %v13831_v26  ;;  %v9772_v59 = vpop.f32.mrb[7].mxu0 }
 0x3da   : > { %v14087_v40 = vadd.f32 %v14086_v16, %v9772_v59 }
 0x3db   : > { %9940 = vst [vmem:[%s17784_s29 + $0x38] sm:$0xff] %v14085_v36 }
 0x3dc   : > { %9939 = vst [vmem:[%s17784_s29 + $0x30] sm:$0xff] %v14087_v40  ;;  %v13834_v31 = vpop.f32.mrb[8].mxu0 }
 0x3dd   : > { %v14089_v7 = vadd.f32 %v14088_v29, %v13834_v31  ;;  %v9782_v34 = vpop.f32.mrb[9].mxu0 }
 0x3de   : > { %v14091_v15 = vadd.f32 %v14090_v0, %v9782_v34 }
 0x3df   : > { %9942 = vst [vmem:[%s17784_s29 + $0x48] sm:$0xff] %v14089_v7 }
 0x3e0   : > { %9941 = vst [vmem:[%s17784_s29 + $0x40] sm:$0xff] %v14091_v15  ;;  %v13837_v54 = vpop.f32.mrb[10].mxu0 }
 0x3e1   : > { %v14093_v58 = vadd.f32 %v14092_v28, %v13837_v54  ;;  %v9792_v55 = vpop.f32.mrb[11].mxu0 }
 0x3e2   : > { %v14095_v4 = vadd.f32 %v14094_v52, %v9792_v55 }
 0x3e3   : > { %9944 = vst [vmem:[%s17784_s29 + $0x58] sm:$0xff] %v14093_v58 }
 0x3e4   : > { %9943 = vst [vmem:[%s17784_s29 + $0x50] sm:$0xff] %v14095_v4  ;;  %v13840_v30 = vpop.f32.mrb[12].mxu0 }
 0x3e5   : > { %v14097_v18 = vadd.f32 %v14096_v49, %v13840_v30  ;;  %v9802_v6 = vpop.f32.mrb[13].mxu0 }
 0x3e6   : > { %v14099_v20 = vadd.f32 %v14098_v1, %v9802_v6 }
 0x3e7   : > { %9946 = vst [vmem:[%s17784_s29 + $0x68] sm:$0xff] %v14097_v18 }
 0x3e8   : > { %9945 = vst [vmem:[%s17784_s29 + $0x60] sm:$0xff] %v14099_v20  ;;  %v13843_v42 = vpop.f32.mrb[14].mxu0 }
 0x3e9   : > { %v14101_v35 = vadd.f32 %v14100_v27, %v13843_v42  ;;  %v9812_v24 = vpop.f32.mrb[15].mxu0 }
 0x3ea   : > { %v14103_v57 = vadd.f32 %v14102_v25, %v9812_v24 }
 0x3eb   : > { %9948 = vst [vmem:[%s17784_s29 + $0x78] sm:$0xff] %v14101_v35  ;;  %v13174_v46 = vpop.f32.mrb[16].mxu1 }
 0x3ec   : > { %9947 = vst [vmem:[%s17784_s29 + $0x70] sm:$0xff] %v14103_v57  ;;  %v14104_v11 = vadd.f32 %v13174_v46, %v17776_v60  ;;  %v13846_v48 = vpop.f32.mrb[16].mxu0  ;;  %v5140_v2 = vpop.f32.mrb[17].mxu1 }
 0x3ed   : > { %v14106_v56 = vadd.f32 %v17776_v60, %v5140_v2  ;;  %v9822_v9 = vpop.f32.mrb[17].mxu0 }
 0x3ee   : > { %v14105_v51 = vadd.f32 %v14104_v11, %v13846_v48 }
 0x3ef   : > { %v14107_v62 = vadd.f32 %v14106_v56, %v9822_v9  ;;  %v13177_v41 = vpop.f32.mrb[18].mxu1 }
 0x3f0   : > { %9950 = vst [vmem:[%s17784_s29 + $0x88] sm:$0xff] %v14105_v51  ;;  %v14108_v14 = vadd.f32 %v13177_v41, %v17776_v60  ;;  %v13849_v32 = vpop.f32.mrb[18].mxu0  ;;  %v5150_v45 = vpop.f32.mrb[19].mxu1 }
 0x3f1   : > { %9949 = vst [vmem:[%s17784_s29 + $0x80] sm:$0xff] %v14107_v62  ;;  %v14110_v47 = vadd.f32 %v17776_v60, %v5150_v45  ;;  %v9832_v38 = vpop.f32.mrb[19].mxu0 }
 0x3f2   : > { %v14109_v8 = vadd.f32 %v14108_v14, %v13849_v32 }
 0x3f3   : > { %v14111_v39 = vadd.f32 %v14110_v47, %v9832_v38  ;;  %v13180_v53 = vpop.f32.mrb[20].mxu1 }
 0x3f4   : > { %9952 = vst [vmem:[%s17784_s29 + $0x98] sm:$0xff] %v14109_v8  ;;  %v14112_v63 = vadd.f32 %v13180_v53, %v17776_v60  ;;  %v13852_v50 = vpop.f32.mrb[20].mxu0  ;;  %v5160_v61 = vpop.f32.mrb[21].mxu1 }
 0x3f5   : > { %9951 = vst [vmem:[%s17784_s29 + $0x90] sm:$0xff] %v14111_v39  ;;  %v14114_v12 = vadd.f32 %v17776_v60, %v5160_v61  ;;  %v9842_v17 = vpop.f32.mrb[21].mxu0 }
 0x3f6   : > { %v14113_v37 = vadd.f32 %v14112_v63, %v13852_v50 }
 0x3f7   : > { %v14115_v13 = vadd.f32 %v14114_v12, %v9842_v17  ;;  %v13183_v22 = vpop.f32.mrb[22].mxu1 }
 0x3f8   : > { %9954 = vst [vmem:[%s17784_s29 + $0xa8] sm:$0xff] %v14113_v37  ;;  %v14116_v33 = vadd.f32 %v13183_v22, %v17776_v60  ;;  %v13855_v10 = vpop.f32.mrb[22].mxu0  ;;  %v5170_v3 = vpop.f32.mrb[23].mxu1 }
 0x3f9   : > { %9953 = vst [vmem:[%s17784_s29 + $0xa0] sm:$0xff] %v14115_v13  ;;  %v14118_v44 = vadd.f32 %v17776_v60, %v5170_v3  ;;  %v9852_v5 = vpop.f32.mrb[23].mxu0 }
 0x3fa   : > { %v14117_v43 = vadd.f32 %v14116_v33, %v13855_v10 }
 0x3fb   : > { %v14119_v19 = vadd.f32 %v14118_v44, %v9852_v5  ;;  %v13186_v23 = vpop.f32.mrb[24].mxu1 }
 0x3fc   : > { %9956 = vst [vmem:[%s17784_s29 + $0xb8] sm:$0xff] %v14117_v43  ;;  %v14120_v21 = vadd.f32 %v13186_v23, %v17776_v60  ;;  %v13858_v16 = vpop.f32.mrb[24].mxu0  ;;  %v5180_v26 = vpop.f32.mrb[25].mxu1 }
 0x3fd   : > { %9955 = vst [vmem:[%s17784_s29 + $0xb0] sm:$0xff] %v14119_v19  ;;  %v14122_v36 = vadd.f32 %v17776_v60, %v5180_v26  ;;  %v9862_v59 = vpop.f32.mrb[25].mxu0 }
 0x3fe   : > { %v14121_v40 = vadd.f32 %v14120_v21, %v13858_v16 }
 0x3ff   : > { %v14123_v29 = vadd.f32 %v14122_v36, %v9862_v59  ;;  %v13189_v0 = vpop.f32.mrb[26].mxu1 }
 0x400   : > { %9958 = vst [vmem:[%s17784_s29 + $0xc8] sm:$0xff] %v14121_v40  ;;  %v14124_v31 = vadd.f32 %v13189_v0, %v17776_v60  ;;  %v13861_v7 = vpop.f32.mrb[26].mxu0  ;;  %v5190_v34 = vpop.f32.mrb[27].mxu1 }
 0x401   : > { %9957 = vst [vmem:[%s17784_s29 + $0xc0] sm:$0xff] %v14123_v29  ;;  %v14126_v15 = vadd.f32 %v17776_v60, %v5190_v34  ;;  %v9872_v28 = vpop.f32.mrb[27].mxu0 }
 0x402   : > { %v14125_v52 = vadd.f32 %v14124_v31, %v13861_v7 }
 0x403   : > { %v14127_v54 = vadd.f32 %v14126_v15, %v9872_v28  ;;  %v13192_v58 = vpop.f32.mrb[28].mxu1 }
 0x404   : > { %9960 = vst [vmem:[%s17784_s29 + $0xd8] sm:$0xff] %v14125_v52  ;;  %v14128_v55 = vadd.f32 %v13192_v58, %v17776_v60  ;;  %v13864_v4 = vpop.f32.mrb[28].mxu0  ;;  %v5200_v49 = vpop.f32.mrb[29].mxu1 }
 0x405   : > { %9959 = vst [vmem:[%s17784_s29 + $0xd0] sm:$0xff] %v14127_v54  ;;  %v14130_v1 = vadd.f32 %v17776_v60, %v5200_v49  ;;  %v9882_v30 = vpop.f32.mrb[29].mxu0 }
 0x406   : > { %v14129_v18 = vadd.f32 %v14128_v55, %v13864_v4 }
 0x407   : > { %v14131_v6 = vadd.f32 %v14130_v1, %v9882_v30  ;;  %v13195_v20 = vpop.f32.mrb[30].mxu1 }
 0x408   : > { %9962 = vst [vmem:[%s17784_s29 + $0xe8] sm:$0xff] %v14129_v18  ;;  %v14132_v27 = vadd.f32 %v13195_v20, %v17776_v60  ;;  %v13867_v25 = vpop.f32.mrb[30].mxu0  ;;  %v5210_v42 = vpop.f32.mrb[31].mxu1 }
 0x409   : > { %9961 = vst [vmem:[%s17784_s29 + $0xe0] sm:$0xff] %v14131_v6  ;;  %v14134_v35 = vadd.f32 %v17776_v60, %v5210_v42  ;;  %v9892_v24 = vpop.f32.mrb[31].mxu0 }
 0x40a   : > { %v14133_v57 = vadd.f32 %v14132_v27, %v13867_v25 }
 0x40b   : > { %v14135_v46 = vadd.f32 %v14134_v35, %v9892_v24 }
 0x40c   : > { %9964 = vst [vmem:[%s17784_s29 + $0xf8] sm:$0xff] %v14133_v57 }
 0x40d   : > { %9963 = vst [vmem:[%s17784_s29 + $0xf0] sm:$0xff] %v14135_v46 }
 0x40e PF: > { %s13_s12 = sadd.s32 1, %s14887_s12  }
 0x40f   : > { %p10_p4 = scmp.ge.s32.totalorder %s13_s12, 4  }
 0x411   :  { %12 = sbr.rel (!%p10_p4) target bundleno = 1 (0x1), region = 90 }

</bundles_post_ra>
